<compile_context>
chip_gen: v6e
topology: v6e:2x2x1
jax: 0.10.0
libtpu: 0.0.40
codegen_flags: <defaults>
</compile_context>

<pallas_src>
import functools

import numpy as np

import jax
import jax.numpy as jnp
from jax.experimental import pallas as pl
from jax.experimental.pallas import tpu as pltpu

SOS_token = 1

# Hyperparameters (GreedySearchDecoder.__init__ does not fix them; chosen small).
HIDDEN = 32      # hidden size == embedding size (as in the tutorial models)
VOCAB = 64       # output vocabulary size
# encoder / decoder n_layers = 1, attn_model = "dot"


def _round_up(x, m):
    return ((x + m - 1) // m) * m


# --------------------------------------------------------------------------
# Packed weight slab layout (single contiguous f32 array, 1 DMA).
# --------------------------------------------------------------------------
def _layout(hidden, vocab):
    """Static row/column offsets of every weight section inside the slab."""
    H, V = hidden, vocab
    h3 = 3 * H
    bwd = _round_up(h3, 128)            # lane offset of encoder backward-direction block
    lay = {'bwd': bwd, 'width': 2 * bwd}
    cur = 0

    def take(name, nrows):
        nonlocal cur
        lay[name] = cur
        cur += _round_up(nrows, 8)      # every section starts 8-sublane aligned

    take('emb', V)          # (V, H)                              cols [0:H]
    take('wih_bd', 2 * H)   # block-diag enc Wih: fwd rows[0:H]   cols [0:3H]
    take('whh_bd', 2 * H)   #                     bwd rows[H:2H]  cols [bwd:bwd+3H]
    take('bih_cat', 1)      # b_ih_f cols[0:3H] | b_ih_b cols[bwd:bwd+3H]
    take('bhh_cat', 1)      # b_hh_f / b_hh_b likewise
    take('dwih', H)         # decoder GRU W_ih (H, 3H)            cols [0:3H]
    take('dwhh', H)         # decoder GRU W_hh (H, 3H)
    take('dbih', 1)
    take('dbhh', 1)
    take('wc', 2 * H)       # concat linear (2H, H)               cols [0:H]
    take('bc', 1)
    take('wo', H)           # out linear (H, V)                   cols [0:V]
    take('bo', 1)
    lay['rows'] = cur
    return lay


def pack_params(params):
    """Host-side, one-time: pack all module weights into one (rows, width) f32 slab."""
    V, H = params['embedding'].shape
    h3 = 3 * H
    lay = _layout(H, V)
    bwd = lay['bwd']
    slab = np.zeros((lay['rows'], lay['width']), np.float32)

    def put(name, arr, row_extra=0, col=0):
        a = np.asarray(arr, np.float32)
        r0 = lay[name] + row_extra
        slab[r0:r0 + a.shape[0], col:col + a.shape[1]] = a

    put('emb', params['embedding'])
    # encoder block-diagonal input / hidden projections
    put('wih_bd', params['enc_wih_f'])
    put('wih_bd', params['enc_wih_b'], row_extra=H, col=bwd)
    put('whh_bd', params['enc_whh_f'])
    put('whh_bd', params['enc_whh_b'], row_extra=H, col=bwd)
    put('bih_cat', params['enc_bih_f'])
    put('bih_cat', params['enc_bih_b'], col=bwd)
    put('bhh_cat', params['enc_bhh_f'])
    put('bhh_cat', params['enc_bhh_b'], col=bwd)
    # decoder GRU + attention head
    put('dwih', params['dec_wih'])
    put('dwhh', params['dec_whh'])
    put('dbih', params['dec_bih'])
    put('dbhh', params['dec_bhh'])
    put('wc', params['concat_w'])
    put('bc', params['concat_b'])
    put('wo', params['out_w'])
    put('bo', params['out_b'])
    return jnp.asarray(slab), H, V


# --------------------------------------------------------------------------
# Kernel
# --------------------------------------------------------------------------
def _gru_gates(gx, gh, h, hidden):
    """PyTorch GRU cell given gx = x@Wih + b_ih and gh = h@Whh + b_hh (each (1,3H))."""
    r = jax.nn.sigmoid(gx[:, 0:hidden] + gh[:, 0:hidden])
    z = jax.nn.sigmoid(gx[:, hidden:2 * hidden] + gh[:, hidden:2 * hidden])
    n = jnp.tanh(gx[:, 2 * hidden:3 * hidden] + r * gh[:, 2 * hidden:3 * hidden])
    return (1.0 - z) * n + z * h


def _greedy_search_kernel(tok_ref,                 # (T, 1) int32 VMEM
                          slab_ref,                # (rows, width) f32 VMEM  (packed weights)
                          tok_out_ref,             # (1, out_w) int32
                          score_out_ref,           # (1, out_w) f32
                          gx_ref,                  # scratch (T_pad, width) f32
                          *, hidden, vocab, max_length, lay):
    H, V = hidden, vocab
    h3 = 3 * H
    bwd = lay['bwd']
    T = tok_ref.shape[0]
    out_w = tok_out_ref.shape[1]

    # ---- one-time precompute (off every serial recurrence chain) ------------
    emb = slab_ref[lay['emb']:lay['emb'] + V, 0:H]                         # (V, H)
    onehot_seq = (jax.lax.broadcasted_iota(jnp.int32, (T, V), 1)
                  == tok_ref[...]).astype(jnp.float32)                     # (T, V)
    emb_seq = jnp.dot(onehot_seq, emb, preferred_element_type=jnp.float32)  # (T, H)
    emb_cat = jnp.concatenate([emb_seq, emb_seq], axis=1)                  # (T, 2H)
    wih_bd = slab_ref[lay['wih_bd']:lay['wih_bd'] + 2 * H, :]              # (2H, width)
    bih_cat = slab_ref[lay['bih_cat']:lay['bih_cat'] + 1, :]               # (1, width)
    # Per-position GRU input pre-activations for BOTH encoder directions:
    #   row t = [ x_t@Wih_f + b_ih_f | pad | x_t@Wih_b + b_ih_b | pad ]
    gx_ref[0:T, :] = (jnp.dot(emb_cat, wih_bd, preferred_element_type=jnp.float32)
                      + bih_cat)

    # ---- encoder: bidirectional GRU, both directions in ONE matmul per step -
    whh_bd = slab_ref[lay['whh_bd']:lay['whh_bd'] + 2 * H, :]              # (2H, width)
    bhh_cat = slab_ref[lay['bhh_cat']:lay['bhh_cat'] + 1, :]               # (1, width)
    row_iota = jax.lax.broadcasted_iota(jnp.int32, (T, 1), 0)
    h_cat0 = jnp.zeros((1, 2 * H), jnp.float32)                            # [h_f | h_b]
    acc0 = jnp.zeros((T, H), jnp.float32)

    def enc_body(t, carry):
        h_cat, acc_f, acc_b = carry
        tr = T - 1 - t
        gx_f = gx_ref[pl.ds(t, 1), 0:h3]                # single VMEM row loads
        gx_b = gx_ref[pl.ds(tr, 1), bwd:bwd + h3]
        # one block-diagonal matmul produces gh for both directions
        gh = jnp.dot(h_cat, whh_bd, preferred_element_type=jnp.float32) + bhh_cat
        h_f_new = _gru_gates(gx_f, gh[:, 0:h3], h_cat[:, 0:H], H)
        h_b_new = _gru_gates(gx_b, gh[:, bwd:bwd + h3], h_cat[:, H:2 * H], H)
        acc_f = jnp.where(row_iota == t, h_f_new, acc_f)      # vreg select, no store
        acc_b = jnp.where(row_iota == tr, h_b_new, acc_b)
        return jnp.concatenate([h_f_new, h_b_new], axis=1), acc_f, acc_b

    h_cat, acc_f, acc_b = jax.lax.fori_loop(0, T, enc_body,
                                            (h_cat0, acc0, acc0), unroll=True)
    enc_out = acc_f + acc_b              # (T, H): sum of the two directions
    h_dec = h_cat[:, 0:H]                # decoder_hidden = forward final hidden

    # ---- decoder: hoist all loop-invariant weights out of the greedy loop ---
    dwhh = slab_ref[lay['dwhh']:lay['dwhh'] + H, 0:h3]
    dbhh = slab_ref[lay['dbhh']:lay['dbhh'] + 1, 0:h3]
    dwih = slab_ref[lay['dwih']:lay['dwih'] + H, 0:h3]
    dbih = slab_ref[lay['dbih']:lay['dbih'] + 1, 0:h3]
    wc_rnn = slab_ref[lay['wc']:lay['wc'] + H, 0:H]            # rnn_output half of concat W
    wc_ctx = slab_ref[lay['wc'] + H:lay['wc'] + 2 * H, 0:H]    # context half
    bc = slab_ref[lay['bc']:lay['bc'] + 1, 0:H]
    wo = slab_ref[lay['wo']:lay['wo'] + H, 0:V]
    bo = slab_ref[lay['bo']:lay['bo'] + 1, 0:V]
    # Embedding lookup + decoder GRU input projection + b_ih folded into a
    # per-token table so each greedy step's gather is one one-hot matmul.
    # TODO(synk): tile this over V at production vocab sizes instead of
    # materializing all (V, 3H) rows.
    projd = jnp.dot(emb, dwih, preferred_element_type=jnp.float32) + dbih   # (V, 3H)

    lane_v = jax.lax.broadcasted_iota(jnp.int32, (1, V), 1)
    lane_o = jax.lax.broadcasted_iota(jnp.int32, (1, out_w), 1)

    def dec_body(step, carry):
        h, gx, tok_vec, score_vec = carry
        gh = jnp.dot(h, dwhh, preferred_element_type=jnp.float32) + dbhh
        h_new = _gru_gates(gx, gh, h, H)                          # rnn_output (1, H)

        # Luong "dot" attention: contract on H (no transpose), softmax over T.
        energies = jax.lax.dot_general(h_new, enc_out, (((1,), (1,)), ((), ())),
                                       preferred_element_type=jnp.float32)   # (1, T)
        energies = energies - jnp.max(energies, axis=-1, keepdims=True)
        w = jnp.exp(energies)
        attn = w * pl.reciprocal(jnp.sum(w, axis=-1, keepdims=True), approx=True)
        context = jnp.dot(attn, enc_out, preferred_element_type=jnp.float32)  # (1, H)

        # concat([rnn_out, context]) @ Wc + bc, tanh  (concat as split matmul)
        concat_out = jnp.tanh(
            jnp.dot(h_new, wc_rnn, preferred_element_type=jnp.float32)
            + jnp.dot(context, wc_ctx, preferred_element_type=jnp.float32)
            + bc)
        logits = jnp.dot(concat_out, wo, preferred_element_type=jnp.float32) + bo  # (1, V)

        # torch.max(softmax(logits), dim=1): argmax on logits (monotonic),
        # max prob = 1 / sum(exp(logits - max)) -- exact divide (off the chain).
        m = jnp.max(logits, axis=-1, keepdims=True)                           # (1, 1)
        sum_exp = jnp.sum(jnp.exp(logits - m), axis=-1, keepdims=True)
        best_score = 1.0 / sum_exp                                            # (1, 1)
        best_idx = jnp.min(jnp.where(logits >= m, lane_v, V),
                           axis=-1, keepdims=True)       # (1, 1) first-index tie-break
        best_idx = jnp.minimum(best_idx, V - 1)           # guard (keeps one-hot in range)

        # next-step GRU input pre-activation: gather projd row via one-hot matmul
        one_hot = (lane_v == best_idx).astype(jnp.float32)                    # (1, V)
        gx_next = jnp.dot(one_hot, projd, preferred_element_type=jnp.float32)  # (1, 3H)

        # lane-dense accumulation of tokens / scores (single unmasked store after loop)
        tok_vec = jnp.where(lane_o == step, best_idx, tok_vec)
        score_vec = jnp.where(lane_o == step, best_score, score_vec)
        return h_new, gx_next, tok_vec, score_vec

    gx0 = jnp.dot((lane_v == SOS_token).astype(jnp.float32), projd,
                  preferred_element_type=jnp.float32)     # SOS input pre-activation
    tok0 = jnp.zeros((1, out_w), jnp.int32)
    sc0 = jnp.zeros((1, out_w), jnp.float32)
    _h, _gx, tok_vec, score_vec = jax.lax.fori_loop(
        0, max_length, dec_body, (h_dec, gx0, tok0, sc0), unroll=True)

    tok_out_ref[...] = tok_vec
    score_out_ref[...] = score_vec


def _vmem_spec():
    return pl.BlockSpec(memory_space=pltpu.MemorySpace.VMEM)


@functools.partial(jax.jit, static_argnums=(3, 4, 5))
def greedy_search_decoder(weight_slab, input_seq, input_length, max_length, hidden, vocab):
    """Mirrors GreedySearchDecoder.forward(input_seq, input_length, max_length)."""
    # TODO(synk): packed-sequence handling for input_length < seq_len is not
    # implemented; the kernel assumes input_length == input_seq.shape[0].
    del input_length
    lay = _layout(hidden, vocab)
    tok_col = input_seq.reshape(-1, 1).astype(jnp.int32)          # (T, 1)
    seq_len = tok_col.shape[0]
    out_w = max(128, _round_up(max_length, 128))                  # lane-dense outputs

    kernel = functools.partial(_greedy_search_kernel, hidden=hidden, vocab=vocab,
                               max_length=max_length, lay=lay)
    tok2d, score2d = pl.pallas_call(
        kernel,
        out_shape=(jax.ShapeDtypeStruct((1, out_w), jnp.int32),
                   jax.ShapeDtypeStruct((1, out_w), jnp.float32)),
        in_specs=[_vmem_spec(), _vmem_spec()],
        out_specs=(_vmem_spec(), _vmem_spec()),
        scratch_shapes=[pltpu.VMEM((_round_up(seq_len, 8), lay['width']), jnp.float32)],
    )(tok_col, weight_slab)

    return tok2d[0, :max_length], score2d[0, :max_length]


def init_params(key, vocab=VOCAB, hidden=HIDDEN):
    ks = jax.random.split(key, 16)
    scale = 0.1

    def norm(k, shape):
        return (scale * jax.random.normal(k, shape)).astype(jnp.float32)

    return {
        'embedding': norm(ks[0], (vocab, hidden)),
        # encoder bidirectional GRU (forward / backward directions)
        'enc_wih_f': norm(ks[1], (hidden, 3 * hidden)),
        'enc_whh_f': norm(ks[2], (hidden, 3 * hidden)),
        'enc_bih_f': norm(ks[3], (1, 3 * hidden)),
        'enc_bhh_f': norm(ks[4], (1, 3 * hidden)),
        'enc_wih_b': norm(ks[5], (hidden, 3 * hidden)),
        'enc_whh_b': norm(ks[6], (hidden, 3 * hidden)),
        'enc_bih_b': norm(ks[7], (1, 3 * hidden)),
        'enc_bhh_b': norm(ks[8], (1, 3 * hidden)),
        # decoder GRU
        'dec_wih': norm(ks[9], (hidden, 3 * hidden)),
        'dec_whh': norm(ks[10], (hidden, 3 * hidden)),
        'dec_bih': norm(ks[11], (1, 3 * hidden)),
        'dec_bhh': norm(ks[12], (1, 3 * hidden)),
        # concat linear (2H -> H) and output linear (H -> V)
        'concat_w': norm(ks[13], (2 * hidden, hidden)),
        'concat_b': norm(ks[14], (1, hidden)),
        'out_w': norm(ks[15], (hidden, vocab)),
        'out_b': jnp.zeros((1, vocab), jnp.float32),
    }


if __name__ == "__main__":
    key = jax.random.PRNGKey(0)
    pkey, dkey = jax.random.split(key)
    params = init_params(pkey)
    weight_slab, hidden, vocab = pack_params(params)   # one-time host-side packing

    seq_len = 8
    # input_seq is (T, 1) like the torch seq-first batch-1 convention
    input_seq = jax.random.randint(dkey, (seq_len, 1), 2, VOCAB, dtype=jnp.int32)
    input_length = jnp.array([seq_len], dtype=jnp.int32)
    max_length = 6

    all_tokens, all_scores = greedy_search_decoder(
        weight_slab, input_seq, input_length, max_length, hidden, vocab)
    jax.block_until_ready((all_tokens, all_scores))
    assert all_tokens.shape == (max_length,) and all_scores.shape == (max_length,)
    assert all_tokens.dtype == jnp.int32
    print("KERNEL_OK")
</pallas_src>

<mosaic_0001>
module attributes {stable_mosaic.version = 11 : i64} {
  func.func @_greedy_search_kernel(%arg0: memref<8x1xi32, #tpu.memory_space<vmem>>, %arg1: memref<400x256xf32, #tpu.memory_space<vmem>>, %arg2: memref<1x128xi32, #tpu.memory_space<vmem>>, %arg3: memref<1x128xf32, #tpu.memory_space<vmem>>, %arg4: memref<8x256xf32, #tpu.memory_space<vmem>>) attributes {dimension_semantics = [], scalar_prefetch = 0 : i64, scratch_operands = 1 : i64, tpu.core_type = #tpu.core_type<tc>} {
    %c0 = arith.constant 0 : index
    %c0_0 = arith.constant 0 : index
    %0 = vector.load %arg1[%c0, %c0_0] : memref<400x256xf32, #tpu.memory_space<vmem>>, vector<64x32xf32>
    %1 = tpu.iota {dimensions = array<i32: 1>} : vector<8x64xi32>
    %c0_1 = arith.constant 0 : index
    %c0_2 = arith.constant 0 : index
    %2 = vector.load %arg0[%c0_1, %c0_2] : memref<8x1xi32, #tpu.memory_space<vmem>>, vector<8x1xi32>
    %3 = vector.broadcast %2 : vector<8x1xi32> to vector<8x64xi32>
    %4 = arith.cmpi eq, %1, %3 : vector<8x64xi32>
    %5 = arith.extui %4 : vector<8x64xi1> to vector<8x64xi32>
    %6 = arith.sitofp %5 : vector<8x64xi32> to vector<8x64xf32>
    %cst = arith.constant dense<0.000000e+00> : vector<8x32xf32>
    %7 = tpu.matmul %6, %0, %cst {dimension_numbers = #tpu.dot_dimension_numbers<[1], [0], [0], [1], [0, 0, 1, 1], [], []>} : vector<8x64xf32>, vector<64x32xf32>, vector<8x32xf32> -> vector<8x32xf32>
    %8 = tpu.concatenate %7, %7 in 1 : vector<8x32xf32>, vector<8x32xf32> -> vector<8x64xf32>
    %c64 = arith.constant 64 : index
    %c0_3 = arith.constant 0 : index
    %9 = vector.load %arg1[%c64, %c0_3] : memref<400x256xf32, #tpu.memory_space<vmem>>, vector<64x256xf32>
    %c192 = arith.constant 192 : index
    %c0_4 = arith.constant 0 : index
    %10 = vector.load %arg1[%c192, %c0_4] : memref<400x256xf32, #tpu.memory_space<vmem>>, vector<1x256xf32>
    %cst_5 = arith.constant dense<0.000000e+00> : vector<8x256xf32>
    %11 = tpu.matmul %8, %9, %cst_5 {dimension_numbers = #tpu.dot_dimension_numbers<[1], [0], [0], [1], [0, 0, 1, 1], [], []>} : vector<8x64xf32>, vector<64x256xf32>, vector<8x256xf32> -> vector<8x256xf32>
    %12 = vector.broadcast %10 : vector<1x256xf32> to vector<8x256xf32>
    %13 = arith.addf %11, %12 : vector<8x256xf32>
    %c0_6 = arith.constant 0 : index
    %c0_7 = arith.constant 0 : index
    %14 = vector.load %arg4[%c0_6, %c0_7] : memref<8x256xf32, #tpu.memory_space<vmem>>, vector<8x256xf32>
    tpu.vector_store %arg4[%c0_6, %c0_7], %13 {strides = array<i32>} : memref<8x256xf32, #tpu.memory_space<vmem>>, vector<8x256xf32>,
    %c128 = arith.constant 128 : index
    %c0_8 = arith.constant 0 : index
    %15 = vector.load %arg1[%c128, %c0_8] : memref<400x256xf32, #tpu.memory_space<vmem>>, vector<64x256xf32>
    %c200 = arith.constant 200 : index
    %c0_9 = arith.constant 0 : index
    %16 = vector.load %arg1[%c200, %c0_9] : memref<400x256xf32, #tpu.memory_space<vmem>>, vector<1x256xf32>
    %17 = tpu.iota {dimensions = array<i32: 0>} : vector<8x1xi32>
    %cst_10 = arith.constant 0.000000e+00 : f32
    %18 = vector.broadcast %cst_10 : f32 to vector<1x64xf32>
    %cst_11 = arith.constant 0.000000e+00 : f32
    %19 = vector.broadcast %cst_11 : f32 to vector<8x32xf32>
    %c0_i32 = arith.constant 0 : i32
    %c7_i32 = arith.constant 7 : i32
    %20 = arith.subi %c7_i32, %c0_i32 : i32
    %21 = arith.index_cast %c0_i32 : i32 to index
    %c0_12 = arith.constant 0 : index
    %22 = vector.load %arg4[%21, %c0_12] : memref<8x256xf32, #tpu.memory_space<vmem>>, vector<1x96xf32>
    %23 = arith.index_cast %20 : i32 to index
    %c128_13 = arith.constant 128 : index
    %24 = vector.load %arg4[%23, %c128_13] : memref<8x256xf32, #tpu.memory_space<vmem>>, vector<1x96xf32>
    %cst_14 = arith.constant dense<0.000000e+00> : vector<1x256xf32>
    %25 = tpu.matmul %18, %15, %cst_14 {dimension_numbers = #tpu.dot_dimension_numbers<[1], [0], [0], [1], [0, 0, 1, 1], [], []>} : vector<1x64xf32>, vector<64x256xf32>, vector<1x256xf32> -> vector<1x256xf32>
    %26 = arith.addf %25, %16 : vector<1x256xf32>
    %27 = vector.extract_strided_slice %26 {offsets = [0, 0], sizes = [1, 96], strides = [1, 1]} : vector<1x256xf32> to vector<1x96xf32>
    %28 = vector.extract_strided_slice %18 {offsets = [0, 0], sizes = [1, 32], strides = [1, 1]} : vector<1x64xf32> to vector<1x32xf32>
    %29 = vector.extract_strided_slice %22 {offsets = [0, 0], sizes = [1, 32], strides = [1, 1]} : vector<1x96xf32> to vector<1x32xf32>
    %30 = vector.extract_strided_slice %27 {offsets = [0, 0], sizes = [1, 32], strides = [1, 1]} : vector<1x96xf32> to vector<1x32xf32>
    %31 = arith.addf %29, %30 : vector<1x32xf32>
    %32 = arith.negf %31 : vector<1x32xf32>
    %33 = math.exp %32 : vector<1x32xf32>
    %cst_15 = arith.constant 1.000000e+00 : f32
    %34 = vector.broadcast %cst_15 : f32 to vector<1x32xf32>
    %35 = arith.addf %34, %33 : vector<1x32xf32>
    %36 = arith.divf %34, %35 : vector<1x32xf32>
    %37 = vector.extract_strided_slice %22 {offsets = [0, 32], sizes = [1, 32], strides = [1, 1]} : vector<1x96xf32> to vector<1x32xf32>
    %38 = vector.extract_strided_slice %27 {offsets = [0, 32], sizes = [1, 32], strides = [1, 1]} : vector<1x96xf32> to vector<1x32xf32>
    %39 = arith.addf %37, %38 : vector<1x32xf32>
    %40 = arith.negf %39 : vector<1x32xf32>
    %41 = math.exp %40 : vector<1x32xf32>
    %cst_16 = arith.constant 1.000000e+00 : f32
    %42 = vector.broadcast %cst_16 : f32 to vector<1x32xf32>
    %43 = arith.addf %42, %41 : vector<1x32xf32>
    %44 = arith.divf %42, %43 : vector<1x32xf32>
    %45 = vector.extract_strided_slice %22 {offsets = [0, 64], sizes = [1, 32], strides = [1, 1]} : vector<1x96xf32> to vector<1x32xf32>
    %46 = vector.extract_strided_slice %27 {offsets = [0, 64], sizes = [1, 32], strides = [1, 1]} : vector<1x96xf32> to vector<1x32xf32>
    %47 = arith.mulf %36, %46 : vector<1x32xf32>
    %48 = arith.addf %45, %47 : vector<1x32xf32>
    %49 = math.tanh %48 : vector<1x32xf32>
    %cst_17 = arith.constant 1.000000e+00 : f32
    %50 = vector.broadcast %cst_17 : f32 to vector<1x32xf32>
    %51 = arith.subf %50, %44 : vector<1x32xf32>
    %52 = arith.mulf %51, %49 : vector<1x32xf32>
    %53 = arith.mulf %44, %28 : vector<1x32xf32>
    %54 = arith.addf %52, %53 : vector<1x32xf32>
    %55 = vector.extract_strided_slice %26 {offsets = [0, 128], sizes = [1, 96], strides = [1, 1]} : vector<1x256xf32> to vector<1x96xf32>
    %56 = vector.extract_strided_slice %18 {offsets = [0, 32], sizes = [1, 32], strides = [1, 1]} : vector<1x64xf32> to vector<1x32xf32>
    %57 = vector.extract_strided_slice %24 {offsets = [0, 0], sizes = [1, 32], strides = [1, 1]} : vector<1x96xf32> to vector<1x32xf32>
    %58 = vector.extract_strided_slice %55 {offsets = [0, 0], sizes = [1, 32], strides = [1, 1]} : vector<1x96xf32> to vector<1x32xf32>
    %59 = arith.addf %57, %58 : vector<1x32xf32>
    %60 = arith.negf %59 : vector<1x32xf32>
    %61 = math.exp %60 : vector<1x32xf32>
    %cst_18 = arith.constant 1.000000e+00 : f32
    %62 = vector.broadcast %cst_18 : f32 to vector<1x32xf32>
    %63 = arith.addf %62, %61 : vector<1x32xf32>
    %64 = arith.divf %62, %63 : vector<1x32xf32>
    %65 = vector.extract_strided_slice %24 {offsets = [0, 32], sizes = [1, 32], strides = [1, 1]} : vector<1x96xf32> to vector<1x32xf32>
    %66 = vector.extract_strided_slice %55 {offsets = [0, 32], sizes = [1, 32], strides = [1, 1]} : vector<1x96xf32> to vector<1x32xf32>
    %67 = arith.addf %65, %66 : vector<1x32xf32>
    %68 = arith.negf %67 : vector<1x32xf32>
    %69 = math.exp %68 : vector<1x32xf32>
    %cst_19 = arith.constant 1.000000e+00 : f32
    %70 = vector.broadcast %cst_19 : f32 to vector<1x32xf32>
    %71 = arith.addf %70, %69 : vector<1x32xf32>
    %72 = arith.divf %70, %71 : vector<1x32xf32>
    %73 = vector.extract_strided_slice %24 {offsets = [0, 64], sizes = [1, 32], strides = [1, 1]} : vector<1x96xf32> to vector<1x32xf32>
    %74 = vector.extract_strided_slice %55 {offsets = [0, 64], sizes = [1, 32], strides = [1, 1]} : vector<1x96xf32> to vector<1x32xf32>
    %75 = arith.mulf %64, %74 : vector<1x32xf32>
    %76 = arith.addf %73, %75 : vector<1x32xf32>
    %77 = math.tanh %76 : vector<1x32xf32>
    %cst_20 = arith.constant 1.000000e+00 : f32
    %78 = vector.broadcast %cst_20 : f32 to vector<1x32xf32>
    %79 = arith.subf %78, %72 : vector<1x32xf32>
    %80 = arith.mulf %79, %77 : vector<1x32xf32>
    %81 = arith.mulf %72, %56 : vector<1x32xf32>
    %82 = arith.addf %80, %81 : vector<1x32xf32>
    %83 = vector.broadcast %c0_i32 : i32 to vector<8x1xi32>
    %84 = arith.cmpi eq, %17, %83 : vector<8x1xi32>
    %85 = vector.shape_cast %84 : vector<8x1xi1> to vector<8x1xi1>
    %86 = vector.broadcast %85 : vector<8x1xi1> to vector<8x32xi1>
    %87 = vector.shape_cast %54 : vector<1x32xf32> to vector<1x32xf32>
    %88 = vector.broadcast %87 : vector<1x32xf32> to vector<8x32xf32>
    %89 = arith.select %86, %88, %19 : vector<8x32xi1>, vector<8x32xf32>
    %90 = vector.broadcast %20 : i32 to vector<8x1xi32>
    %91 = arith.cmpi eq, %17, %90 : vector<8x1xi32>
    %92 = vector.shape_cast %91 : vector<8x1xi1> to vector<8x1xi1>
    %93 = vector.broadcast %92 : vector<8x1xi1> to vector<8x32xi1>
    %94 = vector.shape_cast %82 : vector<1x32xf32> to vector<1x32xf32>
    %95 = vector.broadcast %94 : vector<1x32xf32> to vector<8x32xf32>
    %96 = arith.select %93, %95, %19 : vector<8x32xi1>, vector<8x32xf32>
    %97 = tpu.concatenate %54, %82 in 1 : vector<1x32xf32>, vector<1x32xf32> -> vector<1x64xf32>
    %c1_i32 = arith.constant 1 : i32
    %c7_i32_21 = arith.constant 7 : i32
    %98 = arith.subi %c7_i32_21, %c1_i32 : i32
    %99 = arith.index_cast %c1_i32 : i32 to index
    %c0_22 = arith.constant 0 : index
    %100 = vector.load %arg4[%99, %c0_22] : memref<8x256xf32, #tpu.memory_space<vmem>>, vector<1x96xf32>
    %101 = arith.index_cast %98 : i32 to index
    %c128_23 = arith.constant 128 : index
    %102 = vector.load %arg4[%101, %c128_23] : memref<8x256xf32, #tpu.memory_space<vmem>>, vector<1x96xf32>
    %cst_24 = arith.constant dense<0.000000e+00> : vector<1x256xf32>
    %103 = tpu.matmul %97, %15, %cst_24 {dimension_numbers = #tpu.dot_dimension_numbers<[1], [0], [0], [1], [0, 0, 1, 1], [], []>} : vector<1x64xf32>, vector<64x256xf32>, vector<1x256xf32> -> vector<1x256xf32>
    %104 = arith.addf %103, %16 : vector<1x256xf32>
    %105 = vector.extract_strided_slice %104 {offsets = [0, 0], sizes = [1, 96], strides = [1, 1]} : vector<1x256xf32> to vector<1x96xf32>
    %106 = vector.extract_strided_slice %97 {offsets = [0, 0], sizes = [1, 32], strides = [1, 1]} : vector<1x64xf32> to vector<1x32xf32>
    %107 = vector.extract_strided_slice %100 {offsets = [0, 0], sizes = [1, 32], strides = [1, 1]} : vector<1x96xf32> to vector<1x32xf32>
    %108 = vector.extract_strided_slice %105 {offsets = [0, 0], sizes = [1, 32], strides = [1, 1]} : vector<1x96xf32> to vector<1x32xf32>
    %109 = arith.addf %107, %108 : vector<1x32xf32>
    %110 = arith.negf %109 : vector<1x32xf32>
    %111 = math.exp %110 : vector<1x32xf32>
    %cst_25 = arith.constant 1.000000e+00 : f32
    %112 = vector.broadcast %cst_25 : f32 to vector<1x32xf32>
    %113 = arith.addf %112, %111 : vector<1x32xf32>
    %114 = arith.divf %112, %113 : vector<1x32xf32>
    %115 = vector.extract_strided_slice %100 {offsets = [0, 32], sizes = [1, 32], strides = [1, 1]} : vector<1x96xf32> to vector<1x32xf32>
    %116 = vector.extract_strided_slice %105 {offsets = [0, 32], sizes = [1, 32], strides = [1, 1]} : vector<1x96xf32> to vector<1x32xf32>
    %117 = arith.addf %115, %116 : vector<1x32xf32>
    %118 = arith.negf %117 : vector<1x32xf32>
    %119 = math.exp %118 : vector<1x32xf32>
    %cst_26 = arith.constant 1.000000e+00 : f32
    %120 = vector.broadcast %cst_26 : f32 to vector<1x32xf32>
    %121 = arith.addf %120, %119 : vector<1x32xf32>
    %122 = arith.divf %120, %121 : vector<1x32xf32>
    %123 = vector.extract_strided_slice %100 {offsets = [0, 64], sizes = [1, 32], strides = [1, 1]} : vector<1x96xf32> to vector<1x32xf32>
    %124 = vector.extract_strided_slice %105 {offsets = [0, 64], sizes = [1, 32], strides = [1, 1]} : vector<1x96xf32> to vector<1x32xf32>
    %125 = arith.mulf %114, %124 : vector<1x32xf32>
    %126 = arith.addf %123, %125 : vector<1x32xf32>
    %127 = math.tanh %126 : vector<1x32xf32>
    %cst_27 = arith.constant 1.000000e+00 : f32
    %128 = vector.broadcast %cst_27 : f32 to vector<1x32xf32>
    %129 = arith.subf %128, %122 : vector<1x32xf32>
    %130 = arith.mulf %129, %127 : vector<1x32xf32>
    %131 = arith.mulf %122, %106 : vector<1x32xf32>
    %132 = arith.addf %130, %131 : vector<1x32xf32>
    %133 = vector.extract_strided_slice %104 {offsets = [0, 128], sizes = [1, 96], strides = [1, 1]} : vector<1x256xf32> to vector<1x96xf32>
    %134 = vector.extract_strided_slice %97 {offsets = [0, 32], sizes = [1, 32], strides = [1, 1]} : vector<1x64xf32> to vector<1x32xf32>
    %135 = vector.extract_strided_slice %102 {offsets = [0, 0], sizes = [1, 32], strides = [1, 1]} : vector<1x96xf32> to vector<1x32xf32>
    %136 = vector.extract_strided_slice %133 {offsets = [0, 0], sizes = [1, 32], strides = [1, 1]} : vector<1x96xf32> to vector<1x32xf32>
    %137 = arith.addf %135, %136 : vector<1x32xf32>
    %138 = arith.negf %137 : vector<1x32xf32>
    %139 = math.exp %138 : vector<1x32xf32>
    %cst_28 = arith.constant 1.000000e+00 : f32
    %140 = vector.broadcast %cst_28 : f32 to vector<1x32xf32>
    %141 = arith.addf %140, %139 : vector<1x32xf32>
    %142 = arith.divf %140, %141 : vector<1x32xf32>
    %143 = vector.extract_strided_slice %102 {offsets = [0, 32], sizes = [1, 32], strides = [1, 1]} : vector<1x96xf32> to vector<1x32xf32>
    %144 = vector.extract_strided_slice %133 {offsets = [0, 32], sizes = [1, 32], strides = [1, 1]} : vector<1x96xf32> to vector<1x32xf32>
    %145 = arith.addf %143, %144 : vector<1x32xf32>
    %146 = arith.negf %145 : vector<1x32xf32>
    %147 = math.exp %146 : vector<1x32xf32>
    %cst_29 = arith.constant 1.000000e+00 : f32
    %148 = vector.broadcast %cst_29 : f32 to vector<1x32xf32>
    %149 = arith.addf %148, %147 : vector<1x32xf32>
    %150 = arith.divf %148, %149 : vector<1x32xf32>
    %151 = vector.extract_strided_slice %102 {offsets = [0, 64], sizes = [1, 32], strides = [1, 1]} : vector<1x96xf32> to vector<1x32xf32>
    %152 = vector.extract_strided_slice %133 {offsets = [0, 64], sizes = [1, 32], strides = [1, 1]} : vector<1x96xf32> to vector<1x32xf32>
    %153 = arith.mulf %142, %152 : vector<1x32xf32>
    %154 = arith.addf %151, %153 : vector<1x32xf32>
    %155 = math.tanh %154 : vector<1x32xf32>
    %cst_30 = arith.constant 1.000000e+00 : f32
    %156 = vector.broadcast %cst_30 : f32 to vector<1x32xf32>
    %157 = arith.subf %156, %150 : vector<1x32xf32>
    %158 = arith.mulf %157, %155 : vector<1x32xf32>
    %159 = arith.mulf %150, %134 : vector<1x32xf32>
    %160 = arith.addf %158, %159 : vector<1x32xf32>
    %161 = vector.broadcast %c1_i32 : i32 to vector<8x1xi32>
    %162 = arith.cmpi eq, %17, %161 : vector<8x1xi32>
    %163 = vector.shape_cast %162 : vector<8x1xi1> to vector<8x1xi1>
    %164 = vector.broadcast %163 : vector<8x1xi1> to vector<8x32xi1>
    %165 = vector.shape_cast %132 : vector<1x32xf32> to vector<1x32xf32>
    %166 = vector.broadcast %165 : vector<1x32xf32> to vector<8x32xf32>
    %167 = arith.select %164, %166, %89 : vector<8x32xi1>, vector<8x32xf32>
    %168 = vector.broadcast %98 : i32 to vector<8x1xi32>
    %169 = arith.cmpi eq, %17, %168 : vector<8x1xi32>
    %170 = vector.shape_cast %169 : vector<8x1xi1> to vector<8x1xi1>
    %171 = vector.broadcast %170 : vector<8x1xi1> to vector<8x32xi1>
    %172 = vector.shape_cast %160 : vector<1x32xf32> to vector<1x32xf32>
    %173 = vector.broadcast %172 : vector<1x32xf32> to vector<8x32xf32>
    %174 = arith.select %171, %173, %96 : vector<8x32xi1>, vector<8x32xf32>
    %175 = tpu.concatenate %132, %160 in 1 : vector<1x32xf32>, vector<1x32xf32> -> vector<1x64xf32>
    %c2_i32 = arith.constant 2 : i32
    %c7_i32_31 = arith.constant 7 : i32
    %176 = arith.subi %c7_i32_31, %c2_i32 : i32
    %177 = arith.index_cast %c2_i32 : i32 to index
    %c0_32 = arith.constant 0 : index
    %178 = vector.load %arg4[%177, %c0_32] : memref<8x256xf32, #tpu.memory_space<vmem>>, vector<1x96xf32>
    %179 = arith.index_cast %176 : i32 to index
    %c128_33 = arith.constant 128 : index
    %180 = vector.load %arg4[%179, %c128_33] : memref<8x256xf32, #tpu.memory_space<vmem>>, vector<1x96xf32>
    %cst_34 = arith.constant dense<0.000000e+00> : vector<1x256xf32>
    %181 = tpu.matmul %175, %15, %cst_34 {dimension_numbers = #tpu.dot_dimension_numbers<[1], [0], [0], [1], [0, 0, 1, 1], [], []>} : vector<1x64xf32>, vector<64x256xf32>, vector<1x256xf32> -> vector<1x256xf32>
    %182 = arith.addf %181, %16 : vector<1x256xf32>
    %183 = vector.extract_strided_slice %182 {offsets = [0, 0], sizes = [1, 96], strides = [1, 1]} : vector<1x256xf32> to vector<1x96xf32>
    %184 = vector.extract_strided_slice %175 {offsets = [0, 0], sizes = [1, 32], strides = [1, 1]} : vector<1x64xf32> to vector<1x32xf32>
    %185 = vector.extract_strided_slice %178 {offsets = [0, 0], sizes = [1, 32], strides = [1, 1]} : vector<1x96xf32> to vector<1x32xf32>
    %186 = vector.extract_strided_slice %183 {offsets = [0, 0], sizes = [1, 32], strides = [1, 1]} : vector<1x96xf32> to vector<1x32xf32>
    %187 = arith.addf %185, %186 : vector<1x32xf32>
    %188 = arith.negf %187 : vector<1x32xf32>
    %189 = math.exp %188 : vector<1x32xf32>
    %cst_35 = arith.constant 1.000000e+00 : f32
    %190 = vector.broadcast %cst_35 : f32 to vector<1x32xf32>
    %191 = arith.addf %190, %189 : vector<1x32xf32>
    %192 = arith.divf %190, %191 : vector<1x32xf32>
    %193 = vector.extract_strided_slice %178 {offsets = [0, 32], sizes = [1, 32], strides = [1, 1]} : vector<1x96xf32> to vector<1x32xf32>
    %194 = vector.extract_strided_slice %183 {offsets = [0, 32], sizes = [1, 32], strides = [1, 1]} : vector<1x96xf32> to vector<1x32xf32>
    %195 = arith.addf %193, %194 : vector<1x32xf32>
    %196 = arith.negf %195 : vector<1x32xf32>
    %197 = math.exp %196 : vector<1x32xf32>
    %cst_36 = arith.constant 1.000000e+00 : f32
    %198 = vector.broadcast %cst_36 : f32 to vector<1x32xf32>
    %199 = arith.addf %198, %197 : vector<1x32xf32>
    %200 = arith.divf %198, %199 : vector<1x32xf32>
    %201 = vector.extract_strided_slice %178 {offsets = [0, 64], sizes = [1, 32], strides = [1, 1]} : vector<1x96xf32> to vector<1x32xf32>
    %202 = vector.extract_strided_slice %183 {offsets = [0, 64], sizes = [1, 32], strides = [1, 1]} : vector<1x96xf32> to vector<1x32xf32>
    %203 = arith.mulf %192, %202 : vector<1x32xf32>
    %204 = arith.addf %201, %203 : vector<1x32xf32>
    %205 = math.tanh %204 : vector<1x32xf32>
    %cst_37 = arith.constant 1.000000e+00 : f32
    %206 = vector.broadcast %cst_37 : f32 to vector<1x32xf32>
    %207 = arith.subf %206, %200 : vector<1x32xf32>
    %208 = arith.mulf %207, %205 : vector<1x32xf32>
    %209 = arith.mulf %200, %184 : vector<1x32xf32>
    %210 = arith.addf %208, %209 : vector<1x32xf32>
    %211 = vector.extract_strided_slice %182 {offsets = [0, 128], sizes = [1, 96], strides = [1, 1]} : vector<1x256xf32> to vector<1x96xf32>
    %212 = vector.extract_strided_slice %175 {offsets = [0, 32], sizes = [1, 32], strides = [1, 1]} : vector<1x64xf32> to vector<1x32xf32>
    %213 = vector.extract_strided_slice %180 {offsets = [0, 0], sizes = [1, 32], strides = [1, 1]} : vector<1x96xf32> to vector<1x32xf32>
    %214 = vector.extract_strided_slice %211 {offsets = [0, 0], sizes = [1, 32], strides = [1, 1]} : vector<1x96xf32> to vector<1x32xf32>
    %215 = arith.addf %213, %214 : vector<1x32xf32>
    %216 = arith.negf %215 : vector<1x32xf32>
    %217 = math.exp %216 : vector<1x32xf32>
    %cst_38 = arith.constant 1.000000e+00 : f32
    %218 = vector.broadcast %cst_38 : f32 to vector<1x32xf32>
    %219 = arith.addf %218, %217 : vector<1x32xf32>
    %220 = arith.divf %218, %219 : vector<1x32xf32>
    %221 = vector.extract_strided_slice %180 {offsets = [0, 32], sizes = [1, 32], strides = [1, 1]} : vector<1x96xf32> to vector<1x32xf32>
    %222 = vector.extract_strided_slice %211 {offsets = [0, 32], sizes = [1, 32], strides = [1, 1]} : vector<1x96xf32> to vector<1x32xf32>
    %223 = arith.addf %221, %222 : vector<1x32xf32>
    %224 = arith.negf %223 : vector<1x32xf32>
    %225 = math.exp %224 : vector<1x32xf32>
    %cst_39 = arith.constant 1.000000e+00 : f32
    %226 = vector.broadcast %cst_39 : f32 to vector<1x32xf32>
    %227 = arith.addf %226, %225 : vector<1x32xf32>
    %228 = arith.divf %226, %227 : vector<1x32xf32>
    %229 = vector.extract_strided_slice %180 {offsets = [0, 64], sizes = [1, 32], strides = [1, 1]} : vector<1x96xf32> to vector<1x32xf32>
    %230 = vector.extract_strided_slice %211 {offsets = [0, 64], sizes = [1, 32], strides = [1, 1]} : vector<1x96xf32> to vector<1x32xf32>
    %231 = arith.mulf %220, %230 : vector<1x32xf32>
    %232 = arith.addf %229, %231 : vector<1x32xf32>
    %233 = math.tanh %232 : vector<1x32xf32>
    %cst_40 = arith.constant 1.000000e+00 : f32
    %234 = vector.broadcast %cst_40 : f32 to vector<1x32xf32>
    %235 = arith.subf %234, %228 : vector<1x32xf32>
    %236 = arith.mulf %235, %233 : vector<1x32xf32>
    %237 = arith.mulf %228, %212 : vector<1x32xf32>
    %238 = arith.addf %236, %237 : vector<1x32xf32>
    %239 = vector.broadcast %c2_i32 : i32 to vector<8x1xi32>
    %240 = arith.cmpi eq, %17, %239 : vector<8x1xi32>
    %241 = vector.shape_cast %240 : vector<8x1xi1> to vector<8x1xi1>
    %242 = vector.broadcast %241 : vector<8x1xi1> to vector<8x32xi1>
    %243 = vector.shape_cast %210 : vector<1x32xf32> to vector<1x32xf32>
    %244 = vector.broadcast %243 : vector<1x32xf32> to vector<8x32xf32>
    %245 = arith.select %242, %244, %167 : vector<8x32xi1>, vector<8x32xf32>
    %246 = vector.broadcast %176 : i32 to vector<8x1xi32>
    %247 = arith.cmpi eq, %17, %246 : vector<8x1xi32>
    %248 = vector.shape_cast %247 : vector<8x1xi1> to vector<8x1xi1>
    %249 = vector.broadcast %248 : vector<8x1xi1> to vector<8x32xi1>
    %250 = vector.shape_cast %238 : vector<1x32xf32> to vector<1x32xf32>
    %251 = vector.broadcast %250 : vector<1x32xf32> to vector<8x32xf32>
    %252 = arith.select %249, %251, %174 : vector<8x32xi1>, vector<8x32xf32>
    %253 = tpu.concatenate %210, %238 in 1 : vector<1x32xf32>, vector<1x32xf32> -> vector<1x64xf32>
    %c3_i32 = arith.constant 3 : i32
    %c7_i32_41 = arith.constant 7 : i32
    %254 = arith.subi %c7_i32_41, %c3_i32 : i32
    %255 = arith.index_cast %c3_i32 : i32 to index
    %c0_42 = arith.constant 0 : index
    %256 = vector.load %arg4[%255, %c0_42] : memref<8x256xf32, #tpu.memory_space<vmem>>, vector<1x96xf32>
    %257 = arith.index_cast %254 : i32 to index
    %c128_43 = arith.constant 128 : index
    %258 = vector.load %arg4[%257, %c128_43] : memref<8x256xf32, #tpu.memory_space<vmem>>, vector<1x96xf32>
    %cst_44 = arith.constant dense<0.000000e+00> : vector<1x256xf32>
    %259 = tpu.matmul %253, %15, %cst_44 {dimension_numbers = #tpu.dot_dimension_numbers<[1], [0], [0], [1], [0, 0, 1, 1], [], []>} : vector<1x64xf32>, vector<64x256xf32>, vector<1x256xf32> -> vector<1x256xf32>
    %260 = arith.addf %259, %16 : vector<1x256xf32>
    %261 = vector.extract_strided_slice %260 {offsets = [0, 0], sizes = [1, 96], strides = [1, 1]} : vector<1x256xf32> to vector<1x96xf32>
    %262 = vector.extract_strided_slice %253 {offsets = [0, 0], sizes = [1, 32], strides = [1, 1]} : vector<1x64xf32> to vector<1x32xf32>
    %263 = vector.extract_strided_slice %256 {offsets = [0, 0], sizes = [1, 32], strides = [1, 1]} : vector<1x96xf32> to vector<1x32xf32>
    %264 = vector.extract_strided_slice %261 {offsets = [0, 0], sizes = [1, 32], strides = [1, 1]} : vector<1x96xf32> to vector<1x32xf32>
    %265 = arith.addf %263, %264 : vector<1x32xf32>
    %266 = arith.negf %265 : vector<1x32xf32>
    %267 = math.exp %266 : vector<1x32xf32>
    %cst_45 = arith.constant 1.000000e+00 : f32
    %268 = vector.broadcast %cst_45 : f32 to vector<1x32xf32>
    %269 = arith.addf %268, %267 : vector<1x32xf32>
    %270 = arith.divf %268, %269 : vector<1x32xf32>
    %271 = vector.extract_strided_slice %256 {offsets = [0, 32], sizes = [1, 32], strides = [1, 1]} : vector<1x96xf32> to vector<1x32xf32>
    %272 = vector.extract_strided_slice %261 {offsets = [0, 32], sizes = [1, 32], strides = [1, 1]} : vector<1x96xf32> to vector<1x32xf32>
    %273 = arith.addf %271, %272 : vector<1x32xf32>
    %274 = arith.negf %273 : vector<1x32xf32>
    %275 = math.exp %274 : vector<1x32xf32>
    %cst_46 = arith.constant 1.000000e+00 : f32
    %276 = vector.broadcast %cst_46 : f32 to vector<1x32xf32>
    %277 = arith.addf %276, %275 : vector<1x32xf32>
    %278 = arith.divf %276, %277 : vector<1x32xf32>
    %279 = vector.extract_strided_slice %256 {offsets = [0, 64], sizes = [1, 32], strides = [1, 1]} : vector<1x96xf32> to vector<1x32xf32>
    %280 = vector.extract_strided_slice %261 {offsets = [0, 64], sizes = [1, 32], strides = [1, 1]} : vector<1x96xf32> to vector<1x32xf32>
    %281 = arith.mulf %270, %280 : vector<1x32xf32>
    %282 = arith.addf %279, %281 : vector<1x32xf32>
    %283 = math.tanh %282 : vector<1x32xf32>
    %cst_47 = arith.constant 1.000000e+00 : f32
    %284 = vector.broadcast %cst_47 : f32 to vector<1x32xf32>
    %285 = arith.subf %284, %278 : vector<1x32xf32>
    %286 = arith.mulf %285, %283 : vector<1x32xf32>
    %287 = arith.mulf %278, %262 : vector<1x32xf32>
    %288 = arith.addf %286, %287 : vector<1x32xf32>
    %289 = vector.extract_strided_slice %260 {offsets = [0, 128], sizes = [1, 96], strides = [1, 1]} : vector<1x256xf32> to vector<1x96xf32>
    %290 = vector.extract_strided_slice %253 {offsets = [0, 32], sizes = [1, 32], strides = [1, 1]} : vector<1x64xf32> to vector<1x32xf32>
    %291 = vector.extract_strided_slice %258 {offsets = [0, 0], sizes = [1, 32], strides = [1, 1]} : vector<1x96xf32> to vector<1x32xf32>
    %292 = vector.extract_strided_slice %289 {offsets = [0, 0], sizes = [1, 32], strides = [1, 1]} : vector<1x96xf32> to vector<1x32xf32>
    %293 = arith.addf %291, %292 : vector<1x32xf32>
    %294 = arith.negf %293 : vector<1x32xf32>
    %295 = math.exp %294 : vector<1x32xf32>
    %cst_48 = arith.constant 1.000000e+00 : f32
    %296 = vector.broadcast %cst_48 : f32 to vector<1x32xf32>
    %297 = arith.addf %296, %295 : vector<1x32xf32>
    %298 = arith.divf %296, %297 : vector<1x32xf32>
    %299 = vector.extract_strided_slice %258 {offsets = [0, 32], sizes = [1, 32], strides = [1, 1]} : vector<1x96xf32> to vector<1x32xf32>
    %300 = vector.extract_strided_slice %289 {offsets = [0, 32], sizes = [1, 32], strides = [1, 1]} : vector<1x96xf32> to vector<1x32xf32>
    %301 = arith.addf %299, %300 : vector<1x32xf32>
    %302 = arith.negf %301 : vector<1x32xf32>
    %303 = math.exp %302 : vector<1x32xf32>
    %cst_49 = arith.constant 1.000000e+00 : f32
    %304 = vector.broadcast %cst_49 : f32 to vector<1x32xf32>
    %305 = arith.addf %304, %303 : vector<1x32xf32>
    %306 = arith.divf %304, %305 : vector<1x32xf32>
    %307 = vector.extract_strided_slice %258 {offsets = [0, 64], sizes = [1, 32], strides = [1, 1]} : vector<1x96xf32> to vector<1x32xf32>
    %308 = vector.extract_strided_slice %289 {offsets = [0, 64], sizes = [1, 32], strides = [1, 1]} : vector<1x96xf32> to vector<1x32xf32>
    %309 = arith.mulf %298, %308 : vector<1x32xf32>
    %310 = arith.addf %307, %309 : vector<1x32xf32>
    %311 = math.tanh %310 : vector<1x32xf32>
    %cst_50 = arith.constant 1.000000e+00 : f32
    %312 = vector.broadcast %cst_50 : f32 to vector<1x32xf32>
    %313 = arith.subf %312, %306 : vector<1x32xf32>
    %314 = arith.mulf %313, %311 : vector<1x32xf32>
    %315 = arith.mulf %306, %290 : vector<1x32xf32>
    %316 = arith.addf %314, %315 : vector<1x32xf32>
    %317 = vector.broadcast %c3_i32 : i32 to vector<8x1xi32>
    %318 = arith.cmpi eq, %17, %317 : vector<8x1xi32>
    %319 = vector.shape_cast %318 : vector<8x1xi1> to vector<8x1xi1>
    %320 = vector.broadcast %319 : vector<8x1xi1> to vector<8x32xi1>
    %321 = vector.shape_cast %288 : vector<1x32xf32> to vector<1x32xf32>
    %322 = vector.broadcast %321 : vector<1x32xf32> to vector<8x32xf32>
    %323 = arith.select %320, %322, %245 : vector<8x32xi1>, vector<8x32xf32>
    %324 = vector.broadcast %254 : i32 to vector<8x1xi32>
    %325 = arith.cmpi eq, %17, %324 : vector<8x1xi32>
    %326 = vector.shape_cast %325 : vector<8x1xi1> to vector<8x1xi1>
    %327 = vector.broadcast %326 : vector<8x1xi1> to vector<8x32xi1>
    %328 = vector.shape_cast %316 : vector<1x32xf32> to vector<1x32xf32>
    %329 = vector.broadcast %328 : vector<1x32xf32> to vector<8x32xf32>
    %330 = arith.select %327, %329, %252 : vector<8x32xi1>, vector<8x32xf32>
    %331 = tpu.concatenate %288, %316 in 1 : vector<1x32xf32>, vector<1x32xf32> -> vector<1x64xf32>
    %c4_i32 = arith.constant 4 : i32
    %c7_i32_51 = arith.constant 7 : i32
    %332 = arith.subi %c7_i32_51, %c4_i32 : i32
    %333 = arith.index_cast %c4_i32 : i32 to index
    %c0_52 = arith.constant 0 : index
    %334 = vector.load %arg4[%333, %c0_52] : memref<8x256xf32, #tpu.memory_space<vmem>>, vector<1x96xf32>
    %335 = arith.index_cast %332 : i32 to index
    %c128_53 = arith.constant 128 : index
    %336 = vector.load %arg4[%335, %c128_53] : memref<8x256xf32, #tpu.memory_space<vmem>>, vector<1x96xf32>
    %cst_54 = arith.constant dense<0.000000e+00> : vector<1x256xf32>
    %337 = tpu.matmul %331, %15, %cst_54 {dimension_numbers = #tpu.dot_dimension_numbers<[1], [0], [0], [1], [0, 0, 1, 1], [], []>} : vector<1x64xf32>, vector<64x256xf32>, vector<1x256xf32> -> vector<1x256xf32>
    %338 = arith.addf %337, %16 : vector<1x256xf32>
    %339 = vector.extract_strided_slice %338 {offsets = [0, 0], sizes = [1, 96], strides = [1, 1]} : vector<1x256xf32> to vector<1x96xf32>
    %340 = vector.extract_strided_slice %331 {offsets = [0, 0], sizes = [1, 32], strides = [1, 1]} : vector<1x64xf32> to vector<1x32xf32>
    %341 = vector.extract_strided_slice %334 {offsets = [0, 0], sizes = [1, 32], strides = [1, 1]} : vector<1x96xf32> to vector<1x32xf32>
    %342 = vector.extract_strided_slice %339 {offsets = [0, 0], sizes = [1, 32], strides = [1, 1]} : vector<1x96xf32> to vector<1x32xf32>
    %343 = arith.addf %341, %342 : vector<1x32xf32>
    %344 = arith.negf %343 : vector<1x32xf32>
    %345 = math.exp %344 : vector<1x32xf32>
    %cst_55 = arith.constant 1.000000e+00 : f32
    %346 = vector.broadcast %cst_55 : f32 to vector<1x32xf32>
    %347 = arith.addf %346, %345 : vector<1x32xf32>
    %348 = arith.divf %346, %347 : vector<1x32xf32>
    %349 = vector.extract_strided_slice %334 {offsets = [0, 32], sizes = [1, 32], strides = [1, 1]} : vector<1x96xf32> to vector<1x32xf32>
    %350 = vector.extract_strided_slice %339 {offsets = [0, 32], sizes = [1, 32], strides = [1, 1]} : vector<1x96xf32> to vector<1x32xf32>
    %351 = arith.addf %349, %350 : vector<1x32xf32>
    %352 = arith.negf %351 : vector<1x32xf32>
    %353 = math.exp %352 : vector<1x32xf32>
    %cst_56 = arith.constant 1.000000e+00 : f32
    %354 = vector.broadcast %cst_56 : f32 to vector<1x32xf32>
    %355 = arith.addf %354, %353 : vector<1x32xf32>
    %356 = arith.divf %354, %355 : vector<1x32xf32>
    %357 = vector.extract_strided_slice %334 {offsets = [0, 64], sizes = [1, 32], strides = [1, 1]} : vector<1x96xf32> to vector<1x32xf32>
    %358 = vector.extract_strided_slice %339 {offsets = [0, 64], sizes = [1, 32], strides = [1, 1]} : vector<1x96xf32> to vector<1x32xf32>
    %359 = arith.mulf %348, %358 : vector<1x32xf32>
    %360 = arith.addf %357, %359 : vector<1x32xf32>
    %361 = math.tanh %360 : vector<1x32xf32>
    %cst_57 = arith.constant 1.000000e+00 : f32
    %362 = vector.broadcast %cst_57 : f32 to vector<1x32xf32>
    %363 = arith.subf %362, %356 : vector<1x32xf32>
    %364 = arith.mulf %363, %361 : vector<1x32xf32>
    %365 = arith.mulf %356, %340 : vector<1x32xf32>
    %366 = arith.addf %364, %365 : vector<1x32xf32>
    %367 = vector.extract_strided_slice %338 {offsets = [0, 128], sizes = [1, 96], strides = [1, 1]} : vector<1x256xf32> to vector<1x96xf32>
    %368 = vector.extract_strided_slice %331 {offsets = [0, 32], sizes = [1, 32], strides = [1, 1]} : vector<1x64xf32> to vector<1x32xf32>
    %369 = vector.extract_strided_slice %336 {offsets = [0, 0], sizes = [1, 32], strides = [1, 1]} : vector<1x96xf32> to vector<1x32xf32>
    %370 = vector.extract_strided_slice %367 {offsets = [0, 0], sizes = [1, 32], strides = [1, 1]} : vector<1x96xf32> to vector<1x32xf32>
    %371 = arith.addf %369, %370 : vector<1x32xf32>
    %372 = arith.negf %371 : vector<1x32xf32>
    %373 = math.exp %372 : vector<1x32xf32>
    %cst_58 = arith.constant 1.000000e+00 : f32
    %374 = vector.broadcast %cst_58 : f32 to vector<1x32xf32>
    %375 = arith.addf %374, %373 : vector<1x32xf32>
    %376 = arith.divf %374, %375 : vector<1x32xf32>
    %377 = vector.extract_strided_slice %336 {offsets = [0, 32], sizes = [1, 32], strides = [1, 1]} : vector<1x96xf32> to vector<1x32xf32>
    %378 = vector.extract_strided_slice %367 {offsets = [0, 32], sizes = [1, 32], strides = [1, 1]} : vector<1x96xf32> to vector<1x32xf32>
    %379 = arith.addf %377, %378 : vector<1x32xf32>
    %380 = arith.negf %379 : vector<1x32xf32>
    %381 = math.exp %380 : vector<1x32xf32>
    %cst_59 = arith.constant 1.000000e+00 : f32
    %382 = vector.broadcast %cst_59 : f32 to vector<1x32xf32>
    %383 = arith.addf %382, %381 : vector<1x32xf32>
    %384 = arith.divf %382, %383 : vector<1x32xf32>
    %385 = vector.extract_strided_slice %336 {offsets = [0, 64], sizes = [1, 32], strides = [1, 1]} : vector<1x96xf32> to vector<1x32xf32>
    %386 = vector.extract_strided_slice %367 {offsets = [0, 64], sizes = [1, 32], strides = [1, 1]} : vector<1x96xf32> to vector<1x32xf32>
    %387 = arith.mulf %376, %386 : vector<1x32xf32>
    %388 = arith.addf %385, %387 : vector<1x32xf32>
    %389 = math.tanh %388 : vector<1x32xf32>
    %cst_60 = arith.constant 1.000000e+00 : f32
    %390 = vector.broadcast %cst_60 : f32 to vector<1x32xf32>
    %391 = arith.subf %390, %384 : vector<1x32xf32>
    %392 = arith.mulf %391, %389 : vector<1x32xf32>
    %393 = arith.mulf %384, %368 : vector<1x32xf32>
    %394 = arith.addf %392, %393 : vector<1x32xf32>
    %395 = vector.broadcast %c4_i32 : i32 to vector<8x1xi32>
    %396 = arith.cmpi eq, %17, %395 : vector<8x1xi32>
    %397 = vector.shape_cast %396 : vector<8x1xi1> to vector<8x1xi1>
    %398 = vector.broadcast %397 : vector<8x1xi1> to vector<8x32xi1>
    %399 = vector.shape_cast %366 : vector<1x32xf32> to vector<1x32xf32>
    %400 = vector.broadcast %399 : vector<1x32xf32> to vector<8x32xf32>
    %401 = arith.select %398, %400, %323 : vector<8x32xi1>, vector<8x32xf32>
    %402 = vector.broadcast %332 : i32 to vector<8x1xi32>
    %403 = arith.cmpi eq, %17, %402 : vector<8x1xi32>
    %404 = vector.shape_cast %403 : vector<8x1xi1> to vector<8x1xi1>
    %405 = vector.broadcast %404 : vector<8x1xi1> to vector<8x32xi1>
    %406 = vector.shape_cast %394 : vector<1x32xf32> to vector<1x32xf32>
    %407 = vector.broadcast %406 : vector<1x32xf32> to vector<8x32xf32>
    %408 = arith.select %405, %407, %330 : vector<8x32xi1>, vector<8x32xf32>
    %409 = tpu.concatenate %366, %394 in 1 : vector<1x32xf32>, vector<1x32xf32> -> vector<1x64xf32>
    %c5_i32 = arith.constant 5 : i32
    %c7_i32_61 = arith.constant 7 : i32
    %410 = arith.subi %c7_i32_61, %c5_i32 : i32
    %411 = arith.index_cast %c5_i32 : i32 to index
    %c0_62 = arith.constant 0 : index
    %412 = vector.load %arg4[%411, %c0_62] : memref<8x256xf32, #tpu.memory_space<vmem>>, vector<1x96xf32>
    %413 = arith.index_cast %410 : i32 to index
    %c128_63 = arith.constant 128 : index
    %414 = vector.load %arg4[%413, %c128_63] : memref<8x256xf32, #tpu.memory_space<vmem>>, vector<1x96xf32>
    %cst_64 = arith.constant dense<0.000000e+00> : vector<1x256xf32>
    %415 = tpu.matmul %409, %15, %cst_64 {dimension_numbers = #tpu.dot_dimension_numbers<[1], [0], [0], [1], [0, 0, 1, 1], [], []>} : vector<1x64xf32>, vector<64x256xf32>, vector<1x256xf32> -> vector<1x256xf32>
    %416 = arith.addf %415, %16 : vector<1x256xf32>
    %417 = vector.extract_strided_slice %416 {offsets = [0, 0], sizes = [1, 96], strides = [1, 1]} : vector<1x256xf32> to vector<1x96xf32>
    %418 = vector.extract_strided_slice %409 {offsets = [0, 0], sizes = [1, 32], strides = [1, 1]} : vector<1x64xf32> to vector<1x32xf32>
    %419 = vector.extract_strided_slice %412 {offsets = [0, 0], sizes = [1, 32], strides = [1, 1]} : vector<1x96xf32> to vector<1x32xf32>
    %420 = vector.extract_strided_slice %417 {offsets = [0, 0], sizes = [1, 32], strides = [1, 1]} : vector<1x96xf32> to vector<1x32xf32>
    %421 = arith.addf %419, %420 : vector<1x32xf32>
    %422 = arith.negf %421 : vector<1x32xf32>
    %423 = math.exp %422 : vector<1x32xf32>
    %cst_65 = arith.constant 1.000000e+00 : f32
    %424 = vector.broadcast %cst_65 : f32 to vector<1x32xf32>
    %425 = arith.addf %424, %423 : vector<1x32xf32>
    %426 = arith.divf %424, %425 : vector<1x32xf32>
    %427 = vector.extract_strided_slice %412 {offsets = [0, 32], sizes = [1, 32], strides = [1, 1]} : vector<1x96xf32> to vector<1x32xf32>
    %428 = vector.extract_strided_slice %417 {offsets = [0, 32], sizes = [1, 32], strides = [1, 1]} : vector<1x96xf32> to vector<1x32xf32>
    %429 = arith.addf %427, %428 : vector<1x32xf32>
    %430 = arith.negf %429 : vector<1x32xf32>
    %431 = math.exp %430 : vector<1x32xf32>
    %cst_66 = arith.constant 1.000000e+00 : f32
    %432 = vector.broadcast %cst_66 : f32 to vector<1x32xf32>
    %433 = arith.addf %432, %431 : vector<1x32xf32>
    %434 = arith.divf %432, %433 : vector<1x32xf32>
    %435 = vector.extract_strided_slice %412 {offsets = [0, 64], sizes = [1, 32], strides = [1, 1]} : vector<1x96xf32> to vector<1x32xf32>
    %436 = vector.extract_strided_slice %417 {offsets = [0, 64], sizes = [1, 32], strides = [1, 1]} : vector<1x96xf32> to vector<1x32xf32>
    %437 = arith.mulf %426, %436 : vector<1x32xf32>
    %438 = arith.addf %435, %437 : vector<1x32xf32>
    %439 = math.tanh %438 : vector<1x32xf32>
    %cst_67 = arith.constant 1.000000e+00 : f32
    %440 = vector.broadcast %cst_67 : f32 to vector<1x32xf32>
    %441 = arith.subf %440, %434 : vector<1x32xf32>
    %442 = arith.mulf %441, %439 : vector<1x32xf32>
    %443 = arith.mulf %434, %418 : vector<1x32xf32>
    %444 = arith.addf %442, %443 : vector<1x32xf32>
    %445 = vector.extract_strided_slice %416 {offsets = [0, 128], sizes = [1, 96], strides = [1, 1]} : vector<1x256xf32> to vector<1x96xf32>
    %446 = vector.extract_strided_slice %409 {offsets = [0, 32], sizes = [1, 32], strides = [1, 1]} : vector<1x64xf32> to vector<1x32xf32>
    %447 = vector.extract_strided_slice %414 {offsets = [0, 0], sizes = [1, 32], strides = [1, 1]} : vector<1x96xf32> to vector<1x32xf32>
    %448 = vector.extract_strided_slice %445 {offsets = [0, 0], sizes = [1, 32], strides = [1, 1]} : vector<1x96xf32> to vector<1x32xf32>
    %449 = arith.addf %447, %448 : vector<1x32xf32>
    %450 = arith.negf %449 : vector<1x32xf32>
    %451 = math.exp %450 : vector<1x32xf32>
    %cst_68 = arith.constant 1.000000e+00 : f32
    %452 = vector.broadcast %cst_68 : f32 to vector<1x32xf32>
    %453 = arith.addf %452, %451 : vector<1x32xf32>
    %454 = arith.divf %452, %453 : vector<1x32xf32>
    %455 = vector.extract_strided_slice %414 {offsets = [0, 32], sizes = [1, 32], strides = [1, 1]} : vector<1x96xf32> to vector<1x32xf32>
    %456 = vector.extract_strided_slice %445 {offsets = [0, 32], sizes = [1, 32], strides = [1, 1]} : vector<1x96xf32> to vector<1x32xf32>
    %457 = arith.addf %455, %456 : vector<1x32xf32>
    %458 = arith.negf %457 : vector<1x32xf32>
    %459 = math.exp %458 : vector<1x32xf32>
    %cst_69 = arith.constant 1.000000e+00 : f32
    %460 = vector.broadcast %cst_69 : f32 to vector<1x32xf32>
    %461 = arith.addf %460, %459 : vector<1x32xf32>
    %462 = arith.divf %460, %461 : vector<1x32xf32>
    %463 = vector.extract_strided_slice %414 {offsets = [0, 64], sizes = [1, 32], strides = [1, 1]} : vector<1x96xf32> to vector<1x32xf32>
    %464 = vector.extract_strided_slice %445 {offsets = [0, 64], sizes = [1, 32], strides = [1, 1]} : vector<1x96xf32> to vector<1x32xf32>
    %465 = arith.mulf %454, %464 : vector<1x32xf32>
    %466 = arith.addf %463, %465 : vector<1x32xf32>
    %467 = math.tanh %466 : vector<1x32xf32>
    %cst_70 = arith.constant 1.000000e+00 : f32
    %468 = vector.broadcast %cst_70 : f32 to vector<1x32xf32>
    %469 = arith.subf %468, %462 : vector<1x32xf32>
    %470 = arith.mulf %469, %467 : vector<1x32xf32>
    %471 = arith.mulf %462, %446 : vector<1x32xf32>
    %472 = arith.addf %470, %471 : vector<1x32xf32>
    %473 = vector.broadcast %c5_i32 : i32 to vector<8x1xi32>
    %474 = arith.cmpi eq, %17, %473 : vector<8x1xi32>
    %475 = vector.shape_cast %474 : vector<8x1xi1> to vector<8x1xi1>
    %476 = vector.broadcast %475 : vector<8x1xi1> to vector<8x32xi1>
    %477 = vector.shape_cast %444 : vector<1x32xf32> to vector<1x32xf32>
    %478 = vector.broadcast %477 : vector<1x32xf32> to vector<8x32xf32>
    %479 = arith.select %476, %478, %401 : vector<8x32xi1>, vector<8x32xf32>
    %480 = vector.broadcast %410 : i32 to vector<8x1xi32>
    %481 = arith.cmpi eq, %17, %480 : vector<8x1xi32>
    %482 = vector.shape_cast %481 : vector<8x1xi1> to vector<8x1xi1>
    %483 = vector.broadcast %482 : vector<8x1xi1> to vector<8x32xi1>
    %484 = vector.shape_cast %472 : vector<1x32xf32> to vector<1x32xf32>
    %485 = vector.broadcast %484 : vector<1x32xf32> to vector<8x32xf32>
    %486 = arith.select %483, %485, %408 : vector<8x32xi1>, vector<8x32xf32>
    %487 = tpu.concatenate %444, %472 in 1 : vector<1x32xf32>, vector<1x32xf32> -> vector<1x64xf32>
    %c6_i32 = arith.constant 6 : i32
    %c7_i32_71 = arith.constant 7 : i32
    %488 = arith.subi %c7_i32_71, %c6_i32 : i32
    %489 = arith.index_cast %c6_i32 : i32 to index
    %c0_72 = arith.constant 0 : index
    %490 = vector.load %arg4[%489, %c0_72] : memref<8x256xf32, #tpu.memory_space<vmem>>, vector<1x96xf32>
    %491 = arith.index_cast %488 : i32 to index
    %c128_73 = arith.constant 128 : index
    %492 = vector.load %arg4[%491, %c128_73] : memref<8x256xf32, #tpu.memory_space<vmem>>, vector<1x96xf32>
    %cst_74 = arith.constant dense<0.000000e+00> : vector<1x256xf32>
    %493 = tpu.matmul %487, %15, %cst_74 {dimension_numbers = #tpu.dot_dimension_numbers<[1], [0], [0], [1], [0, 0, 1, 1], [], []>} : vector<1x64xf32>, vector<64x256xf32>, vector<1x256xf32> -> vector<1x256xf32>
    %494 = arith.addf %493, %16 : vector<1x256xf32>
    %495 = vector.extract_strided_slice %494 {offsets = [0, 0], sizes = [1, 96], strides = [1, 1]} : vector<1x256xf32> to vector<1x96xf32>
    %496 = vector.extract_strided_slice %487 {offsets = [0, 0], sizes = [1, 32], strides = [1, 1]} : vector<1x64xf32> to vector<1x32xf32>
    %497 = vector.extract_strided_slice %490 {offsets = [0, 0], sizes = [1, 32], strides = [1, 1]} : vector<1x96xf32> to vector<1x32xf32>
    %498 = vector.extract_strided_slice %495 {offsets = [0, 0], sizes = [1, 32], strides = [1, 1]} : vector<1x96xf32> to vector<1x32xf32>
    %499 = arith.addf %497, %498 : vector<1x32xf32>
    %500 = arith.negf %499 : vector<1x32xf32>
    %501 = math.exp %500 : vector<1x32xf32>
    %cst_75 = arith.constant 1.000000e+00 : f32
    %502 = vector.broadcast %cst_75 : f32 to vector<1x32xf32>
    %503 = arith.addf %502, %501 : vector<1x32xf32>
    %504 = arith.divf %502, %503 : vector<1x32xf32>
    %505 = vector.extract_strided_slice %490 {offsets = [0, 32], sizes = [1, 32], strides = [1, 1]} : vector<1x96xf32> to vector<1x32xf32>
    %506 = vector.extract_strided_slice %495 {offsets = [0, 32], sizes = [1, 32], strides = [1, 1]} : vector<1x96xf32> to vector<1x32xf32>
    %507 = arith.addf %505, %506 : vector<1x32xf32>
    %508 = arith.negf %507 : vector<1x32xf32>
    %509 = math.exp %508 : vector<1x32xf32>
    %cst_76 = arith.constant 1.000000e+00 : f32
    %510 = vector.broadcast %cst_76 : f32 to vector<1x32xf32>
    %511 = arith.addf %510, %509 : vector<1x32xf32>
    %512 = arith.divf %510, %511 : vector<1x32xf32>
    %513 = vector.extract_strided_slice %490 {offsets = [0, 64], sizes = [1, 32], strides = [1, 1]} : vector<1x96xf32> to vector<1x32xf32>
    %514 = vector.extract_strided_slice %495 {offsets = [0, 64], sizes = [1, 32], strides = [1, 1]} : vector<1x96xf32> to vector<1x32xf32>
    %515 = arith.mulf %504, %514 : vector<1x32xf32>
    %516 = arith.addf %513, %515 : vector<1x32xf32>
    %517 = math.tanh %516 : vector<1x32xf32>
    %cst_77 = arith.constant 1.000000e+00 : f32
    %518 = vector.broadcast %cst_77 : f32 to vector<1x32xf32>
    %519 = arith.subf %518, %512 : vector<1x32xf32>
    %520 = arith.mulf %519, %517 : vector<1x32xf32>
    %521 = arith.mulf %512, %496 : vector<1x32xf32>
    %522 = arith.addf %520, %521 : vector<1x32xf32>
    %523 = vector.extract_strided_slice %494 {offsets = [0, 128], sizes = [1, 96], strides = [1, 1]} : vector<1x256xf32> to vector<1x96xf32>
    %524 = vector.extract_strided_slice %487 {offsets = [0, 32], sizes = [1, 32], strides = [1, 1]} : vector<1x64xf32> to vector<1x32xf32>
    %525 = vector.extract_strided_slice %492 {offsets = [0, 0], sizes = [1, 32], strides = [1, 1]} : vector<1x96xf32> to vector<1x32xf32>
    %526 = vector.extract_strided_slice %523 {offsets = [0, 0], sizes = [1, 32], strides = [1, 1]} : vector<1x96xf32> to vector<1x32xf32>
    %527 = arith.addf %525, %526 : vector<1x32xf32>
    %528 = arith.negf %527 : vector<1x32xf32>
    %529 = math.exp %528 : vector<1x32xf32>
    %cst_78 = arith.constant 1.000000e+00 : f32
    %530 = vector.broadcast %cst_78 : f32 to vector<1x32xf32>
    %531 = arith.addf %530, %529 : vector<1x32xf32>
    %532 = arith.divf %530, %531 : vector<1x32xf32>
    %533 = vector.extract_strided_slice %492 {offsets = [0, 32], sizes = [1, 32], strides = [1, 1]} : vector<1x96xf32> to vector<1x32xf32>
    %534 = vector.extract_strided_slice %523 {offsets = [0, 32], sizes = [1, 32], strides = [1, 1]} : vector<1x96xf32> to vector<1x32xf32>
    %535 = arith.addf %533, %534 : vector<1x32xf32>
    %536 = arith.negf %535 : vector<1x32xf32>
    %537 = math.exp %536 : vector<1x32xf32>
    %cst_79 = arith.constant 1.000000e+00 : f32
    %538 = vector.broadcast %cst_79 : f32 to vector<1x32xf32>
    %539 = arith.addf %538, %537 : vector<1x32xf32>
    %540 = arith.divf %538, %539 : vector<1x32xf32>
    %541 = vector.extract_strided_slice %492 {offsets = [0, 64], sizes = [1, 32], strides = [1, 1]} : vector<1x96xf32> to vector<1x32xf32>
    %542 = vector.extract_strided_slice %523 {offsets = [0, 64], sizes = [1, 32], strides = [1, 1]} : vector<1x96xf32> to vector<1x32xf32>
    %543 = arith.mulf %532, %542 : vector<1x32xf32>
    %544 = arith.addf %541, %543 : vector<1x32xf32>
    %545 = math.tanh %544 : vector<1x32xf32>
    %cst_80 = arith.constant 1.000000e+00 : f32
    %546 = vector.broadcast %cst_80 : f32 to vector<1x32xf32>
    %547 = arith.subf %546, %540 : vector<1x32xf32>
    %548 = arith.mulf %547, %545 : vector<1x32xf32>
    %549 = arith.mulf %540, %524 : vector<1x32xf32>
    %550 = arith.addf %548, %549 : vector<1x32xf32>
    %551 = vector.broadcast %c6_i32 : i32 to vector<8x1xi32>
    %552 = arith.cmpi eq, %17, %551 : vector<8x1xi32>
    %553 = vector.shape_cast %552 : vector<8x1xi1> to vector<8x1xi1>
    %554 = vector.broadcast %553 : vector<8x1xi1> to vector<8x32xi1>
    %555 = vector.shape_cast %522 : vector<1x32xf32> to vector<1x32xf32>
    %556 = vector.broadcast %555 : vector<1x32xf32> to vector<8x32xf32>
    %557 = arith.select %554, %556, %479 : vector<8x32xi1>, vector<8x32xf32>
    %558 = vector.broadcast %488 : i32 to vector<8x1xi32>
    %559 = arith.cmpi eq, %17, %558 : vector<8x1xi32>
    %560 = vector.shape_cast %559 : vector<8x1xi1> to vector<8x1xi1>
    %561 = vector.broadcast %560 : vector<8x1xi1> to vector<8x32xi1>
    %562 = vector.shape_cast %550 : vector<1x32xf32> to vector<1x32xf32>
    %563 = vector.broadcast %562 : vector<1x32xf32> to vector<8x32xf32>
    %564 = arith.select %561, %563, %486 : vector<8x32xi1>, vector<8x32xf32>
    %565 = tpu.concatenate %522, %550 in 1 : vector<1x32xf32>, vector<1x32xf32> -> vector<1x64xf32>
    %c7_i32_81 = arith.constant 7 : i32
    %c7_i32_82 = arith.constant 7 : i32
    %566 = arith.subi %c7_i32_82, %c7_i32_81 : i32
    %567 = arith.index_cast %c7_i32_81 : i32 to index
    %c0_83 = arith.constant 0 : index
    %568 = vector.load %arg4[%567, %c0_83] : memref<8x256xf32, #tpu.memory_space<vmem>>, vector<1x96xf32>
    %569 = arith.index_cast %566 : i32 to index
    %c128_84 = arith.constant 128 : index
    %570 = vector.load %arg4[%569, %c128_84] : memref<8x256xf32, #tpu.memory_space<vmem>>, vector<1x96xf32>
    %cst_85 = arith.constant dense<0.000000e+00> : vector<1x256xf32>
    %571 = tpu.matmul %565, %15, %cst_85 {dimension_numbers = #tpu.dot_dimension_numbers<[1], [0], [0], [1], [0, 0, 1, 1], [], []>} : vector<1x64xf32>, vector<64x256xf32>, vector<1x256xf32> -> vector<1x256xf32>
    %572 = arith.addf %571, %16 : vector<1x256xf32>
    %573 = vector.extract_strided_slice %572 {offsets = [0, 0], sizes = [1, 96], strides = [1, 1]} : vector<1x256xf32> to vector<1x96xf32>
    %574 = vector.extract_strided_slice %565 {offsets = [0, 0], sizes = [1, 32], strides = [1, 1]} : vector<1x64xf32> to vector<1x32xf32>
    %575 = vector.extract_strided_slice %568 {offsets = [0, 0], sizes = [1, 32], strides = [1, 1]} : vector<1x96xf32> to vector<1x32xf32>
    %576 = vector.extract_strided_slice %573 {offsets = [0, 0], sizes = [1, 32], strides = [1, 1]} : vector<1x96xf32> to vector<1x32xf32>
    %577 = arith.addf %575, %576 : vector<1x32xf32>
    %578 = arith.negf %577 : vector<1x32xf32>
    %579 = math.exp %578 : vector<1x32xf32>
    %cst_86 = arith.constant 1.000000e+00 : f32
    %580 = vector.broadcast %cst_86 : f32 to vector<1x32xf32>
    %581 = arith.addf %580, %579 : vector<1x32xf32>
    %582 = arith.divf %580, %581 : vector<1x32xf32>
    %583 = vector.extract_strided_slice %568 {offsets = [0, 32], sizes = [1, 32], strides = [1, 1]} : vector<1x96xf32> to vector<1x32xf32>
    %584 = vector.extract_strided_slice %573 {offsets = [0, 32], sizes = [1, 32], strides = [1, 1]} : vector<1x96xf32> to vector<1x32xf32>
    %585 = arith.addf %583, %584 : vector<1x32xf32>
    %586 = arith.negf %585 : vector<1x32xf32>
    %587 = math.exp %586 : vector<1x32xf32>
    %cst_87 = arith.constant 1.000000e+00 : f32
    %588 = vector.broadcast %cst_87 : f32 to vector<1x32xf32>
    %589 = arith.addf %588, %587 : vector<1x32xf32>
    %590 = arith.divf %588, %589 : vector<1x32xf32>
    %591 = vector.extract_strided_slice %568 {offsets = [0, 64], sizes = [1, 32], strides = [1, 1]} : vector<1x96xf32> to vector<1x32xf32>
    %592 = vector.extract_strided_slice %573 {offsets = [0, 64], sizes = [1, 32], strides = [1, 1]} : vector<1x96xf32> to vector<1x32xf32>
    %593 = arith.mulf %582, %592 : vector<1x32xf32>
    %594 = arith.addf %591, %593 : vector<1x32xf32>
    %595 = math.tanh %594 : vector<1x32xf32>
    %cst_88 = arith.constant 1.000000e+00 : f32
    %596 = vector.broadcast %cst_88 : f32 to vector<1x32xf32>
    %597 = arith.subf %596, %590 : vector<1x32xf32>
    %598 = arith.mulf %597, %595 : vector<1x32xf32>
    %599 = arith.mulf %590, %574 : vector<1x32xf32>
    %600 = arith.addf %598, %599 : vector<1x32xf32>
    %601 = vector.extract_strided_slice %572 {offsets = [0, 128], sizes = [1, 96], strides = [1, 1]} : vector<1x256xf32> to vector<1x96xf32>
    %602 = vector.extract_strided_slice %565 {offsets = [0, 32], sizes = [1, 32], strides = [1, 1]} : vector<1x64xf32> to vector<1x32xf32>
    %603 = vector.extract_strided_slice %570 {offsets = [0, 0], sizes = [1, 32], strides = [1, 1]} : vector<1x96xf32> to vector<1x32xf32>
    %604 = vector.extract_strided_slice %601 {offsets = [0, 0], sizes = [1, 32], strides = [1, 1]} : vector<1x96xf32> to vector<1x32xf32>
    %605 = arith.addf %603, %604 : vector<1x32xf32>
    %606 = arith.negf %605 : vector<1x32xf32>
    %607 = math.exp %606 : vector<1x32xf32>
    %cst_89 = arith.constant 1.000000e+00 : f32
    %608 = vector.broadcast %cst_89 : f32 to vector<1x32xf32>
    %609 = arith.addf %608, %607 : vector<1x32xf32>
    %610 = arith.divf %608, %609 : vector<1x32xf32>
    %611 = vector.extract_strided_slice %570 {offsets = [0, 32], sizes = [1, 32], strides = [1, 1]} : vector<1x96xf32> to vector<1x32xf32>
    %612 = vector.extract_strided_slice %601 {offsets = [0, 32], sizes = [1, 32], strides = [1, 1]} : vector<1x96xf32> to vector<1x32xf32>
    %613 = arith.addf %611, %612 : vector<1x32xf32>
    %614 = arith.negf %613 : vector<1x32xf32>
    %615 = math.exp %614 : vector<1x32xf32>
    %cst_90 = arith.constant 1.000000e+00 : f32
    %616 = vector.broadcast %cst_90 : f32 to vector<1x32xf32>
    %617 = arith.addf %616, %615 : vector<1x32xf32>
    %618 = arith.divf %616, %617 : vector<1x32xf32>
    %619 = vector.extract_strided_slice %570 {offsets = [0, 64], sizes = [1, 32], strides = [1, 1]} : vector<1x96xf32> to vector<1x32xf32>
    %620 = vector.extract_strided_slice %601 {offsets = [0, 64], sizes = [1, 32], strides = [1, 1]} : vector<1x96xf32> to vector<1x32xf32>
    %621 = arith.mulf %610, %620 : vector<1x32xf32>
    %622 = arith.addf %619, %621 : vector<1x32xf32>
    %623 = math.tanh %622 : vector<1x32xf32>
    %cst_91 = arith.constant 1.000000e+00 : f32
    %624 = vector.broadcast %cst_91 : f32 to vector<1x32xf32>
    %625 = arith.subf %624, %618 : vector<1x32xf32>
    %626 = arith.mulf %625, %623 : vector<1x32xf32>
    %627 = arith.mulf %618, %602 : vector<1x32xf32>
    %628 = arith.addf %626, %627 : vector<1x32xf32>
    %629 = vector.broadcast %c7_i32_81 : i32 to vector<8x1xi32>
    %630 = arith.cmpi eq, %17, %629 : vector<8x1xi32>
    %631 = vector.shape_cast %630 : vector<8x1xi1> to vector<8x1xi1>
    %632 = vector.broadcast %631 : vector<8x1xi1> to vector<8x32xi1>
    %633 = vector.shape_cast %600 : vector<1x32xf32> to vector<1x32xf32>
    %634 = vector.broadcast %633 : vector<1x32xf32> to vector<8x32xf32>
    %635 = arith.select %632, %634, %557 : vector<8x32xi1>, vector<8x32xf32>
    %636 = vector.broadcast %566 : i32 to vector<8x1xi32>
    %637 = arith.cmpi eq, %17, %636 : vector<8x1xi32>
    %638 = vector.shape_cast %637 : vector<8x1xi1> to vector<8x1xi1>
    %639 = vector.broadcast %638 : vector<8x1xi1> to vector<8x32xi1>
    %640 = vector.shape_cast %628 : vector<1x32xf32> to vector<1x32xf32>
    %641 = vector.broadcast %640 : vector<1x32xf32> to vector<8x32xf32>
    %642 = arith.select %639, %641, %564 : vector<8x32xi1>, vector<8x32xf32>
    %643 = tpu.concatenate %600, %628 in 1 : vector<1x32xf32>, vector<1x32xf32> -> vector<1x64xf32>
    %c8_i32 = arith.constant 8 : i32
    %644 = arith.addf %635, %642 : vector<8x32xf32>
    %645 = vector.extract_strided_slice %643 {offsets = [0, 0], sizes = [1, 32], strides = [1, 1]} : vector<1x64xf32> to vector<1x32xf32>
    %c240 = arith.constant 240 : index
    %c0_92 = arith.constant 0 : index
    %646 = vector.load %arg1[%c240, %c0_92] : memref<400x256xf32, #tpu.memory_space<vmem>>, vector<32x96xf32>
    %c280 = arith.constant 280 : index
    %c0_93 = arith.constant 0 : index
    %647 = vector.load %arg1[%c280, %c0_93] : memref<400x256xf32, #tpu.memory_space<vmem>>, vector<1x96xf32>
    %c208 = arith.constant 208 : index
    %c0_94 = arith.constant 0 : index
    %648 = vector.load %arg1[%c208, %c0_94] : memref<400x256xf32, #tpu.memory_space<vmem>>, vector<32x96xf32>
    %c272 = arith.constant 272 : index
    %c0_95 = arith.constant 0 : index
    %649 = vector.load %arg1[%c272, %c0_95] : memref<400x256xf32, #tpu.memory_space<vmem>>, vector<1x96xf32>
    %c288 = arith.constant 288 : index
    %c0_96 = arith.constant 0 : index
    %650 = vector.load %arg1[%c288, %c0_96] : memref<400x256xf32, #tpu.memory_space<vmem>>, vector<32x32xf32>
    %c320 = arith.constant 320 : index
    %c0_97 = arith.constant 0 : index
    %651 = vector.load %arg1[%c320, %c0_97] : memref<400x256xf32, #tpu.memory_space<vmem>>, vector<32x32xf32>
    %c352 = arith.constant 352 : index
    %c0_98 = arith.constant 0 : index
    %652 = vector.load %arg1[%c352, %c0_98] : memref<400x256xf32, #tpu.memory_space<vmem>>, vector<1x32xf32>
    %c360 = arith.constant 360 : index
    %c0_99 = arith.constant 0 : index
    %653 = vector.load %arg1[%c360, %c0_99] : memref<400x256xf32, #tpu.memory_space<vmem>>, vector<32x64xf32>
    %c392 = arith.constant 392 : index
    %c0_100 = arith.constant 0 : index
    %654 = vector.load %arg1[%c392, %c0_100] : memref<400x256xf32, #tpu.memory_space<vmem>>, vector<1x64xf32>
    %cst_101 = arith.constant dense<0.000000e+00> : vector<64x96xf32>
    %655 = tpu.matmul %0, %648, %cst_101 {dimension_numbers = #tpu.dot_dimension_numbers<[1], [0], [0], [1], [0, 0, 1, 1], [], []>} : vector<64x32xf32>, vector<32x96xf32>, vector<64x96xf32> -> vector<64x96xf32>
    %656 = vector.broadcast %649 : vector<1x96xf32> to vector<64x96xf32>
    %657 = arith.addf %655, %656 : vector<64x96xf32>
    %658 = tpu.iota {dimensions = array<i32: 1>} : vector<1x64xi32>
    %659 = tpu.iota {dimensions = array<i32: 1>} : vector<1x128xi32>
    %c1_i32_102 = arith.constant 1 : i32
    %660 = vector.broadcast %c1_i32_102 : i32 to vector<1x64xi32>
    %661 = arith.cmpi eq, %658, %660 : vector<1x64xi32>
    %662 = arith.extui %661 : vector<1x64xi1> to vector<1x64xi32>
    %663 = arith.sitofp %662 : vector<1x64xi32> to vector<1x64xf32>
    %cst_103 = arith.constant dense<0.000000e+00> : vector<1x96xf32>
    %664 = tpu.matmul %663, %657, %cst_103 {dimension_numbers = #tpu.dot_dimension_numbers<[1], [0], [0], [1], [0, 0, 1, 1], [], []>} : vector<1x64xf32>, vector<64x96xf32>, vector<1x96xf32> -> vector<1x96xf32>
    %c0_i32_104 = arith.constant 0 : i32
    %665 = vector.broadcast %c0_i32_104 : i32 to vector<1x128xi32>
    %cst_105 = arith.constant 0.000000e+00 : f32
    %666 = vector.broadcast %cst_105 : f32 to vector<1x128xf32>
    %c0_i32_106 = arith.constant 0 : i32
    %cst_107 = arith.constant dense<0.000000e+00> : vector<1x96xf32>
    %667 = tpu.matmul %645, %646, %cst_107 {dimension_numbers = #tpu.dot_dimension_numbers<[1], [0], [0], [1], [0, 0, 1, 1], [], []>} : vector<1x32xf32>, vector<32x96xf32>, vector<1x96xf32> -> vector<1x96xf32>
    %668 = arith.addf %667, %647 : vector<1x96xf32>
    %669 = vector.extract_strided_slice %664 {offsets = [0, 0], sizes = [1, 32], strides = [1, 1]} : vector<1x96xf32> to vector<1x32xf32>
    %670 = vector.extract_strided_slice %668 {offsets = [0, 0], sizes = [1, 32], strides = [1, 1]} : vector<1x96xf32> to vector<1x32xf32>
    %671 = arith.addf %669, %670 : vector<1x32xf32>
    %672 = arith.negf %671 : vector<1x32xf32>
    %673 = math.exp %672 : vector<1x32xf32>
    %cst_108 = arith.constant 1.000000e+00 : f32
    %674 = vector.broadcast %cst_108 : f32 to vector<1x32xf32>
    %675 = arith.addf %674, %673 : vector<1x32xf32>
    %676 = arith.divf %674, %675 : vector<1x32xf32>
    %677 = vector.extract_strided_slice %664 {offsets = [0, 32], sizes = [1, 32], strides = [1, 1]} : vector<1x96xf32> to vector<1x32xf32>
    %678 = vector.extract_strided_slice %668 {offsets = [0, 32], sizes = [1, 32], strides = [1, 1]} : vector<1x96xf32> to vector<1x32xf32>
    %679 = arith.addf %677, %678 : vector<1x32xf32>
    %680 = arith.negf %679 : vector<1x32xf32>
    %681 = math.exp %680 : vector<1x32xf32>
    %cst_109 = arith.constant 1.000000e+00 : f32
    %682 = vector.broadcast %cst_109 : f32 to vector<1x32xf32>
    %683 = arith.addf %682, %681 : vector<1x32xf32>
    %684 = arith.divf %682, %683 : vector<1x32xf32>
    %685 = vector.extract_strided_slice %664 {offsets = [0, 64], sizes = [1, 32], strides = [1, 1]} : vector<1x96xf32> to vector<1x32xf32>
    %686 = vector.extract_strided_slice %668 {offsets = [0, 64], sizes = [1, 32], strides = [1, 1]} : vector<1x96xf32> to vector<1x32xf32>
    %687 = arith.mulf %676, %686 : vector<1x32xf32>
    %688 = arith.addf %685, %687 : vector<1x32xf32>
    %689 = math.tanh %688 : vector<1x32xf32>
    %cst_110 = arith.constant 1.000000e+00 : f32
    %690 = vector.broadcast %cst_110 : f32 to vector<1x32xf32>
    %691 = arith.subf %690, %684 : vector<1x32xf32>
    %692 = arith.mulf %691, %689 : vector<1x32xf32>
    %693 = arith.mulf %684, %645 : vector<1x32xf32>
    %694 = arith.addf %692, %693 : vector<1x32xf32>
    %cst_111 = arith.constant dense<0.000000e+00> : vector<1x8xf32>
    %695 = tpu.matmul %694, %644, %cst_111 {dimension_numbers = #tpu.dot_dimension_numbers<[1], [1], [0], [0], [0, 0, 1, 0], [], []>} : vector<1x32xf32>, vector<8x32xf32>, vector<1x8xf32> -> vector<1x8xf32>
    %cst_112 = arith.constant dense<0xFF800000> : vector<1xf32>
    %696 = vector.multi_reduction <maximumf>, %695, %cst_112 [1] : vector<1x8xf32> to vector<1xf32>
    %697 = vector.shape_cast %696 : vector<1xf32> to vector<1x1xf32>
    %698 = vector.broadcast %697 : vector<1x1xf32> to vector<1x8xf32>
    %699 = arith.subf %695, %698 : vector<1x8xf32>
    %700 = math.exp %699 : vector<1x8xf32>
    %cst_113 = arith.constant dense<0.000000e+00> : vector<1xf32>
    %701 = vector.multi_reduction <add>, %700, %cst_113 [1] : vector<1x8xf32> to vector<1xf32>
    %702 = vector.shape_cast %701 : vector<1xf32> to vector<1x1xf32>
    %703 = tpu.reciprocal %702 {approx = true} : vector<1x1xf32> -> vector<1x1xf32>
    %704 = vector.broadcast %703 : vector<1x1xf32> to vector<1x8xf32>
    %705 = arith.mulf %700, %704 : vector<1x8xf32>
    %cst_114 = arith.constant dense<0.000000e+00> : vector<1x32xf32>
    %706 = tpu.matmul %705, %644, %cst_114 {dimension_numbers = #tpu.dot_dimension_numbers<[1], [0], [0], [1], [0, 0, 1, 1], [], []>} : vector<1x8xf32>, vector<8x32xf32>, vector<1x32xf32> -> vector<1x32xf32>
    %cst_115 = arith.constant dense<0.000000e+00> : vector<1x32xf32>
    %707 = tpu.matmul %694, %650, %cst_115 {dimension_numbers = #tpu.dot_dimension_numbers<[1], [0], [0], [1], [0, 0, 1, 1], [], []>} : vector<1x32xf32>, vector<32x32xf32>, vector<1x32xf32> -> vector<1x32xf32>
    %cst_116 = arith.constant dense<0.000000e+00> : vector<1x32xf32>
    %708 = tpu.matmul %706, %651, %cst_116 {dimension_numbers = #tpu.dot_dimension_numbers<[1], [0], [0], [1], [0, 0, 1, 1], [], []>} : vector<1x32xf32>, vector<32x32xf32>, vector<1x32xf32> -> vector<1x32xf32>
    %709 = arith.addf %707, %708 : vector<1x32xf32>
    %710 = arith.addf %709, %652 : vector<1x32xf32>
    %711 = math.tanh %710 : vector<1x32xf32>
    %cst_117 = arith.constant dense<0.000000e+00> : vector<1x64xf32>
    %712 = tpu.matmul %711, %653, %cst_117 {dimension_numbers = #tpu.dot_dimension_numbers<[1], [0], [0], [1], [0, 0, 1, 1], [], []>} : vector<1x32xf32>, vector<32x64xf32>, vector<1x64xf32> -> vector<1x64xf32>
    %713 = arith.addf %712, %654 : vector<1x64xf32>
    %cst_118 = arith.constant dense<0xFF800000> : vector<1xf32>
    %714 = vector.multi_reduction <maximumf>, %713, %cst_118 [1] : vector<1x64xf32> to vector<1xf32>
    %715 = vector.shape_cast %714 : vector<1xf32> to vector<1x1xf32>
    %716 = vector.broadcast %715 : vector<1x1xf32> to vector<1x64xf32>
    %717 = arith.subf %713, %716 : vector<1x64xf32>
    %718 = math.exp %717 : vector<1x64xf32>
    %cst_119 = arith.constant dense<0.000000e+00> : vector<1xf32>
    %719 = vector.multi_reduction <add>, %718, %cst_119 [1] : vector<1x64xf32> to vector<1xf32>
    %720 = vector.shape_cast %719 : vector<1xf32> to vector<1x1xf32>
    %cst_120 = arith.constant 1.000000e+00 : f32
    %721 = vector.broadcast %cst_120 : f32 to vector<1x1xf32>
    %722 = arith.divf %721, %720 : vector<1x1xf32>
    %723 = vector.broadcast %715 : vector<1x1xf32> to vector<1x64xf32>
    %724 = arith.cmpf oge, %713, %723 : vector<1x64xf32>
    %c64_i32 = arith.constant 64 : i32
    %725 = vector.broadcast %c64_i32 : i32 to vector<1x64xi32>
    %726 = arith.select %724, %658, %725 : vector<1x64xi1>, vector<1x64xi32>
    %cst_121 = arith.constant dense<2147483647> : vector<1xi32>
    %727 = vector.multi_reduction <minsi>, %726, %cst_121 [1] : vector<1x64xi32> to vector<1xi32>
    %728 = vector.shape_cast %727 : vector<1xi32> to vector<1x1xi32>
    %c63_i32 = arith.constant 63 : i32
    %729 = vector.broadcast %c63_i32 : i32 to vector<1x1xi32>
    %730 = arith.minsi %728, %729 : vector<1x1xi32>
    %731 = vector.broadcast %730 : vector<1x1xi32> to vector<1x64xi32>
    %732 = arith.cmpi eq, %658, %731 : vector<1x64xi32>
    %733 = arith.extui %732 : vector<1x64xi1> to vector<1x64xi32>
    %734 = arith.sitofp %733 : vector<1x64xi32> to vector<1x64xf32>
    %cst_122 = arith.constant dense<0.000000e+00> : vector<1x96xf32>
    %735 = tpu.matmul %734, %657, %cst_122 {dimension_numbers = #tpu.dot_dimension_numbers<[1], [0], [0], [1], [0, 0, 1, 1], [], []>} : vector<1x64xf32>, vector<64x96xf32>, vector<1x96xf32> -> vector<1x96xf32>
    %736 = vector.broadcast %c0_i32_106 : i32 to vector<1x128xi32>
    %737 = arith.cmpi eq, %659, %736 : vector<1x128xi32>
    %738 = vector.shape_cast %730 : vector<1x1xi32> to vector<1x1xi32>
    %739 = vector.broadcast %738 : vector<1x1xi32> to vector<1x128xi32>
    %740 = arith.select %737, %739, %665 : vector<1x128xi1>, vector<1x128xi32>
    %741 = vector.broadcast %c0_i32_106 : i32 to vector<1x128xi32>
    %742 = arith.cmpi eq, %659, %741 : vector<1x128xi32>
    %743 = vector.shape_cast %722 : vector<1x1xf32> to vector<1x1xf32>
    %744 = vector.broadcast %743 : vector<1x1xf32> to vector<1x128xf32>
    %745 = arith.select %742, %744, %666 : vector<1x128xi1>, vector<1x128xf32>
    %c1_i32_123 = arith.constant 1 : i32
    %cst_124 = arith.constant dense<0.000000e+00> : vector<1x96xf32>
    %746 = tpu.matmul %694, %646, %cst_124 {dimension_numbers = #tpu.dot_dimension_numbers<[1], [0], [0], [1], [0, 0, 1, 1], [], []>} : vector<1x32xf32>, vector<32x96xf32>, vector<1x96xf32> -> vector<1x96xf32>
    %747 = arith.addf %746, %647 : vector<1x96xf32>
    %748 = vector.extract_strided_slice %735 {offsets = [0, 0], sizes = [1, 32], strides = [1, 1]} : vector<1x96xf32> to vector<1x32xf32>
    %749 = vector.extract_strided_slice %747 {offsets = [0, 0], sizes = [1, 32], strides = [1, 1]} : vector<1x96xf32> to vector<1x32xf32>
    %750 = arith.addf %748, %749 : vector<1x32xf32>
    %751 = arith.negf %750 : vector<1x32xf32>
    %752 = math.exp %751 : vector<1x32xf32>
    %cst_125 = arith.constant 1.000000e+00 : f32
    %753 = vector.broadcast %cst_125 : f32 to vector<1x32xf32>
    %754 = arith.addf %753, %752 : vector<1x32xf32>
    %755 = arith.divf %753, %754 : vector<1x32xf32>
    %756 = vector.extract_strided_slice %735 {offsets = [0, 32], sizes = [1, 32], strides = [1, 1]} : vector<1x96xf32> to vector<1x32xf32>
    %757 = vector.extract_strided_slice %747 {offsets = [0, 32], sizes = [1, 32], strides = [1, 1]} : vector<1x96xf32> to vector<1x32xf32>
    %758 = arith.addf %756, %757 : vector<1x32xf32>
    %759 = arith.negf %758 : vector<1x32xf32>
    %760 = math.exp %759 : vector<1x32xf32>
    %cst_126 = arith.constant 1.000000e+00 : f32
    %761 = vector.broadcast %cst_126 : f32 to vector<1x32xf32>
    %762 = arith.addf %761, %760 : vector<1x32xf32>
    %763 = arith.divf %761, %762 : vector<1x32xf32>
    %764 = vector.extract_strided_slice %735 {offsets = [0, 64], sizes = [1, 32], strides = [1, 1]} : vector<1x96xf32> to vector<1x32xf32>
    %765 = vector.extract_strided_slice %747 {offsets = [0, 64], sizes = [1, 32], strides = [1, 1]} : vector<1x96xf32> to vector<1x32xf32>
    %766 = arith.mulf %755, %765 : vector<1x32xf32>
    %767 = arith.addf %764, %766 : vector<1x32xf32>
    %768 = math.tanh %767 : vector<1x32xf32>
    %cst_127 = arith.constant 1.000000e+00 : f32
    %769 = vector.broadcast %cst_127 : f32 to vector<1x32xf32>
    %770 = arith.subf %769, %763 : vector<1x32xf32>
    %771 = arith.mulf %770, %768 : vector<1x32xf32>
    %772 = arith.mulf %763, %694 : vector<1x32xf32>
    %773 = arith.addf %771, %772 : vector<1x32xf32>
    %cst_128 = arith.constant dense<0.000000e+00> : vector<1x8xf32>
    %774 = tpu.matmul %773, %644, %cst_128 {dimension_numbers = #tpu.dot_dimension_numbers<[1], [1], [0], [0], [0, 0, 1, 0], [], []>} : vector<1x32xf32>, vector<8x32xf32>, vector<1x8xf32> -> vector<1x8xf32>
    %cst_129 = arith.constant dense<0xFF800000> : vector<1xf32>
    %775 = vector.multi_reduction <maximumf>, %774, %cst_129 [1] : vector<1x8xf32> to vector<1xf32>
    %776 = vector.shape_cast %775 : vector<1xf32> to vector<1x1xf32>
    %777 = vector.broadcast %776 : vector<1x1xf32> to vector<1x8xf32>
    %778 = arith.subf %774, %777 : vector<1x8xf32>
    %779 = math.exp %778 : vector<1x8xf32>
    %cst_130 = arith.constant dense<0.000000e+00> : vector<1xf32>
    %780 = vector.multi_reduction <add>, %779, %cst_130 [1] : vector<1x8xf32> to vector<1xf32>
    %781 = vector.shape_cast %780 : vector<1xf32> to vector<1x1xf32>
    %782 = tpu.reciprocal %781 {approx = true} : vector<1x1xf32> -> vector<1x1xf32>
    %783 = vector.broadcast %782 : vector<1x1xf32> to vector<1x8xf32>
    %784 = arith.mulf %779, %783 : vector<1x8xf32>
    %cst_131 = arith.constant dense<0.000000e+00> : vector<1x32xf32>
    %785 = tpu.matmul %784, %644, %cst_131 {dimension_numbers = #tpu.dot_dimension_numbers<[1], [0], [0], [1], [0, 0, 1, 1], [], []>} : vector<1x8xf32>, vector<8x32xf32>, vector<1x32xf32> -> vector<1x32xf32>
    %cst_132 = arith.constant dense<0.000000e+00> : vector<1x32xf32>
    %786 = tpu.matmul %773, %650, %cst_132 {dimension_numbers = #tpu.dot_dimension_numbers<[1], [0], [0], [1], [0, 0, 1, 1], [], []>} : vector<1x32xf32>, vector<32x32xf32>, vector<1x32xf32> -> vector<1x32xf32>
    %cst_133 = arith.constant dense<0.000000e+00> : vector<1x32xf32>
    %787 = tpu.matmul %785, %651, %cst_133 {dimension_numbers = #tpu.dot_dimension_numbers<[1], [0], [0], [1], [0, 0, 1, 1], [], []>} : vector<1x32xf32>, vector<32x32xf32>, vector<1x32xf32> -> vector<1x32xf32>
    %788 = arith.addf %786, %787 : vector<1x32xf32>
    %789 = arith.addf %788, %652 : vector<1x32xf32>
    %790 = math.tanh %789 : vector<1x32xf32>
    %cst_134 = arith.constant dense<0.000000e+00> : vector<1x64xf32>
    %791 = tpu.matmul %790, %653, %cst_134 {dimension_numbers = #tpu.dot_dimension_numbers<[1], [0], [0], [1], [0, 0, 1, 1], [], []>} : vector<1x32xf32>, vector<32x64xf32>, vector<1x64xf32> -> vector<1x64xf32>
    %792 = arith.addf %791, %654 : vector<1x64xf32>
    %cst_135 = arith.constant dense<0xFF800000> : vector<1xf32>
    %793 = vector.multi_reduction <maximumf>, %792, %cst_135 [1] : vector<1x64xf32> to vector<1xf32>
    %794 = vector.shape_cast %793 : vector<1xf32> to vector<1x1xf32>
    %795 = vector.broadcast %794 : vector<1x1xf32> to vector<1x64xf32>
    %796 = arith.subf %792, %795 : vector<1x64xf32>
    %797 = math.exp %796 : vector<1x64xf32>
    %cst_136 = arith.constant dense<0.000000e+00> : vector<1xf32>
    %798 = vector.multi_reduction <add>, %797, %cst_136 [1] : vector<1x64xf32> to vector<1xf32>
    %799 = vector.shape_cast %798 : vector<1xf32> to vector<1x1xf32>
    %cst_137 = arith.constant 1.000000e+00 : f32
    %800 = vector.broadcast %cst_137 : f32 to vector<1x1xf32>
    %801 = arith.divf %800, %799 : vector<1x1xf32>
    %802 = vector.broadcast %794 : vector<1x1xf32> to vector<1x64xf32>
    %803 = arith.cmpf oge, %792, %802 : vector<1x64xf32>
    %c64_i32_138 = arith.constant 64 : i32
    %804 = vector.broadcast %c64_i32_138 : i32 to vector<1x64xi32>
    %805 = arith.select %803, %658, %804 : vector<1x64xi1>, vector<1x64xi32>
    %cst_139 = arith.constant dense<2147483647> : vector<1xi32>
    %806 = vector.multi_reduction <minsi>, %805, %cst_139 [1] : vector<1x64xi32> to vector<1xi32>
    %807 = vector.shape_cast %806 : vector<1xi32> to vector<1x1xi32>
    %c63_i32_140 = arith.constant 63 : i32
    %808 = vector.broadcast %c63_i32_140 : i32 to vector<1x1xi32>
    %809 = arith.minsi %807, %808 : vector<1x1xi32>
    %810 = vector.broadcast %809 : vector<1x1xi32> to vector<1x64xi32>
    %811 = arith.cmpi eq, %658, %810 : vector<1x64xi32>
    %812 = arith.extui %811 : vector<1x64xi1> to vector<1x64xi32>
    %813 = arith.sitofp %812 : vector<1x64xi32> to vector<1x64xf32>
    %cst_141 = arith.constant dense<0.000000e+00> : vector<1x96xf32>
    %814 = tpu.matmul %813, %657, %cst_141 {dimension_numbers = #tpu.dot_dimension_numbers<[1], [0], [0], [1], [0, 0, 1, 1], [], []>} : vector<1x64xf32>, vector<64x96xf32>, vector<1x96xf32> -> vector<1x96xf32>
    %815 = vector.broadcast %c1_i32_123 : i32 to vector<1x128xi32>
    %816 = arith.cmpi eq, %659, %815 : vector<1x128xi32>
    %817 = vector.shape_cast %809 : vector<1x1xi32> to vector<1x1xi32>
    %818 = vector.broadcast %817 : vector<1x1xi32> to vector<1x128xi32>
    %819 = arith.select %816, %818, %740 : vector<1x128xi1>, vector<1x128xi32>
    %820 = vector.broadcast %c1_i32_123 : i32 to vector<1x128xi32>
    %821 = arith.cmpi eq, %659, %820 : vector<1x128xi32>
    %822 = vector.shape_cast %801 : vector<1x1xf32> to vector<1x1xf32>
    %823 = vector.broadcast %822 : vector<1x1xf32> to vector<1x128xf32>
    %824 = arith.select %821, %823, %745 : vector<1x128xi1>, vector<1x128xf32>
    %c2_i32_142 = arith.constant 2 : i32
    %cst_143 = arith.constant dense<0.000000e+00> : vector<1x96xf32>
    %825 = tpu.matmul %773, %646, %cst_143 {dimension_numbers = #tpu.dot_dimension_numbers<[1], [0], [0], [1], [0, 0, 1, 1], [], []>} : vector<1x32xf32>, vector<32x96xf32>, vector<1x96xf32> -> vector<1x96xf32>
    %826 = arith.addf %825, %647 : vector<1x96xf32>
    %827 = vector.extract_strided_slice %814 {offsets = [0, 0], sizes = [1, 32], strides = [1, 1]} : vector<1x96xf32> to vector<1x32xf32>
    %828 = vector.extract_strided_slice %826 {offsets = [0, 0], sizes = [1, 32], strides = [1, 1]} : vector<1x96xf32> to vector<1x32xf32>
    %829 = arith.addf %827, %828 : vector<1x32xf32>
    %830 = arith.negf %829 : vector<1x32xf32>
    %831 = math.exp %830 : vector<1x32xf32>
    %cst_144 = arith.constant 1.000000e+00 : f32
    %832 = vector.broadcast %cst_144 : f32 to vector<1x32xf32>
    %833 = arith.addf %832, %831 : vector<1x32xf32>
    %834 = arith.divf %832, %833 : vector<1x32xf32>
    %835 = vector.extract_strided_slice %814 {offsets = [0, 32], sizes = [1, 32], strides = [1, 1]} : vector<1x96xf32> to vector<1x32xf32>
    %836 = vector.extract_strided_slice %826 {offsets = [0, 32], sizes = [1, 32], strides = [1, 1]} : vector<1x96xf32> to vector<1x32xf32>
    %837 = arith.addf %835, %836 : vector<1x32xf32>
    %838 = arith.negf %837 : vector<1x32xf32>
    %839 = math.exp %838 : vector<1x32xf32>
    %cst_145 = arith.constant 1.000000e+00 : f32
    %840 = vector.broadcast %cst_145 : f32 to vector<1x32xf32>
    %841 = arith.addf %840, %839 : vector<1x32xf32>
    %842 = arith.divf %840, %841 : vector<1x32xf32>
    %843 = vector.extract_strided_slice %814 {offsets = [0, 64], sizes = [1, 32], strides = [1, 1]} : vector<1x96xf32> to vector<1x32xf32>
    %844 = vector.extract_strided_slice %826 {offsets = [0, 64], sizes = [1, 32], strides = [1, 1]} : vector<1x96xf32> to vector<1x32xf32>
    %845 = arith.mulf %834, %844 : vector<1x32xf32>
    %846 = arith.addf %843, %845 : vector<1x32xf32>
    %847 = math.tanh %846 : vector<1x32xf32>
    %cst_146 = arith.constant 1.000000e+00 : f32
    %848 = vector.broadcast %cst_146 : f32 to vector<1x32xf32>
    %849 = arith.subf %848, %842 : vector<1x32xf32>
    %850 = arith.mulf %849, %847 : vector<1x32xf32>
    %851 = arith.mulf %842, %773 : vector<1x32xf32>
    %852 = arith.addf %850, %851 : vector<1x32xf32>
    %cst_147 = arith.constant dense<0.000000e+00> : vector<1x8xf32>
    %853 = tpu.matmul %852, %644, %cst_147 {dimension_numbers = #tpu.dot_dimension_numbers<[1], [1], [0], [0], [0, 0, 1, 0], [], []>} : vector<1x32xf32>, vector<8x32xf32>, vector<1x8xf32> -> vector<1x8xf32>
    %cst_148 = arith.constant dense<0xFF800000> : vector<1xf32>
    %854 = vector.multi_reduction <maximumf>, %853, %cst_148 [1] : vector<1x8xf32> to vector<1xf32>
    %855 = vector.shape_cast %854 : vector<1xf32> to vector<1x1xf32>
    %856 = vector.broadcast %855 : vector<1x1xf32> to vector<1x8xf32>
    %857 = arith.subf %853, %856 : vector<1x8xf32>
    %858 = math.exp %857 : vector<1x8xf32>
    %cst_149 = arith.constant dense<0.000000e+00> : vector<1xf32>
    %859 = vector.multi_reduction <add>, %858, %cst_149 [1] : vector<1x8xf32> to vector<1xf32>
    %860 = vector.shape_cast %859 : vector<1xf32> to vector<1x1xf32>
    %861 = tpu.reciprocal %860 {approx = true} : vector<1x1xf32> -> vector<1x1xf32>
    %862 = vector.broadcast %861 : vector<1x1xf32> to vector<1x8xf32>
    %863 = arith.mulf %858, %862 : vector<1x8xf32>
    %cst_150 = arith.constant dense<0.000000e+00> : vector<1x32xf32>
    %864 = tpu.matmul %863, %644, %cst_150 {dimension_numbers = #tpu.dot_dimension_numbers<[1], [0], [0], [1], [0, 0, 1, 1], [], []>} : vector<1x8xf32>, vector<8x32xf32>, vector<1x32xf32> -> vector<1x32xf32>
    %cst_151 = arith.constant dense<0.000000e+00> : vector<1x32xf32>
    %865 = tpu.matmul %852, %650, %cst_151 {dimension_numbers = #tpu.dot_dimension_numbers<[1], [0], [0], [1], [0, 0, 1, 1], [], []>} : vector<1x32xf32>, vector<32x32xf32>, vector<1x32xf32> -> vector<1x32xf32>
    %cst_152 = arith.constant dense<0.000000e+00> : vector<1x32xf32>
    %866 = tpu.matmul %864, %651, %cst_152 {dimension_numbers = #tpu.dot_dimension_numbers<[1], [0], [0], [1], [0, 0, 1, 1], [], []>} : vector<1x32xf32>, vector<32x32xf32>, vector<1x32xf32> -> vector<1x32xf32>
    %867 = arith.addf %865, %866 : vector<1x32xf32>
    %868 = arith.addf %867, %652 : vector<1x32xf32>
    %869 = math.tanh %868 : vector<1x32xf32>
    %cst_153 = arith.constant dense<0.000000e+00> : vector<1x64xf32>
    %870 = tpu.matmul %869, %653, %cst_153 {dimension_numbers = #tpu.dot_dimension_numbers<[1], [0], [0], [1], [0, 0, 1, 1], [], []>} : vector<1x32xf32>, vector<32x64xf32>, vector<1x64xf32> -> vector<1x64xf32>
    %871 = arith.addf %870, %654 : vector<1x64xf32>
    %cst_154 = arith.constant dense<0xFF800000> : vector<1xf32>
    %872 = vector.multi_reduction <maximumf>, %871, %cst_154 [1] : vector<1x64xf32> to vector<1xf32>
    %873 = vector.shape_cast %872 : vector<1xf32> to vector<1x1xf32>
    %874 = vector.broadcast %873 : vector<1x1xf32> to vector<1x64xf32>
    %875 = arith.subf %871, %874 : vector<1x64xf32>
    %876 = math.exp %875 : vector<1x64xf32>
    %cst_155 = arith.constant dense<0.000000e+00> : vector<1xf32>
    %877 = vector.multi_reduction <add>, %876, %cst_155 [1] : vector<1x64xf32> to vector<1xf32>
    %878 = vector.shape_cast %877 : vector<1xf32> to vector<1x1xf32>
    %cst_156 = arith.constant 1.000000e+00 : f32
    %879 = vector.broadcast %cst_156 : f32 to vector<1x1xf32>
    %880 = arith.divf %879, %878 : vector<1x1xf32>
    %881 = vector.broadcast %873 : vector<1x1xf32> to vector<1x64xf32>
    %882 = arith.cmpf oge, %871, %881 : vector<1x64xf32>
    %c64_i32_157 = arith.constant 64 : i32
    %883 = vector.broadcast %c64_i32_157 : i32 to vector<1x64xi32>
    %884 = arith.select %882, %658, %883 : vector<1x64xi1>, vector<1x64xi32>
    %cst_158 = arith.constant dense<2147483647> : vector<1xi32>
    %885 = vector.multi_reduction <minsi>, %884, %cst_158 [1] : vector<1x64xi32> to vector<1xi32>
    %886 = vector.shape_cast %885 : vector<1xi32> to vector<1x1xi32>
    %c63_i32_159 = arith.constant 63 : i32
    %887 = vector.broadcast %c63_i32_159 : i32 to vector<1x1xi32>
    %888 = arith.minsi %886, %887 : vector<1x1xi32>
    %889 = vector.broadcast %888 : vector<1x1xi32> to vector<1x64xi32>
    %890 = arith.cmpi eq, %658, %889 : vector<1x64xi32>
    %891 = arith.extui %890 : vector<1x64xi1> to vector<1x64xi32>
    %892 = arith.sitofp %891 : vector<1x64xi32> to vector<1x64xf32>
    %cst_160 = arith.constant dense<0.000000e+00> : vector<1x96xf32>
    %893 = tpu.matmul %892, %657, %cst_160 {dimension_numbers = #tpu.dot_dimension_numbers<[1], [0], [0], [1], [0, 0, 1, 1], [], []>} : vector<1x64xf32>, vector<64x96xf32>, vector<1x96xf32> -> vector<1x96xf32>
    %894 = vector.broadcast %c2_i32_142 : i32 to vector<1x128xi32>
    %895 = arith.cmpi eq, %659, %894 : vector<1x128xi32>
    %896 = vector.shape_cast %888 : vector<1x1xi32> to vector<1x1xi32>
    %897 = vector.broadcast %896 : vector<1x1xi32> to vector<1x128xi32>
    %898 = arith.select %895, %897, %819 : vector<1x128xi1>, vector<1x128xi32>
    %899 = vector.broadcast %c2_i32_142 : i32 to vector<1x128xi32>
    %900 = arith.cmpi eq, %659, %899 : vector<1x128xi32>
    %901 = vector.shape_cast %880 : vector<1x1xf32> to vector<1x1xf32>
    %902 = vector.broadcast %901 : vector<1x1xf32> to vector<1x128xf32>
    %903 = arith.select %900, %902, %824 : vector<1x128xi1>, vector<1x128xf32>
    %c3_i32_161 = arith.constant 3 : i32
    %cst_162 = arith.constant dense<0.000000e+00> : vector<1x96xf32>
    %904 = tpu.matmul %852, %646, %cst_162 {dimension_numbers = #tpu.dot_dimension_numbers<[1], [0], [0], [1], [0, 0, 1, 1], [], []>} : vector<1x32xf32>, vector<32x96xf32>, vector<1x96xf32> -> vector<1x96xf32>
    %905 = arith.addf %904, %647 : vector<1x96xf32>
    %906 = vector.extract_strided_slice %893 {offsets = [0, 0], sizes = [1, 32], strides = [1, 1]} : vector<1x96xf32> to vector<1x32xf32>
    %907 = vector.extract_strided_slice %905 {offsets = [0, 0], sizes = [1, 32], strides = [1, 1]} : vector<1x96xf32> to vector<1x32xf32>
    %908 = arith.addf %906, %907 : vector<1x32xf32>
    %909 = arith.negf %908 : vector<1x32xf32>
    %910 = math.exp %909 : vector<1x32xf32>
    %cst_163 = arith.constant 1.000000e+00 : f32
    %911 = vector.broadcast %cst_163 : f32 to vector<1x32xf32>
    %912 = arith.addf %911, %910 : vector<1x32xf32>
    %913 = arith.divf %911, %912 : vector<1x32xf32>
    %914 = vector.extract_strided_slice %893 {offsets = [0, 32], sizes = [1, 32], strides = [1, 1]} : vector<1x96xf32> to vector<1x32xf32>
    %915 = vector.extract_strided_slice %905 {offsets = [0, 32], sizes = [1, 32], strides = [1, 1]} : vector<1x96xf32> to vector<1x32xf32>
    %916 = arith.addf %914, %915 : vector<1x32xf32>
    %917 = arith.negf %916 : vector<1x32xf32>
    %918 = math.exp %917 : vector<1x32xf32>
    %cst_164 = arith.constant 1.000000e+00 : f32
    %919 = vector.broadcast %cst_164 : f32 to vector<1x32xf32>
    %920 = arith.addf %919, %918 : vector<1x32xf32>
    %921 = arith.divf %919, %920 : vector<1x32xf32>
    %922 = vector.extract_strided_slice %893 {offsets = [0, 64], sizes = [1, 32], strides = [1, 1]} : vector<1x96xf32> to vector<1x32xf32>
    %923 = vector.extract_strided_slice %905 {offsets = [0, 64], sizes = [1, 32], strides = [1, 1]} : vector<1x96xf32> to vector<1x32xf32>
    %924 = arith.mulf %913, %923 : vector<1x32xf32>
    %925 = arith.addf %922, %924 : vector<1x32xf32>
    %926 = math.tanh %925 : vector<1x32xf32>
    %cst_165 = arith.constant 1.000000e+00 : f32
    %927 = vector.broadcast %cst_165 : f32 to vector<1x32xf32>
    %928 = arith.subf %927, %921 : vector<1x32xf32>
    %929 = arith.mulf %928, %926 : vector<1x32xf32>
    %930 = arith.mulf %921, %852 : vector<1x32xf32>
    %931 = arith.addf %929, %930 : vector<1x32xf32>
    %cst_166 = arith.constant dense<0.000000e+00> : vector<1x8xf32>
    %932 = tpu.matmul %931, %644, %cst_166 {dimension_numbers = #tpu.dot_dimension_numbers<[1], [1], [0], [0], [0, 0, 1, 0], [], []>} : vector<1x32xf32>, vector<8x32xf32>, vector<1x8xf32> -> vector<1x8xf32>
    %cst_167 = arith.constant dense<0xFF800000> : vector<1xf32>
    %933 = vector.multi_reduction <maximumf>, %932, %cst_167 [1] : vector<1x8xf32> to vector<1xf32>
    %934 = vector.shape_cast %933 : vector<1xf32> to vector<1x1xf32>
    %935 = vector.broadcast %934 : vector<1x1xf32> to vector<1x8xf32>
    %936 = arith.subf %932, %935 : vector<1x8xf32>
    %937 = math.exp %936 : vector<1x8xf32>
    %cst_168 = arith.constant dense<0.000000e+00> : vector<1xf32>
    %938 = vector.multi_reduction <add>, %937, %cst_168 [1] : vector<1x8xf32> to vector<1xf32>
    %939 = vector.shape_cast %938 : vector<1xf32> to vector<1x1xf32>
    %940 = tpu.reciprocal %939 {approx = true} : vector<1x1xf32> -> vector<1x1xf32>
    %941 = vector.broadcast %940 : vector<1x1xf32> to vector<1x8xf32>
    %942 = arith.mulf %937, %941 : vector<1x8xf32>
    %cst_169 = arith.constant dense<0.000000e+00> : vector<1x32xf32>
    %943 = tpu.matmul %942, %644, %cst_169 {dimension_numbers = #tpu.dot_dimension_numbers<[1], [0], [0], [1], [0, 0, 1, 1], [], []>} : vector<1x8xf32>, vector<8x32xf32>, vector<1x32xf32> -> vector<1x32xf32>
    %cst_170 = arith.constant dense<0.000000e+00> : vector<1x32xf32>
    %944 = tpu.matmul %931, %650, %cst_170 {dimension_numbers = #tpu.dot_dimension_numbers<[1], [0], [0], [1], [0, 0, 1, 1], [], []>} : vector<1x32xf32>, vector<32x32xf32>, vector<1x32xf32> -> vector<1x32xf32>
    %cst_171 = arith.constant dense<0.000000e+00> : vector<1x32xf32>
    %945 = tpu.matmul %943, %651, %cst_171 {dimension_numbers = #tpu.dot_dimension_numbers<[1], [0], [0], [1], [0, 0, 1, 1], [], []>} : vector<1x32xf32>, vector<32x32xf32>, vector<1x32xf32> -> vector<1x32xf32>
    %946 = arith.addf %944, %945 : vector<1x32xf32>
    %947 = arith.addf %946, %652 : vector<1x32xf32>
    %948 = math.tanh %947 : vector<1x32xf32>
    %cst_172 = arith.constant dense<0.000000e+00> : vector<1x64xf32>
    %949 = tpu.matmul %948, %653, %cst_172 {dimension_numbers = #tpu.dot_dimension_numbers<[1], [0], [0], [1], [0, 0, 1, 1], [], []>} : vector<1x32xf32>, vector<32x64xf32>, vector<1x64xf32> -> vector<1x64xf32>
    %950 = arith.addf %949, %654 : vector<1x64xf32>
    %cst_173 = arith.constant dense<0xFF800000> : vector<1xf32>
    %951 = vector.multi_reduction <maximumf>, %950, %cst_173 [1] : vector<1x64xf32> to vector<1xf32>
    %952 = vector.shape_cast %951 : vector<1xf32> to vector<1x1xf32>
    %953 = vector.broadcast %952 : vector<1x1xf32> to vector<1x64xf32>
    %954 = arith.subf %950, %953 : vector<1x64xf32>
    %955 = math.exp %954 : vector<1x64xf32>
    %cst_174 = arith.constant dense<0.000000e+00> : vector<1xf32>
    %956 = vector.multi_reduction <add>, %955, %cst_174 [1] : vector<1x64xf32> to vector<1xf32>
    %957 = vector.shape_cast %956 : vector<1xf32> to vector<1x1xf32>
    %cst_175 = arith.constant 1.000000e+00 : f32
    %958 = vector.broadcast %cst_175 : f32 to vector<1x1xf32>
    %959 = arith.divf %958, %957 : vector<1x1xf32>
    %960 = vector.broadcast %952 : vector<1x1xf32> to vector<1x64xf32>
    %961 = arith.cmpf oge, %950, %960 : vector<1x64xf32>
    %c64_i32_176 = arith.constant 64 : i32
    %962 = vector.broadcast %c64_i32_176 : i32 to vector<1x64xi32>
    %963 = arith.select %961, %658, %962 : vector<1x64xi1>, vector<1x64xi32>
    %cst_177 = arith.constant dense<2147483647> : vector<1xi32>
    %964 = vector.multi_reduction <minsi>, %963, %cst_177 [1] : vector<1x64xi32> to vector<1xi32>
    %965 = vector.shape_cast %964 : vector<1xi32> to vector<1x1xi32>
    %c63_i32_178 = arith.constant 63 : i32
    %966 = vector.broadcast %c63_i32_178 : i32 to vector<1x1xi32>
    %967 = arith.minsi %965, %966 : vector<1x1xi32>
    %968 = vector.broadcast %967 : vector<1x1xi32> to vector<1x64xi32>
    %969 = arith.cmpi eq, %658, %968 : vector<1x64xi32>
    %970 = arith.extui %969 : vector<1x64xi1> to vector<1x64xi32>
    %971 = arith.sitofp %970 : vector<1x64xi32> to vector<1x64xf32>
    %cst_179 = arith.constant dense<0.000000e+00> : vector<1x96xf32>
    %972 = tpu.matmul %971, %657, %cst_179 {dimension_numbers = #tpu.dot_dimension_numbers<[1], [0], [0], [1], [0, 0, 1, 1], [], []>} : vector<1x64xf32>, vector<64x96xf32>, vector<1x96xf32> -> vector<1x96xf32>
    %973 = vector.broadcast %c3_i32_161 : i32 to vector<1x128xi32>
    %974 = arith.cmpi eq, %659, %973 : vector<1x128xi32>
    %975 = vector.shape_cast %967 : vector<1x1xi32> to vector<1x1xi32>
    %976 = vector.broadcast %975 : vector<1x1xi32> to vector<1x128xi32>
    %977 = arith.select %974, %976, %898 : vector<1x128xi1>, vector<1x128xi32>
    %978 = vector.broadcast %c3_i32_161 : i32 to vector<1x128xi32>
    %979 = arith.cmpi eq, %659, %978 : vector<1x128xi32>
    %980 = vector.shape_cast %959 : vector<1x1xf32> to vector<1x1xf32>
    %981 = vector.broadcast %980 : vector<1x1xf32> to vector<1x128xf32>
    %982 = arith.select %979, %981, %903 : vector<1x128xi1>, vector<1x128xf32>
    %c4_i32_180 = arith.constant 4 : i32
    %cst_181 = arith.constant dense<0.000000e+00> : vector<1x96xf32>
    %983 = tpu.matmul %931, %646, %cst_181 {dimension_numbers = #tpu.dot_dimension_numbers<[1], [0], [0], [1], [0, 0, 1, 1], [], []>} : vector<1x32xf32>, vector<32x96xf32>, vector<1x96xf32> -> vector<1x96xf32>
    %984 = arith.addf %983, %647 : vector<1x96xf32>
    %985 = vector.extract_strided_slice %972 {offsets = [0, 0], sizes = [1, 32], strides = [1, 1]} : vector<1x96xf32> to vector<1x32xf32>
    %986 = vector.extract_strided_slice %984 {offsets = [0, 0], sizes = [1, 32], strides = [1, 1]} : vector<1x96xf32> to vector<1x32xf32>
    %987 = arith.addf %985, %986 : vector<1x32xf32>
    %988 = arith.negf %987 : vector<1x32xf32>
    %989 = math.exp %988 : vector<1x32xf32>
    %cst_182 = arith.constant 1.000000e+00 : f32
    %990 = vector.broadcast %cst_182 : f32 to vector<1x32xf32>
    %991 = arith.addf %990, %989 : vector<1x32xf32>
    %992 = arith.divf %990, %991 : vector<1x32xf32>
    %993 = vector.extract_strided_slice %972 {offsets = [0, 32], sizes = [1, 32], strides = [1, 1]} : vector<1x96xf32> to vector<1x32xf32>
    %994 = vector.extract_strided_slice %984 {offsets = [0, 32], sizes = [1, 32], strides = [1, 1]} : vector<1x96xf32> to vector<1x32xf32>
    %995 = arith.addf %993, %994 : vector<1x32xf32>
    %996 = arith.negf %995 : vector<1x32xf32>
    %997 = math.exp %996 : vector<1x32xf32>
    %cst_183 = arith.constant 1.000000e+00 : f32
    %998 = vector.broadcast %cst_183 : f32 to vector<1x32xf32>
    %999 = arith.addf %998, %997 : vector<1x32xf32>
    %1000 = arith.divf %998, %999 : vector<1x32xf32>
    %1001 = vector.extract_strided_slice %972 {offsets = [0, 64], sizes = [1, 32], strides = [1, 1]} : vector<1x96xf32> to vector<1x32xf32>
    %1002 = vector.extract_strided_slice %984 {offsets = [0, 64], sizes = [1, 32], strides = [1, 1]} : vector<1x96xf32> to vector<1x32xf32>
    %1003 = arith.mulf %992, %1002 : vector<1x32xf32>
    %1004 = arith.addf %1001, %1003 : vector<1x32xf32>
    %1005 = math.tanh %1004 : vector<1x32xf32>
    %cst_184 = arith.constant 1.000000e+00 : f32
    %1006 = vector.broadcast %cst_184 : f32 to vector<1x32xf32>
    %1007 = arith.subf %1006, %1000 : vector<1x32xf32>
    %1008 = arith.mulf %1007, %1005 : vector<1x32xf32>
    %1009 = arith.mulf %1000, %931 : vector<1x32xf32>
    %1010 = arith.addf %1008, %1009 : vector<1x32xf32>
    %cst_185 = arith.constant dense<0.000000e+00> : vector<1x8xf32>
    %1011 = tpu.matmul %1010, %644, %cst_185 {dimension_numbers = #tpu.dot_dimension_numbers<[1], [1], [0], [0], [0, 0, 1, 0], [], []>} : vector<1x32xf32>, vector<8x32xf32>, vector<1x8xf32> -> vector<1x8xf32>
    %cst_186 = arith.constant dense<0xFF800000> : vector<1xf32>
    %1012 = vector.multi_reduction <maximumf>, %1011, %cst_186 [1] : vector<1x8xf32> to vector<1xf32>
    %1013 = vector.shape_cast %1012 : vector<1xf32> to vector<1x1xf32>
    %1014 = vector.broadcast %1013 : vector<1x1xf32> to vector<1x8xf32>
    %1015 = arith.subf %1011, %1014 : vector<1x8xf32>
    %1016 = math.exp %1015 : vector<1x8xf32>
    %cst_187 = arith.constant dense<0.000000e+00> : vector<1xf32>
    %1017 = vector.multi_reduction <add>, %1016, %cst_187 [1] : vector<1x8xf32> to vector<1xf32>
    %1018 = vector.shape_cast %1017 : vector<1xf32> to vector<1x1xf32>
    %1019 = tpu.reciprocal %1018 {approx = true} : vector<1x1xf32> -> vector<1x1xf32>
    %1020 = vector.broadcast %1019 : vector<1x1xf32> to vector<1x8xf32>
    %1021 = arith.mulf %1016, %1020 : vector<1x8xf32>
    %cst_188 = arith.constant dense<0.000000e+00> : vector<1x32xf32>
    %1022 = tpu.matmul %1021, %644, %cst_188 {dimension_numbers = #tpu.dot_dimension_numbers<[1], [0], [0], [1], [0, 0, 1, 1], [], []>} : vector<1x8xf32>, vector<8x32xf32>, vector<1x32xf32> -> vector<1x32xf32>
    %cst_189 = arith.constant dense<0.000000e+00> : vector<1x32xf32>
    %1023 = tpu.matmul %1010, %650, %cst_189 {dimension_numbers = #tpu.dot_dimension_numbers<[1], [0], [0], [1], [0, 0, 1, 1], [], []>} : vector<1x32xf32>, vector<32x32xf32>, vector<1x32xf32> -> vector<1x32xf32>
    %cst_190 = arith.constant dense<0.000000e+00> : vector<1x32xf32>
    %1024 = tpu.matmul %1022, %651, %cst_190 {dimension_numbers = #tpu.dot_dimension_numbers<[1], [0], [0], [1], [0, 0, 1, 1], [], []>} : vector<1x32xf32>, vector<32x32xf32>, vector<1x32xf32> -> vector<1x32xf32>
    %1025 = arith.addf %1023, %1024 : vector<1x32xf32>
    %1026 = arith.addf %1025, %652 : vector<1x32xf32>
    %1027 = math.tanh %1026 : vector<1x32xf32>
    %cst_191 = arith.constant dense<0.000000e+00> : vector<1x64xf32>
    %1028 = tpu.matmul %1027, %653, %cst_191 {dimension_numbers = #tpu.dot_dimension_numbers<[1], [0], [0], [1], [0, 0, 1, 1], [], []>} : vector<1x32xf32>, vector<32x64xf32>, vector<1x64xf32> -> vector<1x64xf32>
    %1029 = arith.addf %1028, %654 : vector<1x64xf32>
    %cst_192 = arith.constant dense<0xFF800000> : vector<1xf32>
    %1030 = vector.multi_reduction <maximumf>, %1029, %cst_192 [1] : vector<1x64xf32> to vector<1xf32>
    %1031 = vector.shape_cast %1030 : vector<1xf32> to vector<1x1xf32>
    %1032 = vector.broadcast %1031 : vector<1x1xf32> to vector<1x64xf32>
    %1033 = arith.subf %1029, %1032 : vector<1x64xf32>
    %1034 = math.exp %1033 : vector<1x64xf32>
    %cst_193 = arith.constant dense<0.000000e+00> : vector<1xf32>
    %1035 = vector.multi_reduction <add>, %1034, %cst_193 [1] : vector<1x64xf32> to vector<1xf32>
    %1036 = vector.shape_cast %1035 : vector<1xf32> to vector<1x1xf32>
    %cst_194 = arith.constant 1.000000e+00 : f32
    %1037 = vector.broadcast %cst_194 : f32 to vector<1x1xf32>
    %1038 = arith.divf %1037, %1036 : vector<1x1xf32>
    %1039 = vector.broadcast %1031 : vector<1x1xf32> to vector<1x64xf32>
    %1040 = arith.cmpf oge, %1029, %1039 : vector<1x64xf32>
    %c64_i32_195 = arith.constant 64 : i32
    %1041 = vector.broadcast %c64_i32_195 : i32 to vector<1x64xi32>
    %1042 = arith.select %1040, %658, %1041 : vector<1x64xi1>, vector<1x64xi32>
    %cst_196 = arith.constant dense<2147483647> : vector<1xi32>
    %1043 = vector.multi_reduction <minsi>, %1042, %cst_196 [1] : vector<1x64xi32> to vector<1xi32>
    %1044 = vector.shape_cast %1043 : vector<1xi32> to vector<1x1xi32>
    %c63_i32_197 = arith.constant 63 : i32
    %1045 = vector.broadcast %c63_i32_197 : i32 to vector<1x1xi32>
    %1046 = arith.minsi %1044, %1045 : vector<1x1xi32>
    %1047 = vector.broadcast %1046 : vector<1x1xi32> to vector<1x64xi32>
    %1048 = arith.cmpi eq, %658, %1047 : vector<1x64xi32>
    %1049 = arith.extui %1048 : vector<1x64xi1> to vector<1x64xi32>
    %1050 = arith.sitofp %1049 : vector<1x64xi32> to vector<1x64xf32>
    %cst_198 = arith.constant dense<0.000000e+00> : vector<1x96xf32>
    %1051 = tpu.matmul %1050, %657, %cst_198 {dimension_numbers = #tpu.dot_dimension_numbers<[1], [0], [0], [1], [0, 0, 1, 1], [], []>} : vector<1x64xf32>, vector<64x96xf32>, vector<1x96xf32> -> vector<1x96xf32>
    %1052 = vector.broadcast %c4_i32_180 : i32 to vector<1x128xi32>
    %1053 = arith.cmpi eq, %659, %1052 : vector<1x128xi32>
    %1054 = vector.shape_cast %1046 : vector<1x1xi32> to vector<1x1xi32>
    %1055 = vector.broadcast %1054 : vector<1x1xi32> to vector<1x128xi32>
    %1056 = arith.select %1053, %1055, %977 : vector<1x128xi1>, vector<1x128xi32>
    %1057 = vector.broadcast %c4_i32_180 : i32 to vector<1x128xi32>
    %1058 = arith.cmpi eq, %659, %1057 : vector<1x128xi32>
    %1059 = vector.shape_cast %1038 : vector<1x1xf32> to vector<1x1xf32>
    %1060 = vector.broadcast %1059 : vector<1x1xf32> to vector<1x128xf32>
    %1061 = arith.select %1058, %1060, %982 : vector<1x128xi1>, vector<1x128xf32>
    %c5_i32_199 = arith.constant 5 : i32
    %cst_200 = arith.constant dense<0.000000e+00> : vector<1x96xf32>
    %1062 = tpu.matmul %1010, %646, %cst_200 {dimension_numbers = #tpu.dot_dimension_numbers<[1], [0], [0], [1], [0, 0, 1, 1], [], []>} : vector<1x32xf32>, vector<32x96xf32>, vector<1x96xf32> -> vector<1x96xf32>
    %1063 = arith.addf %1062, %647 : vector<1x96xf32>
    %1064 = vector.extract_strided_slice %1051 {offsets = [0, 0], sizes = [1, 32], strides = [1, 1]} : vector<1x96xf32> to vector<1x32xf32>
    %1065 = vector.extract_strided_slice %1063 {offsets = [0, 0], sizes = [1, 32], strides = [1, 1]} : vector<1x96xf32> to vector<1x32xf32>
    %1066 = arith.addf %1064, %1065 : vector<1x32xf32>
    %1067 = arith.negf %1066 : vector<1x32xf32>
    %1068 = math.exp %1067 : vector<1x32xf32>
    %cst_201 = arith.constant 1.000000e+00 : f32
    %1069 = vector.broadcast %cst_201 : f32 to vector<1x32xf32>
    %1070 = arith.addf %1069, %1068 : vector<1x32xf32>
    %1071 = arith.divf %1069, %1070 : vector<1x32xf32>
    %1072 = vector.extract_strided_slice %1051 {offsets = [0, 32], sizes = [1, 32], strides = [1, 1]} : vector<1x96xf32> to vector<1x32xf32>
    %1073 = vector.extract_strided_slice %1063 {offsets = [0, 32], sizes = [1, 32], strides = [1, 1]} : vector<1x96xf32> to vector<1x32xf32>
    %1074 = arith.addf %1072, %1073 : vector<1x32xf32>
    %1075 = arith.negf %1074 : vector<1x32xf32>
    %1076 = math.exp %1075 : vector<1x32xf32>
    %cst_202 = arith.constant 1.000000e+00 : f32
    %1077 = vector.broadcast %cst_202 : f32 to vector<1x32xf32>
    %1078 = arith.addf %1077, %1076 : vector<1x32xf32>
    %1079 = arith.divf %1077, %1078 : vector<1x32xf32>
    %1080 = vector.extract_strided_slice %1051 {offsets = [0, 64], sizes = [1, 32], strides = [1, 1]} : vector<1x96xf32> to vector<1x32xf32>
    %1081 = vector.extract_strided_slice %1063 {offsets = [0, 64], sizes = [1, 32], strides = [1, 1]} : vector<1x96xf32> to vector<1x32xf32>
    %1082 = arith.mulf %1071, %1081 : vector<1x32xf32>
    %1083 = arith.addf %1080, %1082 : vector<1x32xf32>
    %1084 = math.tanh %1083 : vector<1x32xf32>
    %cst_203 = arith.constant 1.000000e+00 : f32
    %1085 = vector.broadcast %cst_203 : f32 to vector<1x32xf32>
    %1086 = arith.subf %1085, %1079 : vector<1x32xf32>
    %1087 = arith.mulf %1086, %1084 : vector<1x32xf32>
    %1088 = arith.mulf %1079, %1010 : vector<1x32xf32>
    %1089 = arith.addf %1087, %1088 : vector<1x32xf32>
    %cst_204 = arith.constant dense<0.000000e+00> : vector<1x8xf32>
    %1090 = tpu.matmul %1089, %644, %cst_204 {dimension_numbers = #tpu.dot_dimension_numbers<[1], [1], [0], [0], [0, 0, 1, 0], [], []>} : vector<1x32xf32>, vector<8x32xf32>, vector<1x8xf32> -> vector<1x8xf32>
    %cst_205 = arith.constant dense<0xFF800000> : vector<1xf32>
    %1091 = vector.multi_reduction <maximumf>, %1090, %cst_205 [1] : vector<1x8xf32> to vector<1xf32>
    %1092 = vector.shape_cast %1091 : vector<1xf32> to vector<1x1xf32>
    %1093 = vector.broadcast %1092 : vector<1x1xf32> to vector<1x8xf32>
    %1094 = arith.subf %1090, %1093 : vector<1x8xf32>
    %1095 = math.exp %1094 : vector<1x8xf32>
    %cst_206 = arith.constant dense<0.000000e+00> : vector<1xf32>
    %1096 = vector.multi_reduction <add>, %1095, %cst_206 [1] : vector<1x8xf32> to vector<1xf32>
    %1097 = vector.shape_cast %1096 : vector<1xf32> to vector<1x1xf32>
    %1098 = tpu.reciprocal %1097 {approx = true} : vector<1x1xf32> -> vector<1x1xf32>
    %1099 = vector.broadcast %1098 : vector<1x1xf32> to vector<1x8xf32>
    %1100 = arith.mulf %1095, %1099 : vector<1x8xf32>
    %cst_207 = arith.constant dense<0.000000e+00> : vector<1x32xf32>
    %1101 = tpu.matmul %1100, %644, %cst_207 {dimension_numbers = #tpu.dot_dimension_numbers<[1], [0], [0], [1], [0, 0, 1, 1], [], []>} : vector<1x8xf32>, vector<8x32xf32>, vector<1x32xf32> -> vector<1x32xf32>
    %cst_208 = arith.constant dense<0.000000e+00> : vector<1x32xf32>
    %1102 = tpu.matmul %1089, %650, %cst_208 {dimension_numbers = #tpu.dot_dimension_numbers<[1], [0], [0], [1], [0, 0, 1, 1], [], []>} : vector<1x32xf32>, vector<32x32xf32>, vector<1x32xf32> -> vector<1x32xf32>
    %cst_209 = arith.constant dense<0.000000e+00> : vector<1x32xf32>
    %1103 = tpu.matmul %1101, %651, %cst_209 {dimension_numbers = #tpu.dot_dimension_numbers<[1], [0], [0], [1], [0, 0, 1, 1], [], []>} : vector<1x32xf32>, vector<32x32xf32>, vector<1x32xf32> -> vector<1x32xf32>
    %1104 = arith.addf %1102, %1103 : vector<1x32xf32>
    %1105 = arith.addf %1104, %652 : vector<1x32xf32>
    %1106 = math.tanh %1105 : vector<1x32xf32>
    %cst_210 = arith.constant dense<0.000000e+00> : vector<1x64xf32>
    %1107 = tpu.matmul %1106, %653, %cst_210 {dimension_numbers = #tpu.dot_dimension_numbers<[1], [0], [0], [1], [0, 0, 1, 1], [], []>} : vector<1x32xf32>, vector<32x64xf32>, vector<1x64xf32> -> vector<1x64xf32>
    %1108 = arith.addf %1107, %654 : vector<1x64xf32>
    %cst_211 = arith.constant dense<0xFF800000> : vector<1xf32>
    %1109 = vector.multi_reduction <maximumf>, %1108, %cst_211 [1] : vector<1x64xf32> to vector<1xf32>
    %1110 = vector.shape_cast %1109 : vector<1xf32> to vector<1x1xf32>
    %1111 = vector.broadcast %1110 : vector<1x1xf32> to vector<1x64xf32>
    %1112 = arith.subf %1108, %1111 : vector<1x64xf32>
    %1113 = math.exp %1112 : vector<1x64xf32>
    %cst_212 = arith.constant dense<0.000000e+00> : vector<1xf32>
    %1114 = vector.multi_reduction <add>, %1113, %cst_212 [1] : vector<1x64xf32> to vector<1xf32>
    %1115 = vector.shape_cast %1114 : vector<1xf32> to vector<1x1xf32>
    %cst_213 = arith.constant 1.000000e+00 : f32
    %1116 = vector.broadcast %cst_213 : f32 to vector<1x1xf32>
    %1117 = arith.divf %1116, %1115 : vector<1x1xf32>
    %1118 = vector.broadcast %1110 : vector<1x1xf32> to vector<1x64xf32>
    %1119 = arith.cmpf oge, %1108, %1118 : vector<1x64xf32>
    %c64_i32_214 = arith.constant 64 : i32
    %1120 = vector.broadcast %c64_i32_214 : i32 to vector<1x64xi32>
    %1121 = arith.select %1119, %658, %1120 : vector<1x64xi1>, vector<1x64xi32>
    %cst_215 = arith.constant dense<2147483647> : vector<1xi32>
    %1122 = vector.multi_reduction <minsi>, %1121, %cst_215 [1] : vector<1x64xi32> to vector<1xi32>
    %1123 = vector.shape_cast %1122 : vector<1xi32> to vector<1x1xi32>
    %c63_i32_216 = arith.constant 63 : i32
    %1124 = vector.broadcast %c63_i32_216 : i32 to vector<1x1xi32>
    %1125 = arith.minsi %1123, %1124 : vector<1x1xi32>
    %1126 = vector.broadcast %1125 : vector<1x1xi32> to vector<1x64xi32>
    %1127 = arith.cmpi eq, %658, %1126 : vector<1x64xi32>
    %1128 = arith.extui %1127 : vector<1x64xi1> to vector<1x64xi32>
    %1129 = arith.sitofp %1128 : vector<1x64xi32> to vector<1x64xf32>
    %cst_217 = arith.constant dense<0.000000e+00> : vector<1x96xf32>
    %1130 = tpu.matmul %1129, %657, %cst_217 {dimension_numbers = #tpu.dot_dimension_numbers<[1], [0], [0], [1], [0, 0, 1, 1], [], []>} : vector<1x64xf32>, vector<64x96xf32>, vector<1x96xf32> -> vector<1x96xf32>
    %1131 = vector.broadcast %c5_i32_199 : i32 to vector<1x128xi32>
    %1132 = arith.cmpi eq, %659, %1131 : vector<1x128xi32>
    %1133 = vector.shape_cast %1125 : vector<1x1xi32> to vector<1x1xi32>
    %1134 = vector.broadcast %1133 : vector<1x1xi32> to vector<1x128xi32>
    %1135 = arith.select %1132, %1134, %1056 : vector<1x128xi1>, vector<1x128xi32>
    %1136 = vector.broadcast %c5_i32_199 : i32 to vector<1x128xi32>
    %1137 = arith.cmpi eq, %659, %1136 : vector<1x128xi32>
    %1138 = vector.shape_cast %1117 : vector<1x1xf32> to vector<1x1xf32>
    %1139 = vector.broadcast %1138 : vector<1x1xf32> to vector<1x128xf32>
    %1140 = arith.select %1137, %1139, %1061 : vector<1x128xi1>, vector<1x128xf32>
    %c6_i32_218 = arith.constant 6 : i32
    %c0_219 = arith.constant 0 : index
    %c0_220 = arith.constant 0 : index
    %1141 = vector.load %arg2[%c0_219, %c0_220] : memref<1x128xi32, #tpu.memory_space<vmem>>, vector<1x128xi32>
    tpu.vector_store %arg2[%c0_219, %c0_220], %1135 {strides = array<i32>} : memref<1x128xi32, #tpu.memory_space<vmem>>, vector<1x128xi32>,
    %c0_221 = arith.constant 0 : index
    %c0_222 = arith.constant 0 : index
    %1142 = vector.load %arg3[%c0_221, %c0_222] : memref<1x128xf32, #tpu.memory_space<vmem>>, vector<1x128xf32>
    tpu.vector_store %arg3[%c0_221, %c0_222], %1140 {strides = array<i32>} : memref<1x128xf32, #tpu.memory_space<vmem>>, vector<1x128xf32>,
    return
  }
}

</mosaic_0001>

<bundles_post_ra>
// kernel: greedy_search_decoder.1
= control target key start
LH: loop header
LB: loop body
LE: loop exit
PB: predicated region body
PF: predicated region fallthrough
CT: control target
= control target key end

     0   :  { %9 = vsyncpa [#allocation4], 0  ;;  %s6161_s12 = smov [#allocation3]   ;;  %s7412_s0 = inlined_call_operand.vmem [shape: s32[8,1], index: 0, kind: input, shape index: {}]   ;;  %s7413_s1 = inlined_call_operand.hbm [shape: f32[400,256], index: 1, kind: input, shape index: {}]   ;;  %s7414_s2 = inlined_call_operand.vmem [shape: s32[1,128], index: 2, kind: output, shape index: {0}]   ;;  %s7415_s3 = inlined_call_operand.vmem [shape: f32[1,128], index: 3, kind: output, shape index: {1}]  }
   0x1   :  { %s17_s13 = sshll.u32 %s6161_s12, 4  ;;  %s18_s13 = int_to_ptr.vmem [resolvable:$true] %s17_s13 }
   0x2   :  { %s6147_s14 = scalar_lea.vmem %s18_s13, 12800  ;;  %p6152_p1 = scmp.lt.s32.totalorder %s18_s13, %s18_s13 }
   0x3   :  { %p6148_p0 = scmp.ne.s32.totalorder %s18_s13, %s6147_s14  ;;  %p6153_p2 = scmp.lt.s32.totalorder %s6147_s14, %s6147_s14 }
   0x5   :  { %p6154_p3 = por %p6153_p2, %p6152_p1 }
   0x7   :  { %p6155_p4 = pnand %p6154_p3, %p6148_p0 }
   0x9   :  { %6158 = shalt.err (!%p6155_p4)
}
   0xa   :  { %s6162_s15 = smov 256   ;;  %s6163_s16 = smov 16  }
   0xb   :  { %23 = dma.hbm_to_vmem [thread:$0]  %s7413_s1, 12800, %s18_s13, [#allocation4], %s6162_s15, %s6162_s15, %s6163_s16  }
   0xc   :  { %6159 = dma.done.wait [#allocation4], 12800  }
   0xd   :  { %6160 = vsyncadd [#allocation4], 4294954496  ;;  %v6164_v0 = vmov 0   ;;  %v6165_v1 = vmov 0.0   ;;  %vm6166_vm0 = vmmov 0   ;;  %v37_v2 = vld [vmem:[%s7412_s0] sm:$0xff]  ;;  %v35_v11 = vlaneseq }
   0xe   :  { %5919 = vset.pattern.permute.xlu0 %v6164_v0  ;;  %5433 = vmatprep.subr.mxu0 %v6165_v1  ;;  %v34_v3 = vld [vmem:[#allocation3 + $0x70] sm:$0xff]  ;;  %v33_v4 = vld [vmem:[#allocation3 + $0x60] sm:$0xff]  ;;  %vm44_vm1 = vcmask 523264   ;;  %v6214_v15 = vld [vmem:[#allocation3 + $0x178] sm:$0xff]  ;;  %s6167_s0 = smov 32   ;;  %s6168_s1 = smov 64  }
   0xf   :  { %220 = vmatprep.mubr.f32.mxu1 %v6165_v1  ;;  %5449 = vmatprep.mubr.msk.f32.mxu0 %vm6166_vm0, %v6165_v1  ;;  %v32_v5 = vld [vmem:[#allocation3 + $0x50] sm:$0xff]  ;;  %v31_v6 = vld [vmem:[#allocation3 + $0x40] sm:$0xff]  ;;  %v6208_v12 = vand.u32 127, %v35_v11  ;;  %v6218_v17 = vld [vmem:[#allocation3 + $0x168] sm:$0xff]  ;;  %v6284_v49 = vshrl.u32 %v35_v11, 7  ;;  %vm122_vm3 = vcmask 261120  }
  0x10   :  { %39 = vperm.xlu0 %5919, %v37_v2   ;;  %5434 = vmatpush3.msra.mxu0 %v34_v3  ;;  %v30_v7 = vld [vmem:[#allocation3 + $0x30] sm:$0xff]  ;;  %v29_v8 = vld [vmem:[#allocation3 + $0x20] sm:$0xff]  ;;  %v6224_v19 = vld [vmem:[#allocation3 + $0x158] sm:$0xff]  ;;  %s6169_s21 = smov 96   ;;  %vm1861_vm13 = vcmask 57344   ;;  %vm1874_vm14 = vcmask 64512  }
  0x11   :  { %5435 = vmatprep.subr.mxu0 %v6165_v1  ;;  %v28_v9 = vld [vmem:[#allocation3 + $0x10] sm:$0xff]  ;;  %v27_v10 = vld [vmem:[#allocation3] sm:$0xff]  ;;  %v6230_v21 = vld [vmem:[#allocation3 + $0x148] sm:$0xff]  ;;  %v6287_v50 = vsub.s32 0, %v6284_v49  ;;  %v149_v52 = vsub.s32 1, %v6284_v49  ;;  %vm388_vm4 = vcmp.eq.s32.totalorder %v6284_v49, 0 }
  0x12   :  { %5436 = vmatpush3.msra.mxu0 %v33_v4  ;;  %v6216_v16 = vld [vmem:[#allocation3 + $0x170] sm:$0xff]  ;;  %v6221_v18 = vld [vmem:[#allocation3 + $0x160] sm:$0xff]  ;;  %v139_v23 = vld [vmem:[#allocation3 + $0xf8] sm:$0xff]  ;;  %vm540_vm5 = vcmp.eq.s32.totalorder %v6284_v49, 1  ;;  %vm692_vm6 = vcmp.eq.s32.totalorder %v6284_v49, 2  ;;  %vm844_vm7 = vcmp.eq.s32.totalorder %v6284_v49, 3 }
  0x13   :  { %5437 = vmatprep.subr.mxu0 %v6165_v1  ;;  %v6227_v20 = vld [vmem:[#allocation3 + $0x150] sm:$0xff]  ;;  %v6233_v22 = vld [vmem:[#allocation3 + $0x140] sm:$0xff]  ;;  %v6236_v25 = vld [vmem:[#allocation3 + $0x138] sm:$0xff]  ;;  %172 = vmatprep.subr.mxu1 %v139_v23  ;;  %vm852_vm8 = vcmp.eq.s32.totalorder %v6284_v49, 4  ;;  %vm700_vm9 = vcmp.eq.s32.totalorder %v6284_v49, 5  ;;  %vm548_vm10 = vcmp.eq.s32.totalorder %v6284_v49, 6 }
  0x14   :  { %5438 = vmatpush3.msra.mxu0 %v32_v5  ;;  %v138_v24 = vld [vmem:[#allocation3 + $0xf0] sm:$0xff]  ;;  %v137_v26 = vld [vmem:[#allocation3 + $0xe8] sm:$0xff]  ;;  %v136_v27 = vld [vmem:[#allocation3 + $0xe0] sm:$0xff]  ;;  %vm1603_vm11 = vcmp.eq.s32.totalorder %v6208_v12, 1  ;;  %vm396_vm12 = vcmp.eq.s32.totalorder %v6284_v49, 7  ;;  %vm2166_vm15 = vcmask 516096  }
  0x15   :  { %5439 = vmatprep.subr.mxu0 %v6165_v1  ;;  %v6239_v28 = vld [vmem:[#allocation3 + $0x130] sm:$0xff]  ;;  %173 = vmatpush1.msra.mxu1 %v138_v24  ;;  %v135_v29 = vld [vmem:[#allocation3 + $0xd8] sm:$0xff]  ;;  %v6242_v30 = vld [vmem:[#allocation3 + $0x128] sm:$0xff] }
  0x16   :  { %5440 = vmatpush3.msra.mxu0 %v31_v6  ;;  %174 = vmatprep.subr.mxu1 %v137_v26  ;;  %v134_v31 = vld [vmem:[#allocation3 + $0xd0] sm:$0xff]  ;;  %v6245_v32 = vld [vmem:[#allocation3 + $0x120] sm:$0xff]  ;;  %v133_v33 = vld [vmem:[#allocation3 + $0xc8] sm:$0xff] }
  0x17   :  { %5441 = vmatprep.subr.mxu0 %v6165_v1  ;;  %175 = vmatpush1.msra.mxu1 %v136_v27  ;;  %v6248_v34 = vld [vmem:[#allocation3 + $0x118] sm:$0xff]  ;;  %v132_v35 = vld [vmem:[#allocation3 + $0xc0] sm:$0xff]  ;;  %v6251_v36 = vld [vmem:[#allocation3 + $0x110] sm:$0xff] }
  0x18   :  { %5442 = vmatpush3.msra.mxu0 %v30_v7  ;;  %176 = vmatprep.subr.mxu1 %v135_v29  ;;  %v131_v37 = vld [vmem:[#allocation3 + $0xb8] sm:$0xff]  ;;  %v6254_v38 = vld [vmem:[#allocation3 + $0x108] sm:$0xff]  ;;  %v130_v39 = vld [vmem:[#allocation3 + $0xb0] sm:$0xff] }
  0x19   :  { %5443 = vmatprep.subr.mxu0 %v6165_v1  ;;  %177 = vmatpush1.msra.mxu1 %v134_v31  ;;  %v6257_v40 = vld [vmem:[#allocation3 + $0x100] sm:$0xff]  ;;  %v129_v41 = vld [vmem:[#allocation3 + $0xa8] sm:$0xff]  ;;  %v127_v43 = vld [vmem:[#allocation3 + $0x98] sm:$0xff] }
  0x1a   :  { %5444 = vmatpush3.msra.mxu0 %v29_v8  ;;  %178 = vmatprep.subr.mxu1 %v133_v33  ;;  %v128_v42 = vld [vmem:[#allocation3 + $0xa0] sm:$0xff]  ;;  %v126_v44 = vld [vmem:[#allocation3 + $0x90] sm:$0xff]  ;;  %v125_v45 = vld [vmem:[#allocation3 + $0x88] sm:$0xff] }
  0x1b   :  { %5445 = vmatprep.subr.mxu0 %v6165_v1  ;;  %179 = vmatpush1.msra.mxu1 %v132_v35  ;;  %v124_v46 = vld [vmem:[#allocation3 + $0x80] sm:$0xff]  ;;  %v246_v51 = vld [vmem:[#allocation3 + $0x190] ss:$8 sm:$0x3] }
  0x1c   :  { %5446 = vmatpush3.msra.mxu0 %v28_v9  ;;  %180 = vmatprep.subr.mxu1 %v131_v37  ;;  %v6291_v53 = vrot.slane %v246_v51, %v6287_v50  ;;  %v6293_v54 = vrot.slane %v246_v51, %v149_v52  ;;  %v141_v61 = vld [vmem:[#allocation3 + $0x180] ss:$8 sm:$0x3] }
  0x1d   :  { %5447 = vmatprep.subr.mxu0 %v6165_v1  ;;  %181 = vmatpush1.msra.mxu1 %v130_v39  ;;  %v146_v62 = vrot.slane %v141_v61, %v6287_v50  ;;  %v150_v63 = vrot.slane %v141_v61, %v149_v52 }
  0x1e   :  { %5448 = vmatpush3.msra.mxu0 %v27_v10  ;;  %182 = vmatprep.subr.mxu1 %v129_v41 }
  0x1f   :  { %281 = vmatprep.subr.mxu0 %v6214_v15  ;;  %183 = vmatpush1.msra.mxu1 %v128_v42 }
  0x20   :  { %184 = vmatprep.subr.mxu1 %v127_v43 }
  0x21   :  { %185 = vmatpush1.msra.mxu1 %v126_v44 }
  0x22   :  { %186 = vmatprep.subr.mxu1 %v125_v45 }
  0x23   :  { %187 = vmatpush1.msra.mxu1 %v124_v46 }
  0x24   :  { %430 = vmatprep.subr.mxu1 %v6214_v15 }
  0x8b   :  { %v40_v13 = vpop.permute.xlu0 %39 }
  0x8c   :  { %vm41_vm2 = vcmp.eq.s32.totalorder %v6208_v12, %v40_v13 }
  0x8d   :  { %v5120_v14 = vsel %vm41_vm2, 1.0, %v6165_v1 }
  0x8e   :  { %5450 = vmatmul.mubr.msk.f32.vlgmr.msra.gmra.mxu0 %vm44_vm1, %v5120_v14 }
  0x8f   :  { %329 = vmatprep.mubr.f32.mxu0 %v6165_v1  ;;  %282 = vmatpush1.msra.mxu0 %v6216_v16 }
  0x90   :  { %283 = vmatprep.subr.mxu0 %v6218_v17 }
  0x91   :  { %284 = vmatpush1.msra.mxu0 %v6221_v18 }
  0x92   :  { %285 = vmatprep.subr.mxu0 %v6224_v19 }
  0x93   :  { %286 = vmatpush1.msra.mxu0 %v6227_v20 }
  0x94   :  { %287 = vmatprep.subr.mxu0 %v6230_v21 }
  0x95   :  { %288 = vmatpush1.msra.mxu0 %v6233_v22 }
  0x96   :  { %289 = vmatprep.subr.mxu0 %v6236_v25 }
  0x97   :  { %290 = vmatpush1.msra.mxu0 %v6239_v28 }
  0x98   :  { %291 = vmatprep.subr.mxu0 %v6242_v30 }
  0x99   :  { %292 = vmatpush1.msra.mxu0 %v6245_v32 }
  0x9a   :  { %293 = vmatprep.subr.mxu0 %v6248_v34 }
  0x9b   :  { %294 = vmatpush1.msra.mxu0 %v6251_v36 }
  0x9c   :  { %295 = vmatprep.subr.mxu0 %v6254_v38 }
  0x9d   :  { %296 = vmatpush1.msra.mxu0 %v6257_v40 }
  0x9e   :  { %330 = vmatmul.mubr.f32.vlgmr.msra.gmra.mxu0 %v6165_v1  ;;  %582 = vmatprep.subr.mxu0 %v6214_v15 }
  0x9f   :  { %583 = vmatpush1.msra.mxu0 %v6216_v16  ;;  %630 = vmatprep.mubr.f32.mxu0 %v6165_v1 }
  0xa0   :  { %584 = vmatprep.subr.mxu0 %v6218_v17 }
  0xa1   :  { %585 = vmatpush1.msra.mxu0 %v6221_v18 }
  0xa2   :  { %586 = vmatprep.subr.mxu0 %v6224_v19 }
  0xa3   :  { %587 = vmatpush1.msra.mxu0 %v6227_v20 }
  0xa4   :  { %588 = vmatprep.subr.mxu0 %v6230_v21 }
  0xa5   :  { %589 = vmatpush1.msra.mxu0 %v6233_v22 }
  0xa6   :  { %590 = vmatprep.subr.mxu0 %v6236_v25 }
  0xa7   :  { %591 = vmatpush1.msra.mxu0 %v6239_v28 }
  0xa8   :  { %592 = vmatprep.subr.mxu0 %v6242_v30 }
  0xa9   :  { %593 = vmatpush1.msra.mxu0 %v6245_v32 }
  0xaa   :  { %594 = vmatprep.subr.mxu0 %v6248_v34 }
  0xab   :  { %595 = vmatpush1.msra.mxu0 %v6251_v36 }
  0xac   :  { %596 = vmatprep.subr.mxu0 %v6254_v38 }
  0xad   :  { %597 = vmatpush1.msra.mxu0 %v6257_v40 }
  0xae   :  { %886 = vmatprep.subr.mxu0 %v6214_v15 }
 0x14e   :  { %v114_v47 = vpop.f32.mrf.mxu0 }
 0x14f   :  { %119 = vrot.lane.b32.xlu0 %v114_v47, %s6167_s0 }
 0x150   :  { %v5451_v48 = vpop.f32.mrf.mxu0 }
 0x15e   :  { %v331_v55 = vpop.f32.mrf.mxu0 }
 0x15f   :  { %v332_v56 = vadd.f32 %v331_v55, %v6291_v53 }
 0x160   :  { %v333_v57 = vpop.f32.mrf.mxu0 }
 0x161   :  { %344 = vrot.lane.b32.xlu1 %v332_v56, %s6168_s1  ;;  %v334_v58 = vadd.f32 %v333_v57, %v6293_v54 }
 0x165   :  { %370 = vrot.lane.b32.xlu1 %v334_v58, %s6168_s1 }
 0x1c1   :  { %v120_v59 = vpop.permute.xlu0 %119 }
 0x1c2   :  { %v123_v60 = vsel %vm122_vm3, %v114_v47, %v120_v59 }
 0x1c3   :  { %5122 = vmatmul.mubr.msk.f32.vlgmr.msra.gmra.mxu1 %vm44_vm1, %v123_v60 }
 0x1c4   :  { %431 = vmatpush1.msra.mxu1 %v6216_v16  ;;  %478 = vmatprep.mubr.f32.mxu1 %v6165_v1 }
 0x1c5   :  { %432 = vmatprep.subr.mxu1 %v6218_v17 }
 0x1c6   :  { %433 = vmatpush1.msra.mxu1 %v6221_v18 }
 0x1c7   :  { %434 = vmatprep.subr.mxu1 %v6224_v19 }
 0x1c8   :  { %435 = vmatpush1.msra.mxu1 %v6227_v20 }
 0x1c9   :  { %436 = vmatprep.subr.mxu1 %v6230_v21 }
 0x1ca   :  { %437 = vmatpush1.msra.mxu1 %v6233_v22 }
 0x1cb   :  { %438 = vmatprep.subr.mxu1 %v6236_v25 }
 0x1cc   :  { %439 = vmatpush1.msra.mxu1 %v6239_v28 }
 0x1cd   :  { %440 = vmatprep.subr.mxu1 %v6242_v30 }
 0x1ce   :  { %441 = vmatpush1.msra.mxu1 %v6245_v32 }
 0x1cf   :  { %442 = vmatprep.subr.mxu1 %v6248_v34 }
 0x1d0   :  { %443 = vmatpush1.msra.mxu1 %v6251_v36 }
 0x1d1   :  { %444 = vmatprep.subr.mxu1 %v6254_v38 }
 0x1d2   :  { %445 = vmatpush1.msra.mxu1 %v6257_v40 }
 0x1d3   :  { %734 = vmatprep.subr.mxu1 %v6214_v15  ;;  %v345_v24 = vpop.permute.xlu1 %344 }
 0x1d7   :  { %v371_v31 = vpop.permute.xlu1 %370 }
 0x283   :  { %v222_v0 = vpop.f32.mrf.mxu1 }
 0x284   :  { %v223_v2 = vadd.f32 %v222_v0, %v146_v62 }
 0x285   :  { %v224_v3 = vpop.f32.mrf.mxu1 }
 0x286   :  { %227 = vst [vmem:[#allocation2] sm:$0xff] %v223_v2  ;;  %v225_v4 = vadd.f32 %v224_v3, %v150_v63 }
 0x288   :  { %228 = vst [vmem:[#allocation2 + $0x8] sm:$0xff] %v225_v4 }
 0x28d   :  { %v249_v5 = vld [vmem:[#allocation2] ss:$0 sm:$0xff]  ;;  %v409_v0 = vld [vmem:[#allocation2 + $0x1] ss:$0 sm:$0xff] }
 0x28e   :  { %v336_v6 = vadd.f32 %v332_v56, %v249_v5 }
 0x28f   :  { %v250_v7 = vld [vmem:[#allocation2 + $0xf] ss:$0 sm:$0xff]  ;;  %v410_v3 = vld [vmem:[#allocation2 + $0xe] ss:$0 sm:$0xff] }
 0x290   :  { %v5123_v8 = vmul.f32 -1.442695, %v336_v6  ;;  %v362_v9 = vadd.f32 %v334_v58, %v250_v7 }
 0x292   :  { %5920 = vpow2.f32 %v5123_v8  ;;  %v5124_v10 = vmul.f32 -1.442695, %v362_v9 }
 0x294   :  { %5922 = vpow2.f32 %v5124_v10 }
 0x29f   :  { %v5921_v11 = vpop.eup %5920 }
 0x2a0   :  { %v340_v13 = vadd.f32 1.0, %v5921_v11 }
 0x2a1   :  { %v5923_v14 = vpop.eup %5922 }
 0x2a2   :  { %5924 = vrcp.f32 %v340_v13  ;;  %v366_v23 = vadd.f32 1.0, %v5923_v14 }
 0x2a4   :  { %5926 = vrcp.f32 %v366_v23 }
 0x2af   :  { %v5925_v26 = vpop.eup %5924 }
 0x2b0   :  { %v347_v27 = vmul.f32 %v5925_v26, %v345_v24  ;;  %v354_v44 = vsub.f32 1.0, %v5925_v26  ;;  %v360_v46 = vmul.f32 0.0, %v5925_v26 }
 0x2b1   :  { %v5927_v29 = vpop.eup %5926 }
 0x2b2   :  { %v373_v33 = vmul.f32 %v5927_v29, %v371_v31  ;;  %349 = vrot.lane.b32.xlu0 %v347_v27, %s6168_s1  ;;  %v380_v52 = vsub.f32 1.0, %v5927_v29  ;;  %v386_v56 = vmul.f32 0.0, %v5927_v29 }
 0x2b4   :  { %375 = vrot.lane.b32.xlu1 %v373_v33, %s6168_s1 }
 0x324   :  { %v350_v35 = vpop.permute.xlu0 %349 }
 0x325   :  { %v352_v37 = vadd.f32 %v350_v35, %v249_v5 }
 0x326   :  { %v376_v39 = vpop.permute.xlu1 %375 }
 0x327   :  { %5928 = vtanh.f32 %v352_v37  ;;  %v378_v41 = vadd.f32 %v376_v39, %v250_v7 }
 0x329   :  { %5930 = vtanh.f32 %v378_v41 }
 0x334   :  { %v5929_v42 = vpop.eup %5928 }
 0x335   :  { %356 = vrot.lane.b32.xlu0 %v5929_v42, %s6169_s21 }
 0x336   :  { %v5931_v43 = vpop.eup %5930 }
 0x337   :  { %382 = vrot.lane.b32.xlu1 %v5931_v43, %s6169_s21 }
 0x3a7   :  { %v357_v45 = vpop.permute.xlu0 %356 }
 0x3a8   :  { %v359_v47 = vmul.f32 %v357_v45, %v354_v44 }
 0x3a9   :  { %v383_v51 = vpop.permute.xlu1 %382 }
 0x3aa   :  { %v6323_v48 = vadd.f32 %v360_v46, %v359_v47  ;;  %v385_v55 = vmul.f32 %v383_v51, %v380_v52 }
 0x3ac   :  { %405 = vrot.lane.b32.xlu0 %v6323_v48, %s6169_s21  ;;  %v6327_v57 = vadd.f32 %v386_v56, %v385_v55  ;;  %v394_v45 = vrot.slane %v6323_v48, %v6287_v50 }
 0x3ae   :  { %v395_v51 = vsel %vm388_vm4, %v394_v45, 0.0 }
 0x41e   :  { %v406_v58 = vpop.permute.xlu0 %405 }
 0x41f   :  { %v6331_v59 = vsel %vm122_vm3, %v406_v58, %v6327_v57 }
 0x420   :  { %5125 = vmatmul.mubr.msk.f32.vlgmr.msra.gmra.mxu1 %vm44_vm1, %v6331_v59 }
 0x421   :  { %735 = vmatpush1.msra.mxu1 %v6216_v16  ;;  %782 = vmatprep.mubr.f32.mxu1 %v6165_v1 }
 0x422   :  { %736 = vmatprep.subr.mxu1 %v6218_v17 }
 0x423   :  { %737 = vmatpush1.msra.mxu1 %v6221_v18 }
 0x424   :  { %738 = vmatprep.subr.mxu1 %v6224_v19 }
 0x425   :  { %739 = vmatpush1.msra.mxu1 %v6227_v20 }
 0x426   :  { %740 = vmatprep.subr.mxu1 %v6230_v21 }
 0x427   :  { %741 = vmatpush1.msra.mxu1 %v6233_v22 }
 0x428   :  { %742 = vmatprep.subr.mxu1 %v6236_v25 }
 0x429   :  { %743 = vmatpush1.msra.mxu1 %v6239_v28 }
 0x42a   :  { %744 = vmatprep.subr.mxu1 %v6242_v30 }
 0x42b   :  { %745 = vmatpush1.msra.mxu1 %v6245_v32 }
 0x42c   :  { %746 = vmatprep.subr.mxu1 %v6248_v34 }
 0x42d   :  { %747 = vmatpush1.msra.mxu1 %v6251_v36 }
 0x42e   :  { %748 = vmatprep.subr.mxu1 %v6254_v38 }
 0x42f   :  { %749 = vmatpush1.msra.mxu1 %v6257_v40 }
 0x430   :  { %1032 = vmatprep.subr.mxu1 %v6214_v15 }
 0x4e0   :  { %v480_v60 = vpop.f32.mrf.mxu1 }
 0x4e1   :  { %v481_v61 = vadd.f32 %v480_v60, %v6291_v53 }
 0x4e2   :  { %v482_v62 = vpop.f32.mrf.mxu1 }
 0x4e3   :  { %v483_v63 = vadd.f32 %v482_v62, %v6293_v54  ;;  %493 = vrot.lane.b32.xlu1 %v481_v61, %s6168_s1  ;;  %v485_v2 = vadd.f32 %v481_v61, %v409_v0 }
 0x4e5   :  { %522 = vrot.lane.b32.xlu0 %v483_v63, %s6168_s1  ;;  %v514_v4 = vadd.f32 %v483_v63, %v410_v3  ;;  %v5126_v5 = vmul.f32 -1.442695, %v485_v2 }
 0x4e7   :  { %v5127_v6 = vmul.f32 -1.442695, %v514_v4  ;;  %5932 = vpow2.f32 %v5126_v5  ;;  %v562_v5 = vld [vmem:[#allocation2 + $0xd] ss:$0 sm:$0xff] }
 0x4e9   :  { %5934 = vpow2.f32 %v5127_v6 }
 0x4f4   :  { %v5933_v7 = vpop.eup %5932 }
 0x4f5   :  { %v489_v9 = vadd.f32 1.0, %v5933_v7 }
 0x4f6   :  { %v5935_v8 = vpop.eup %5934 }
 0x4f7   :  { %v518_v10 = vadd.f32 1.0, %v5935_v8  ;;  %5936 = vrcp.f32 %v489_v9 }
 0x4f9   :  { %5938 = vrcp.f32 %v518_v10 }
 0x504   :  { %v5937_v11 = vpop.eup %5936 }
 0x505   :  { %v503_v41 = vsub.f32 1.0, %v5937_v11 }
 0x506   :  { %v5939_v23 = vpop.eup %5938 }
 0x507   :  { %v532_v56 = vsub.f32 1.0, %v5939_v23  ;;  %v538_v48 = vmul.f32 %v5939_v23, %v6331_v59 }
 0x555   :  { %v494_v13 = vpop.permute.xlu1 %493 }
 0x556   :  { %v496_v14 = vmul.f32 %v5937_v11, %v494_v13 }
 0x557   :  { %v523_v24 = vpop.permute.xlu0 %522 }
 0x558   :  { %v525_v26 = vmul.f32 %v5939_v23, %v523_v24  ;;  %498 = vrot.lane.b32.xlu1 %v496_v14, %s6168_s1 }
 0x55a   :  { %527 = vrot.lane.b32.xlu0 %v525_v26, %s6168_s1 }
 0x55e   :  { %509 = vrot.lane.b32.xlu0 %v6331_v59, %s6167_s0 }
 0x5ca   :  { %v499_v27 = vpop.permute.xlu1 %498 }
 0x5cb   :  { %v501_v29 = vadd.f32 %v499_v27, %v409_v0 }
 0x5cc   :  { %v528_v31 = vpop.permute.xlu0 %527 }
 0x5cd   :  { %5940 = vtanh.f32 %v501_v29  ;;  %v530_v33 = vadd.f32 %v528_v31, %v410_v3  ;;  %v561_v3 = vld [vmem:[#allocation2 + $0x2] ss:$0 sm:$0xff] }
 0x5cf   :  { %5942 = vtanh.f32 %v530_v33 }
 0x5d0   :  { %v510_v39 = vpop.permute.xlu0 %509 }
 0x5d1   :  { %v512_v43 = vmul.f32 %v5937_v11, %v510_v39 }
 0x5da   :  { %v5941_v35 = vpop.eup %5940 }
 0x5db   :  { %505 = vrot.lane.b32.xlu1 %v5941_v35, %s6169_s21 }
 0x5dc   :  { %v5943_v37 = vpop.eup %5942 }
 0x5df   :  { %534 = vrot.lane.b32.xlu1 %v5943_v37, %s6169_s21 }
 0x64d   :  { %v506_v42 = vpop.permute.xlu1 %505 }
 0x64e   :  { %v508_v44 = vmul.f32 %v506_v42, %v503_v41 }
 0x650   :  { %v513_v46 = vadd.f32 %v512_v43, %v508_v44 }
 0x651   :  { %v535_v55 = vpop.permute.xlu1 %534 }
 0x652   :  { %v546_v47 = vrot.slane %v513_v46, %v6287_v50  ;;  %557 = vrot.lane.b32.xlu0 %v513_v46, %s6169_s21  ;;  %v537_v58 = vmul.f32 %v535_v55, %v532_v56 }
 0x654   :  { %v6372_v52 = vsel %vm540_vm5, %v546_v47, %v395_v51  ;;  %v6375_v60 = vadd.f32 %v538_v48, %v537_v58 }
 0x6c4   :  { %v558_v61 = vpop.permute.xlu0 %557 }
 0x6c5   :  { %v6379_v62 = vsel %vm122_vm3, %v558_v61, %v6375_v60 }
 0x6c6   :  { %5128 = vmatmul.mubr.msk.f32.vlgmr.msra.gmra.mxu0 %vm44_vm1, %v6379_v62 }
 0x6c7   :  { %887 = vmatpush1.msra.mxu0 %v6216_v16  ;;  %934 = vmatprep.mubr.f32.mxu0 %v6165_v1 }
 0x6c8   :  { %888 = vmatprep.subr.mxu0 %v6218_v17 }
 0x6c9   :  { %889 = vmatpush1.msra.mxu0 %v6221_v18 }
 0x6ca   :  { %890 = vmatprep.subr.mxu0 %v6224_v19 }
 0x6cb   :  { %891 = vmatpush1.msra.mxu0 %v6227_v20 }
 0x6cc   :  { %892 = vmatprep.subr.mxu0 %v6230_v21 }
 0x6cd   :  { %893 = vmatpush1.msra.mxu0 %v6233_v22 }
 0x6ce   :  { %894 = vmatprep.subr.mxu0 %v6236_v25 }
 0x6cf   :  { %895 = vmatpush1.msra.mxu0 %v6239_v28 }
 0x6d0   :  { %896 = vmatprep.subr.mxu0 %v6242_v30 }
 0x6d1   :  { %897 = vmatpush1.msra.mxu0 %v6245_v32 }
 0x6d2   :  { %898 = vmatprep.subr.mxu0 %v6248_v34 }
 0x6d3   :  { %899 = vmatpush1.msra.mxu0 %v6251_v36 }
 0x6d4   :  { %900 = vmatprep.subr.mxu0 %v6254_v38 }
 0x6d5   :  { %901 = vmatpush1.msra.mxu0 %v6257_v40 }
 0x6d6   :  { %1178 = vmatprep.subr.mxu0 %v6214_v15 }
 0x786   :  { %v632_v59 = vpop.f32.mrf.mxu0 }
 0x787   :  { %v633_v63 = vadd.f32 %v632_v59, %v6291_v53 }
 0x788   :  { %v634_v0 = vpop.f32.mrf.mxu0 }
 0x789   :  { %v635_v2 = vadd.f32 %v634_v0, %v6293_v54  ;;  %645 = vrot.lane.b32.xlu1 %v633_v63, %s6168_s1  ;;  %v637_v4 = vadd.f32 %v633_v63, %v561_v3 }
 0x78b   :  { %674 = vrot.lane.b32.xlu0 %v635_v2, %s6168_s1  ;;  %v666_v6 = vadd.f32 %v635_v2, %v562_v5  ;;  %v5129_v7 = vmul.f32 -1.442695, %v637_v4  ;;  %v713_v4 = vld [vmem:[#allocation2 + $0x3] ss:$0 sm:$0xff] }
 0x78d   :  { %v5130_v8 = vmul.f32 -1.442695, %v666_v6  ;;  %5944 = vpow2.f32 %v5129_v7  ;;  %v714_v6 = vld [vmem:[#allocation2 + $0xc] ss:$0 sm:$0xff] }
 0x78f   :  { %5946 = vpow2.f32 %v5130_v8 }
 0x79a   :  { %v5945_v9 = vpop.eup %5944 }
 0x79b   :  { %v641_v11 = vadd.f32 1.0, %v5945_v9 }
 0x79c   :  { %v5947_v10 = vpop.eup %5946 }
 0x79d   :  { %v670_v13 = vadd.f32 1.0, %v5947_v10  ;;  %5948 = vrcp.f32 %v641_v11 }
 0x79f   :  { %5950 = vrcp.f32 %v670_v13 }
 0x7aa   :  { %v5949_v14 = vpop.eup %5948 }
 0x7ab   :  { %v655_v43 = vsub.f32 1.0, %v5949_v14 }
 0x7ac   :  { %v5951_v26 = vpop.eup %5950 }
 0x7ad   :  { %v684_v58 = vsub.f32 1.0, %v5951_v26  ;;  %v690_v61 = vmul.f32 %v5951_v26, %v6379_v62 }
 0x7fb   :  { %v646_v23 = vpop.permute.xlu1 %645 }
 0x7fc   :  { %v648_v24 = vmul.f32 %v5949_v14, %v646_v23 }
 0x7fd   :  { %v675_v27 = vpop.permute.xlu0 %674 }
 0x7fe   :  { %v677_v29 = vmul.f32 %v5951_v26, %v675_v27  ;;  %650 = vrot.lane.b32.xlu1 %v648_v24, %s6168_s1 }
 0x800   :  { %679 = vrot.lane.b32.xlu0 %v677_v29, %s6168_s1 }
 0x804   :  { %661 = vrot.lane.b32.xlu0 %v6379_v62, %s6167_s0 }
 0x870   :  { %v651_v31 = vpop.permute.xlu1 %650 }
 0x871   :  { %v653_v33 = vadd.f32 %v651_v31, %v561_v3 }
 0x872   :  { %v680_v35 = vpop.permute.xlu0 %679 }
 0x873   :  { %5952 = vtanh.f32 %v653_v33  ;;  %v682_v37 = vadd.f32 %v680_v35, %v562_v5 }
 0x875   :  { %5954 = vtanh.f32 %v682_v37 }
 0x876   :  { %v662_v42 = vpop.permute.xlu0 %661 }
 0x877   :  { %v664_v45 = vmul.f32 %v5949_v14, %v662_v42 }
 0x880   :  { %v5953_v39 = vpop.eup %5952 }
 0x881   :  { %657 = vrot.lane.b32.xlu1 %v5953_v39, %s6169_s21 }
 0x882   :  { %v5955_v41 = vpop.eup %5954 }
 0x885   :  { %686 = vrot.lane.b32.xlu1 %v5955_v41, %s6169_s21 }
 0x8f3   :  { %v658_v44 = vpop.permute.xlu1 %657 }
 0x8f4   :  { %v660_v46 = vmul.f32 %v658_v44, %v655_v43 }
 0x8f6   :  { %v665_v47 = vadd.f32 %v664_v45, %v660_v46 }
 0x8f7   :  { %v687_v56 = vpop.permute.xlu1 %686 }
 0x8f8   :  { %v698_v51 = vrot.slane %v665_v47, %v6287_v50  ;;  %709 = vrot.lane.b32.xlu0 %v665_v47, %s6169_s21  ;;  %v689_v48 = vmul.f32 %v687_v56, %v684_v58 }
 0x8fa   :  { %v6416_v55 = vsel %vm692_vm6, %v698_v51, %v6372_v52  ;;  %v6419_v59 = vadd.f32 %v690_v61, %v689_v48 }
 0x96a   :  { %v710_v63 = vpop.permute.xlu0 %709 }
 0x96b   :  { %v6423_v0 = vsel %vm122_vm3, %v710_v63, %v6419_v59 }
 0x96c   :  { %5131 = vmatmul.mubr.msk.f32.vlgmr.msra.gmra.mxu1 %vm44_vm1, %v6423_v0 }
 0x96d   :  { %1033 = vmatpush1.msra.mxu1 %v6216_v16  ;;  %1080 = vmatprep.mubr.f32.mxu1 %v6165_v1 }
 0x96e   :  { %1034 = vmatprep.subr.mxu1 %v6218_v17 }
 0x96f   :  { %1035 = vmatpush1.msra.mxu1 %v6221_v18 }
 0x970   :  { %1036 = vmatprep.subr.mxu1 %v6224_v19 }
 0x971   :  { %1037 = vmatpush1.msra.mxu1 %v6227_v20 }
 0x972   :  { %1038 = vmatprep.subr.mxu1 %v6230_v21 }
 0x973   :  { %1039 = vmatpush1.msra.mxu1 %v6233_v22 }
 0x974   :  { %1040 = vmatprep.subr.mxu1 %v6236_v25 }
 0x975   :  { %1041 = vmatpush1.msra.mxu1 %v6239_v28 }
 0x976   :  { %1042 = vmatprep.subr.mxu1 %v6242_v30 }
 0x977   :  { %1043 = vmatpush1.msra.mxu1 %v6245_v32 }
 0x978   :  { %1044 = vmatprep.subr.mxu1 %v6248_v34 }
 0x979   :  { %1045 = vmatpush1.msra.mxu1 %v6251_v36 }
 0x97a   :  { %1046 = vmatprep.subr.mxu1 %v6254_v38 }
 0x97b   :  { %1047 = vmatpush1.msra.mxu1 %v6257_v40 }
 0x97c   :  { %1324 = vmatprep.subr.mxu1 %v6214_v15 }
 0xa2c   :  { %v784_v52 = vpop.f32.mrf.mxu1 }
 0xa2d   :  { %v785_v62 = vadd.f32 %v784_v52, %v6291_v53 }
 0xa2e   :  { %v786_v2 = vpop.f32.mrf.mxu1 }
 0xa2f   :  { %v787_v3 = vadd.f32 %v786_v2, %v6293_v54  ;;  %797 = vrot.lane.b32.xlu1 %v785_v62, %s6168_s1  ;;  %v789_v5 = vadd.f32 %v785_v62, %v713_v4 }
 0xa31   :  { %826 = vrot.lane.b32.xlu0 %v787_v3, %s6168_s1  ;;  %v818_v7 = vadd.f32 %v787_v3, %v714_v6  ;;  %v5132_v8 = vmul.f32 -1.442695, %v789_v5  ;;  %v865_v5 = vld [vmem:[#allocation2 + $0x4] ss:$0 sm:$0xff] }
 0xa33   :  { %v5133_v9 = vmul.f32 -1.442695, %v818_v7  ;;  %5956 = vpow2.f32 %v5132_v8  ;;  %v866_v7 = vld [vmem:[#allocation2 + $0xb] ss:$0 sm:$0xff] }
 0xa35   :  { %5958 = vpow2.f32 %v5133_v9 }
 0xa40   :  { %v5957_v10 = vpop.eup %5956 }
 0xa41   :  { %v793_v11 = vadd.f32 1.0, %v5957_v10 }
 0xa42   :  { %v5959_v15 = vpop.eup %5958 }
 0xa43   :  { %v822_v13 = vadd.f32 1.0, %v5959_v15  ;;  %5960 = vrcp.f32 %v793_v11 }
 0xa45   :  { %5962 = vrcp.f32 %v822_v13 }
 0xa50   :  { %v5961_v14 = vpop.eup %5960 }
 0xa51   :  { %v807_v43 = vsub.f32 1.0, %v5961_v14 }
 0xa52   :  { %v5963_v26 = vpop.eup %5962 }
 0xa53   :  { %v836_v48 = vsub.f32 1.0, %v5963_v26  ;;  %v842_v63 = vmul.f32 %v5963_v26, %v6423_v0 }
 0xaa1   :  { %v798_v23 = vpop.permute.xlu1 %797 }
 0xaa2   :  { %v800_v24 = vmul.f32 %v5961_v14, %v798_v23 }
 0xaa3   :  { %v827_v27 = vpop.permute.xlu0 %826 }
 0xaa4   :  { %v829_v29 = vmul.f32 %v5963_v26, %v827_v27  ;;  %802 = vrot.lane.b32.xlu1 %v800_v24, %s6168_s1 }
 0xaa6   :  { %831 = vrot.lane.b32.xlu0 %v829_v29, %s6168_s1 }
 0xaaa   :  { %813 = vrot.lane.b32.xlu0 %v6423_v0, %s6167_s0 }
 0xb16   :  { %v803_v31 = vpop.permute.xlu1 %802 }
 0xb17   :  { %v805_v33 = vadd.f32 %v803_v31, %v713_v4 }
 0xb18   :  { %v832_v35 = vpop.permute.xlu0 %831 }
 0xb19   :  { %5964 = vtanh.f32 %v805_v33  ;;  %v834_v37 = vadd.f32 %v832_v35, %v714_v6 }
 0xb1b   :  { %5966 = vtanh.f32 %v834_v37 }
 0xb1c   :  { %v814_v42 = vpop.permute.xlu0 %813 }
 0xb1d   :  { %v816_v45 = vmul.f32 %v5961_v14, %v814_v42 }
 0xb26   :  { %v5965_v39 = vpop.eup %5964 }
 0xb27   :  { %809 = vrot.lane.b32.xlu1 %v5965_v39, %s6169_s21 }
 0xb28   :  { %v5967_v41 = vpop.eup %5966 }
 0xb2b   :  { %838 = vrot.lane.b32.xlu1 %v5967_v41, %s6169_s21 }
 0xb99   :  { %v810_v44 = vpop.permute.xlu1 %809 }
 0xb9a   :  { %v812_v46 = vmul.f32 %v810_v44, %v807_v43 }
 0xb9c   :  { %v817_v47 = vadd.f32 %v816_v45, %v812_v46 }
 0xb9d   :  { %v839_v58 = vpop.permute.xlu1 %838 }
 0xb9e   :  { %v850_v51 = vrot.slane %v817_v47, %v6287_v50  ;;  %861 = vrot.lane.b32.xlu0 %v817_v47, %s6169_s21  ;;  %v841_v61 = vmul.f32 %v839_v58, %v836_v48 }
 0xba0   :  { %v6460_v56 = vsel %vm844_vm7, %v850_v51, %v6416_v55  ;;  %v6463_v52 = vadd.f32 %v842_v63, %v841_v61 }
 0xc10   :  { %v862_v62 = vpop.permute.xlu0 %861 }
 0xc11   :  { %v6467_v2 = vsel %vm122_vm3, %v862_v62, %v6463_v52 }
 0xc12   :  { %5134 = vmatmul.mubr.msk.f32.vlgmr.msra.gmra.mxu0 %vm44_vm1, %v6467_v2 }
 0xc13   :  { %1179 = vmatpush1.msra.mxu0 %v6216_v16  ;;  %1226 = vmatprep.mubr.f32.mxu0 %v6165_v1 }
 0xc14   :  { %1180 = vmatprep.subr.mxu0 %v6218_v17 }
 0xc15   :  { %1181 = vmatpush1.msra.mxu0 %v6221_v18 }
 0xc16   :  { %1182 = vmatprep.subr.mxu0 %v6224_v19 }
 0xc17   :  { %1183 = vmatpush1.msra.mxu0 %v6227_v20 }
 0xc18   :  { %1184 = vmatprep.subr.mxu0 %v6230_v21 }
 0xc19   :  { %1185 = vmatpush1.msra.mxu0 %v6233_v22 }
 0xc1a   :  { %1186 = vmatprep.subr.mxu0 %v6236_v25 }
 0xc1b   :  { %1187 = vmatpush1.msra.mxu0 %v6239_v28 }
 0xc1c   :  { %1188 = vmatprep.subr.mxu0 %v6242_v30 }
 0xc1d   :  { %1189 = vmatpush1.msra.mxu0 %v6245_v32 }
 0xc1e   :  { %1190 = vmatprep.subr.mxu0 %v6248_v34 }
 0xc1f   :  { %1191 = vmatpush1.msra.mxu0 %v6251_v36 }
 0xc20   :  { %1192 = vmatprep.subr.mxu0 %v6254_v38 }
 0xc21   :  { %1193 = vmatpush1.msra.mxu0 %v6257_v40 }
 0xcd2   :  { %v936_v55 = vpop.f32.mrf.mxu0 }
 0xcd3   :  { %v937_v0 = vadd.f32 %v936_v55, %v6291_v53 }
 0xcd4   :  { %v938_v3 = vpop.f32.mrf.mxu0 }
 0xcd5   :  { %v939_v4 = vadd.f32 %v938_v3, %v6293_v54  ;;  %949 = vrot.lane.b32.xlu1 %v937_v0, %s6168_s1  ;;  %v941_v6 = vadd.f32 %v937_v0, %v865_v5 }
 0xcd7   :  { %978 = vrot.lane.b32.xlu0 %v939_v4, %s6168_s1  ;;  %v970_v8 = vadd.f32 %v939_v4, %v866_v7  ;;  %v5135_v9 = vmul.f32 -1.442695, %v941_v6 }
 0xcd9   :  { %v5136_v10 = vmul.f32 -1.442695, %v970_v8  ;;  %5968 = vpow2.f32 %v5135_v9 }
 0xcdb   :  { %5970 = vpow2.f32 %v5136_v10 }
 0xce6   :  { %v5969_v15 = vpop.eup %5968 }
 0xce7   :  { %v945_v13 = vadd.f32 1.0, %v5969_v15 }
 0xce8   :  { %v5971_v11 = vpop.eup %5970 }
 0xce9   :  { %v974_v14 = vadd.f32 1.0, %v5971_v11  ;;  %5972 = vrcp.f32 %v945_v13 }
 0xceb   :  { %5974 = vrcp.f32 %v974_v14 }
 0xcf6   :  { %v5973_v23 = vpop.eup %5972 }
 0xcf7   :  { %v959_v44 = vsub.f32 1.0, %v5973_v23 }
 0xcf8   :  { %v5975_v27 = vpop.eup %5974 }
 0xcf9   :  { %v988_v63 = vsub.f32 1.0, %v5975_v27  ;;  %v994_v55 = vmul.f32 %v5975_v27, %v6467_v2 }
 0xd47   :  { %v950_v24 = vpop.permute.xlu1 %949 }
 0xd48   :  { %v952_v26 = vmul.f32 %v5973_v23, %v950_v24 }
 0xd49   :  { %v979_v29 = vpop.permute.xlu0 %978 }
 0xd4a   :  { %v981_v31 = vmul.f32 %v5975_v27, %v979_v29  ;;  %954 = vrot.lane.b32.xlu1 %v952_v26, %s6168_s1 }
 0xd4c   :  { %983 = vrot.lane.b32.xlu0 %v981_v31, %s6168_s1 }
 0xd50   :  { %965 = vrot.lane.b32.xlu0 %v6467_v2, %s6167_s0 }
 0xdbc   :  { %v955_v33 = vpop.permute.xlu1 %954 }
 0xdbd   :  { %v957_v35 = vadd.f32 %v955_v33, %v865_v5 }
 0xdbe   :  { %v984_v37 = vpop.permute.xlu0 %983 }
 0xdbf   :  { %5976 = vtanh.f32 %v957_v35  ;;  %v986_v39 = vadd.f32 %v984_v37, %v866_v7 }
 0xdc1   :  { %5978 = vtanh.f32 %v986_v39 }
 0xdc2   :  { %v966_v43 = vpop.permute.xlu0 %965 }
 0xdc3   :  { %v968_v46 = vmul.f32 %v5973_v23, %v966_v43 }
 0xdcc   :  { %v5977_v41 = vpop.eup %5976 }
 0xdcd   :  { %961 = vrot.lane.b32.xlu1 %v5977_v41, %s6169_s21 }
 0xdce   :  { %v5979_v42 = vpop.eup %5978 }
 0xdd1   :  { %990 = vrot.lane.b32.xlu1 %v5979_v42, %s6169_s21 }
 0xe3f   :  { %v962_v45 = vpop.permute.xlu1 %961 }
 0xe40   :  { %v964_v47 = vmul.f32 %v962_v45, %v959_v44  ;;  %v6112_v45 = vld [vmem:[#allocation3] sm:$0xff] }
 0xe42   :  { %v969_v51 = vadd.f32 %v968_v46, %v964_v47 }
 0xe43   :  { %v991_v61 = vpop.permute.xlu1 %990 }
 0xe44   :  { %v999_v58 = vrot.slane %v969_v51, %v6287_v50  ;;  %1007 = vrot.lane.b32.xlu0 %v969_v51, %s6169_s21  ;;  %v993_v62 = vmul.f32 %v991_v61, %v988_v63  ;;  %v1158_v63 = vld [vmem:[#allocation2 + $0x9] ss:$0 sm:$0xff] }
 0xe46   :  { %v6503_v48 = vsel %vm852_vm8, %v999_v58, %v6460_v56  ;;  %v6506_v0 = vadd.f32 %v994_v55, %v993_v62 }
 0xeb6   :  { %v1008_v3 = vpop.permute.xlu0 %1007 }
 0xeb7   :  { %v6510_v4 = vsel %vm122_vm3, %v1008_v3, %v6506_v0 }
 0xeb8   :  { %5137 = vmatmul.mubr.msk.f32.vlgmr.msra.gmra.mxu1 %vm44_vm1, %v6510_v4 }
 0xeb9   :  { %1325 = vmatpush1.msra.mxu1 %v6216_v16  ;;  %1372 = vmatprep.mubr.f32.mxu1 %v6165_v1 }
 0xeba   :  { %1326 = vmatprep.subr.mxu1 %v6218_v17 }
 0xebb   :  { %1327 = vmatpush1.msra.mxu1 %v6221_v18 }
 0xebc   :  { %1328 = vmatprep.subr.mxu1 %v6224_v19 }
 0xebd   :  { %1329 = vmatpush1.msra.mxu1 %v6227_v20  ;;  %v1011_v20 = vld [vmem:[#allocation2 + $0x5] ss:$0 sm:$0xff] }
 0xebe   :  { %1330 = vmatprep.subr.mxu1 %v6230_v21 }
 0xebf   :  { %1331 = vmatpush1.msra.mxu1 %v6233_v22  ;;  %v1012_v22 = vld [vmem:[#allocation2 + $0xa] ss:$0 sm:$0xff] }
 0xec0   :  { %1332 = vmatprep.subr.mxu1 %v6236_v25 }
 0xec1   :  { %1333 = vmatpush1.msra.mxu1 %v6239_v28 }
 0xec2   :  { %1334 = vmatprep.subr.mxu1 %v6242_v30 }
 0xec3   :  { %1335 = vmatpush1.msra.mxu1 %v6245_v32 }
 0xec4   :  { %1336 = vmatprep.subr.mxu1 %v6248_v34 }
 0xec5   :  { %1337 = vmatpush1.msra.mxu1 %v6251_v36 }
 0xec6   :  { %1338 = vmatprep.subr.mxu1 %v6254_v38 }
 0xec7   :  { %1339 = vmatpush1.msra.mxu1 %v6257_v40 }
 0xec8   :  { %5472 = vmatprep.subr.mxu1 %v6165_v1 }
 0xf78   :  { %v1082_v16 = vpop.f32.mrf.mxu1 }
 0xf79   :  { %v1083_v17 = vadd.f32 %v1082_v16, %v6291_v53 }
 0xf7a   :  { %v1084_v18 = vpop.f32.mrf.mxu1 }
 0xf7b   :  { %v1085_v19 = vadd.f32 %v1084_v18, %v6293_v54  ;;  %1095 = vrot.lane.b32.xlu1 %v1083_v17, %s6168_s1  ;;  %v1087_v21 = vadd.f32 %v1083_v17, %v1011_v20 }
 0xf7d   :  { %1124 = vrot.lane.b32.xlu0 %v1085_v19, %s6168_s1  ;;  %v1116_v25 = vadd.f32 %v1085_v19, %v1012_v22  ;;  %v5138_v28 = vmul.f32 -1.442695, %v1087_v21 }
 0xf7f   :  { %v5139_v30 = vmul.f32 -1.442695, %v1116_v25  ;;  %5980 = vpow2.f32 %v5138_v28 }
 0xf81   :  { %5982 = vpow2.f32 %v5139_v30 }
 0xf8c   :  { %v5981_v32 = vpop.eup %5980 }
 0xf8d   :  { %v1091_v36 = vadd.f32 1.0, %v5981_v32 }
 0xf8e   :  { %v5983_v34 = vpop.eup %5982 }
 0xf8f   :  { %v1120_v38 = vadd.f32 1.0, %v5983_v34  ;;  %5984 = vrcp.f32 %v1091_v36 }
 0xf91   :  { %5986 = vrcp.f32 %v1120_v38 }
 0xf9c   :  { %v5985_v40 = vpop.eup %5984 }
 0xf9d   :  { %v1105_v23 = vsub.f32 1.0, %v5985_v40 }
 0xf9e   :  { %v5987_v5 = vpop.eup %5986 }
 0xf9f   :  { %v1134_v37 = vsub.f32 1.0, %v5987_v5  ;;  %v1140_v41 = vmul.f32 %v5987_v5, %v6510_v4 }
 0xfed   :  { %v1096_v56 = vpop.permute.xlu1 %1095 }
 0xfee   :  { %v1098_v2 = vmul.f32 %v5985_v40, %v1096_v56 }
 0xfef   :  { %v1125_v6 = vpop.permute.xlu0 %1124 }
 0xff0   :  { %v1127_v7 = vmul.f32 %v5987_v5, %v1125_v6  ;;  %1100 = vrot.lane.b32.xlu1 %v1098_v2, %s6168_s1 }
 0xff2   :  { %1129 = vrot.lane.b32.xlu0 %v1127_v7, %s6168_s1 }
 0xff6   :  { %1111 = vrot.lane.b32.xlu0 %v6510_v4, %s6167_s0 }
0x1062   :  { %v1101_v8 = vpop.permute.xlu1 %1100 }
0x1063   :  { %v1103_v9 = vadd.f32 %v1101_v8, %v1011_v20 }
0x1064   :  { %v1130_v10 = vpop.permute.xlu0 %1129 }
0x1065   :  { %5988 = vtanh.f32 %v1103_v9  ;;  %v1132_v15 = vadd.f32 %v1130_v10, %v1012_v22 }
0x1067   :  { %5990 = vtanh.f32 %v1132_v15 }
0x1068   :  { %v1112_v14 = vpop.permute.xlu0 %1111 }
0x1069   :  { %v1114_v26 = vmul.f32 %v5985_v40, %v1112_v14 }
0x1072   :  { %v5989_v11 = vpop.eup %5988 }
0x1073   :  { %1107 = vrot.lane.b32.xlu1 %v5989_v11, %s6169_s21 }
0x1074   :  { %v5991_v13 = vpop.eup %5990 }
0x1077   :  { %1136 = vrot.lane.b32.xlu1 %v5991_v13, %s6169_s21 }
0x10e5   :  { %v1108_v24 = vpop.permute.xlu1 %1107 }
0x10e6   :  { %v1110_v27 = vmul.f32 %v1108_v24, %v1105_v23 }
0x10e8   :  { %v1115_v29 = vadd.f32 %v1114_v26, %v1110_v27 }
0x10e9   :  { %v1137_v35 = vpop.permute.xlu1 %1136 }
0x10ea   :  { %v1145_v31 = vrot.slane %v1115_v29, %v6287_v50  ;;  %1153 = vrot.lane.b32.xlu0 %v1115_v29, %s6169_s21  ;;  %v1139_v39 = vmul.f32 %v1137_v35, %v1134_v37  ;;  %v1303_v35 = vld [vmem:[#allocation2 + $0x7] ss:$0 sm:$0xff] }
0x10ec   :  { %v1146_v33 = vsel %vm700_vm9, %v1145_v31, %v6503_v48  ;;  %v6548_v42 = vadd.f32 %v1140_v41, %v1139_v39  ;;  %v1157_v48 = vld [vmem:[#allocation2 + $0x6] ss:$0 sm:$0xff]  ;;  %v1304_v39 = vld [vmem:[#allocation2 + $0x8] ss:$0 sm:$0xff] }
0x115c   :  { %v1154_v43 = vpop.permute.xlu0 %1153 }
0x115d   :  { %v1156_v44 = vsel %vm122_vm3, %v1154_v43, %v6548_v42 }
0x115e   :  { %5140 = vmatmul.mubr.msk.f32.vlgmr.msra.gmra.mxu0 %vm44_vm1, %v1156_v44 }
0x115f   :  { %5460 = vmatprep.mubr.msk.f32.mxu0 %vm122_vm3, %v6112_v45 }
0x121e   :  { %v1228_v46 = vpop.f32.mrf.mxu0 }
0x121f   :  { %v1229_v47 = vadd.f32 %v1228_v46, %v6291_v53 }
0x1220   :  { %v1230_v51 = vpop.f32.mrf.mxu0 }
0x1221   :  { %v1231_v58 = vadd.f32 %v1230_v51, %v6293_v54  ;;  %1241 = vrot.lane.b32.xlu1 %v1229_v47, %s6168_s1  ;;  %v1233_v61 = vadd.f32 %v1229_v47, %v1157_v48 }
0x1223   :  { %1270 = vrot.lane.b32.xlu0 %v1231_v58, %s6168_s1  ;;  %v1262_v62 = vadd.f32 %v1231_v58, %v1158_v63  ;;  %v5141_v55 = vmul.f32 -1.442695, %v1233_v61 }
0x1225   :  { %v5142_v3 = vmul.f32 -1.442695, %v1262_v62  ;;  %5992 = vpow2.f32 %v5141_v55  ;;  %v1458_v62 = vld [vmem:[#allocation3 + $0x1d0] sm:$0xff]  ;;  %v1457_v55 = vld [vmem:[#allocation3 + $0x1c0] sm:$0xff] }
0x1226   :  { %5452 = vmatprep.subr.mxu0 %v1458_v62 }
0x1227   :  { %5994 = vpow2.f32 %v5142_v3  ;;  %5453 = vmatpush3.msra.mxu0 %v1458_v62  ;;  %v1456_v3 = vld [vmem:[#allocation3 + $0x1b0] sm:$0xff] }
0x1228   :  { %5454 = vmatprep.subr.mxu0 %v1457_v55 }
0x1229   :  { %5455 = vmatpush3.msra.mxu0 %v1457_v55 }
0x122a   :  { %5456 = vmatprep.subr.mxu0 %v1456_v3 }
0x122b   :  { %5457 = vmatpush3.msra.mxu0 %v1456_v3 }
0x1232   :  { %v5993_v4 = vpop.eup %5992 }
0x1233   :  { %v1237_v17 = vadd.f32 1.0, %v5993_v4  ;;  %v1455_v4 = vld [vmem:[#allocation3 + $0x1a0] sm:$0xff] }
0x1234   :  { %v5995_v16 = vpop.eup %5994  ;;  %5458 = vmatprep.subr.mxu0 %v1455_v4 }
0x1235   :  { %v1266_v18 = vadd.f32 1.0, %v5995_v16  ;;  %5996 = vrcp.f32 %v1237_v17  ;;  %5459 = vmatpush3.msra.mxu0 %v1455_v4  ;;  %v6113_v16 = vld [vmem:[#allocation3 + $0x10] sm:$0xff]  ;;  %v6114_v17 = vld [vmem:[#allocation3 + $0x20] sm:$0xff] }
0x1236   :  { %5461 = vmatmul.mubr.msk.f32.vlgmr.msra.gmra.mxu0 %vm122_vm3, %v6113_v16  ;;  %5491 = vmatprep.subr.mxu0 %v6165_v1 }
0x1237   :  { %5998 = vrcp.f32 %v1266_v18  ;;  %5463 = vmatprep.mubr.msk.f32.mxu0 %vm122_vm3, %v6114_v17  ;;  %v6115_v18 = vld [vmem:[#allocation3 + $0x30] sm:$0xff] }
0x123a   :  { %5464 = vmatmul.mubr.msk.f32.gmra.mxu0 %vm122_vm3, %v6115_v18  ;;  %v6676_v18 = vld [vmem:[#allocation3 + $0x230] ss:$0 sm:$0xff] }
0x1242   :  { %v5997_v19 = vpop.eup %5996 }
0x1243   :  { %v1251_v2 = vsub.f32 1.0, %v5997_v19 }
0x1244   :  { %v5999_v22 = vpop.eup %5998 }
0x1245   :  { %v1280_v11 = vsub.f32 1.0, %v5999_v22  ;;  %v1286_v14 = vmul.f32 %v5999_v22, %v1156_v44 }
0x1293   :  { %v1242_v20 = vpop.permute.xlu1 %1241 }
0x1294   :  { %v1244_v21 = vmul.f32 %v5997_v19, %v1242_v20  ;;  %v6117_v20 = vld [vmem:[#allocation3 + $0x50] sm:$0xff] }
0x1295   :  { %v1271_v25 = vpop.permute.xlu0 %1270 }
0x1296   :  { %v1273_v28 = vmul.f32 %v5999_v22, %v1271_v25  ;;  %1246 = vrot.lane.b32.xlu1 %v1244_v21, %s6168_s1  ;;  %v6118_v21 = vld [vmem:[#allocation3 + $0x60] sm:$0xff]  ;;  %v6119_v22 = vld [vmem:[#allocation3 + $0x70] sm:$0xff] }
0x1298   :  { %1275 = vrot.lane.b32.xlu0 %v1273_v28, %s6168_s1 }
0x129c   :  { %1257 = vrot.lane.b32.xlu0 %v1156_v44, %s6167_s0 }
0x1308   :  { %v1247_v30 = vpop.permute.xlu1 %1246 }
0x1309   :  { %v1249_v32 = vadd.f32 %v1247_v30, %v1157_v48 }
0x130a   :  { %v1276_v34 = vpop.permute.xlu0 %1275 }
0x130b   :  { %6000 = vtanh.f32 %v1249_v32  ;;  %v1278_v36 = vadd.f32 %v1276_v34, %v1158_v63  ;;  %v6604_v34 = vld [vmem:[#allocation3 + $0x210] sm:$0xff] }
0x130c   :  { %5492 = vmatpush3.msra.mxu0 %v6604_v34 }
0x130d   :  { %6002 = vtanh.f32 %v1278_v36  ;;  %v6606_v36 = vld [vmem:[#allocation3 + $0x200] sm:$0xff]  ;;  %5493 = vmatprep.subr.mxu0 %v6165_v1 }
0x130e   :  { %v1258_v56 = vpop.permute.xlu0 %1257  ;;  %5494 = vmatpush3.msra.mxu0 %v6606_v36 }
0x130f   :  { %v1260_v6 = vmul.f32 %v5997_v19, %v1258_v56  ;;  %v6116_v19 = vld [vmem:[#allocation3 + $0x40] sm:$0xff]  ;;  %5495 = vmatprep.subr.mxu0 %v6165_v1 }
0x1310   :  { %5466 = vmatprep.mubr.msk.f32.mxu0 %vm122_vm3, %v6116_v19  ;;  %v6614_v56 = vld [vmem:[#allocation3 + $0x1e0] sm:$0xff] }
0x1311   :  { %5467 = vmatmul.mubr.msk.f32.gmra.mxu0 %vm122_vm3, %v6117_v20 }
0x1312   :  { %5469 = vmatprep.mubr.msk.f32.mxu0 %vm122_vm3, %v6118_v21 }
0x1315   :  { %5470 = vmatmul.mubr.msk.f32.gmra.mxu0 %vm122_vm3, %v6119_v22 }
0x1316   :  { %5499 = vmatprep.mubr.msk.f32.mxu0 %vm6166_vm0, %v6165_v1 }
0x1318   :  { %v6001_v38 = vpop.eup %6000 }
0x1319   :  { %1253 = vrot.lane.b32.xlu1 %v6001_v38, %s6169_s21  ;;  %v6610_v38 = vld [vmem:[#allocation3 + $0x1f0] sm:$0xff] }
0x131a   :  { %v6003_v40 = vpop.eup %6002  ;;  %5496 = vmatpush3.msra.mxu0 %v6610_v38 }
0x131b   :  { %5497 = vmatprep.subr.mxu0 %v6165_v1 }
0x131c   :  { %5498 = vmatpush3.msra.mxu0 %v6614_v56 }
0x131d   :  { %1282 = vrot.lane.b32.xlu1 %v6003_v40, %s6169_s21  ;;  %5512 = vmatprep.subr.mxu0 %v6165_v1 }
0x138b   :  { %v1254_v5 = vpop.permute.xlu1 %1253 }
0x138c   :  { %v1256_v7 = vmul.f32 %v1254_v5, %v1251_v2  ;;  %v5462_v5 = vpop.f32.mrf.mxu0 }
0x138e   :  { %v1261_v8 = vadd.f32 %v1260_v6, %v1256_v7  ;;  %v1564_v6 = vpop.f32.mrf.mxu0 }
0x138f   :  { %v1283_v15 = vpop.permute.xlu1 %1282 }
0x1390   :  { %v1291_v9 = vrot.slane %v1261_v8, %v6287_v50  ;;  %1299 = vrot.lane.b32.xlu0 %v1261_v8, %s6169_s21  ;;  %v1285_v13 = vmul.f32 %v1283_v15, %v1280_v11  ;;  %v5465_v7 = vpop.f32.mrf.mxu0  ;;  %v1459_v15 = vld [vmem:[#allocation3 + $0x220] ss:$0 sm:$0xff] }
0x1392   :  { %v6568_v10 = vsel %vm548_vm10, %v1291_v9, %v1146_v33  ;;  %v6570_v23 = vadd.f32 %v1286_v14, %v1285_v13  ;;  %v1574_v8 = vpop.f32.mrf.mxu0 }
0x13d1   :  { %v5468_v9 = vpop.f32.mrf.mxu0 }
0x13d3   :  { %v1584_v11 = vpop.f32.mrf.mxu0 }
0x13d5   :  { %v5471_v13 = vpop.f32.mrf.mxu0 }
0x13d6   :  { %v6622_v14 = vadd.f32 %v5471_v13, %v1459_v15 }
0x1402   :  { %v1300_v24 = vpop.permute.xlu0 %1299 }
0x1403   :  { %v6574_v26 = vsel %vm122_vm3, %v1300_v24, %v6570_v23  ;;  %v1594_v24 = vpop.f32.mrf.mxu0 }
0x1404   :  { %5143 = vmatmul.mubr.msk.f32.vlgmr.msra.gmra.mxu1 %vm44_vm1, %v6574_v26 }
0x1405   :  { %5488 = vmatprep.mubr.msk.f32.mxu1 %vm6166_vm0, %v6165_v1  ;;  %5473 = vmatpush3.msra.mxu1 %v6622_v14 }
0x1406   :  { %5474 = vmatprep.subr.mxu1 %v6165_v1 }
0x14c4   :  { %v1374_v27 = vpop.f32.mrf.mxu1 }
0x14c5   :  { %v1375_v29 = vadd.f32 %v1374_v27, %v6291_v53  ;;  %v6624_v27 = vadd.f32 %v5468_v9, %v1459_v15 }
0x14c6   :  { %v1376_v31 = vpop.f32.mrf.mxu1 }
0x14c7   :  { %v1377_v33 = vadd.f32 %v1376_v31, %v6293_v54  ;;  %1387 = vrot.lane.b32.xlu1 %v1375_v29, %s6168_s1  ;;  %v1379_v37 = vadd.f32 %v1375_v29, %v1303_v35  ;;  %v6626_v29 = vadd.f32 %v1594_v24, %v1459_v15  ;;  %v6630_v31 = vadd.f32 %v1584_v11, %v1459_v15 }
0x14c9   :  { %1416 = vrot.lane.b32.xlu0 %v1377_v33, %s6168_s1  ;;  %v1408_v41 = vadd.f32 %v1377_v33, %v1304_v39  ;;  %v5144_v43 = vmul.f32 -1.442695, %v1379_v37  ;;  %5475 = vmatpush3.msra.mxu1 %v6626_v29  ;;  %v6634_v33 = vadd.f32 %v5465_v7, %v1459_v15  ;;  %v6642_v37 = vadd.f32 %v5462_v5, %v1459_v15 }
0x14ca   :  { %5476 = vmatprep.subr.mxu1 %v6165_v1  ;;  %v554_v5 = vrot.slane %v6375_v60, %v6287_v50  ;;  %v858_v7 = vrot.slane %v6463_v52, %v6287_v50  ;;  %v1296_v60 = vrot.slane %v6570_v23, %v6287_v50 }
0x14cb   :  { %v5145_v44 = vmul.f32 -1.442695, %v1408_v41  ;;  %6004 = vpow2.f32 %v5144_v43  ;;  %5477 = vmatpush3.msra.mxu1 %v6624_v27  ;;  %v5154_v41 = vsel %vm1603_vm11, 1.0, %v6165_v1 }
0x14cc   :  { %5478 = vmatprep.subr.mxu1 %v6165_v1 }
0x14cd   :  { %6006 = vpow2.f32 %v5145_v44  ;;  %5479 = vmatpush3.msra.mxu1 %v6630_v31 }
0x14ce   :  { %5480 = vmatprep.subr.mxu1 %v6165_v1 }
0x14cf   :  { %5481 = vmatpush3.msra.mxu1 %v6634_v33 }
0x14d0   :  { %5482 = vmatprep.subr.mxu1 %v6165_v1 }
0x14d8   :  { %v6005_v45 = vpop.eup %6004 }
0x14d9   :  { %v1383_v47 = vadd.f32 1.0, %v6005_v45 }
0x14da   :  { %v6007_v46 = vpop.eup %6006 }
0x14db   :  { %v1412_v51 = vadd.f32 1.0, %v6007_v46  ;;  %6008 = vrcp.f32 %v1383_v47 }
0x14dd   :  { %6010 = vrcp.f32 %v1412_v51 }
0x14e8   :  { %v6584_v53 = vpop.eup %6008 }
0x14e9   :  { %v1397_v44 = vsub.f32 1.0, %v6584_v53 }
0x14ea   :  { %v6587_v48 = vpop.eup %6010 }
0x14eb   :  { %v1432_v55 = vmul.f32 %v6587_v48, %v6574_v26 }
0x1539   :  { %v1388_v54 = vpop.permute.xlu1 %1387 }
0x153a   :  { %v1390_v58 = vmul.f32 %v6584_v53, %v1388_v54 }
0x153b   :  { %v1417_v61 = vpop.permute.xlu0 %1416 }
0x153c   :  { %v1419_v63 = vmul.f32 %v6587_v48, %v1417_v61  ;;  %1392 = vrot.lane.b32.xlu1 %v1390_v58, %s6168_s1 }
0x153e   :  { %1421 = vrot.lane.b32.xlu0 %v1419_v63, %s6168_s1  ;;  %v1426_v63 = vsub.f32 1.0, %v6587_v48 }
0x1542   :  { %1403 = vrot.lane.b32.xlu0 %v6574_v26, %s6167_s0 }
0x15ae   :  { %v1393_v25 = vpop.permute.xlu1 %1392 }
0x15af   :  { %v1395_v28 = vadd.f32 %v1393_v25, %v1303_v35  ;;  %v6638_v35 = vadd.f32 %v1574_v8, %v1459_v15  ;;  %v1004_v8 = vrot.slane %v6506_v0, %v6287_v50 }
0x15b0   :  { %v1422_v30 = vpop.permute.xlu0 %1421 }
0x15b1   :  { %6012 = vtanh.f32 %v1395_v28  ;;  %v1424_v32 = vadd.f32 %v1422_v30, %v1304_v39  ;;  %v6646_v39 = vadd.f32 %v1564_v6, %v1459_v15  ;;  %5483 = vmatpush3.msra.mxu1 %v6638_v35  ;;  %v706_v6 = vrot.slane %v6419_v59, %v6287_v50 }
0x15b2   :  { %5484 = vmatprep.subr.mxu1 %v6165_v1  ;;  %v1150_v15 = vrot.slane %v6548_v42, %v6287_v50 }
0x15b3   :  { %6014 = vtanh.f32 %v1424_v32  ;;  %5485 = vmatpush3.msra.mxu1 %v6642_v37 }
0x15b4   :  { %5486 = vmatprep.subr.mxu1 %v6165_v1  ;;  %v1404_v43 = vpop.permute.xlu0 %1403 }
0x15b5   :  { %5487 = vmatpush3.msra.mxu1 %v6646_v39  ;;  %v1406_v46 = vmul.f32 %v6584_v53, %v1404_v43 }
0x15b6   :  { %5502 = vmatprep.subr.mxu1 %v6165_v1  ;;  %5489 = vmatmul.mubr.msk.f32.vlgmr.msra.gmra.mxu1 %vm44_vm1, %v5154_v41 }
0x15b7   :  { %5504 = vmatprep.mubr.msk.f32.mxu1 %vm6166_vm0, %v6165_v1 }
0x15be   :  { %v6013_v40 = vpop.eup %6012 }
0x15bf   :  { %1399 = vrot.lane.b32.xlu1 %v6013_v40, %s6169_s21 }
0x15c0   :  { %v6015_v2 = vpop.eup %6014 }
0x15c3   :  { %1428 = vrot.lane.b32.xlu1 %v6015_v2, %s6169_s21  ;;  %v402_v2 = vrot.slane %v6327_v57, %v6287_v50 }
0x15c5   :  { %v403_v9 = vsel %vm396_vm12, %v402_v2, 0.0  ;;  %v6792_v2 = vld [vmem:[#allocation3 + $0x300] sm:$0xff] }
0x15c6   :  { %v555_v57 = vsel %vm548_vm10, %v554_v5, %v403_v9  ;;  %v6794_v5 = vld [vmem:[#allocation3 + $0x2f0] sm:$0xff] }
0x15c7   :  { %v707_v59 = vsel %vm700_vm9, %v706_v6, %v555_v57  ;;  %v6798_v6 = vld [vmem:[#allocation3 + $0x2e0] sm:$0xff]  ;;  %vm2273_vm9 = vcmp.eq.s32.totalorder %v6208_v12, 0 }
0x15c8   :  { %v859_v0 = vsel %vm852_vm8, %v858_v7, %v707_v59  ;;  %v6802_v7 = vld [vmem:[#allocation3 + $0x2d0] sm:$0xff] }
0x15c9   :  { %v1005_v11 = vsel %vm844_vm7, %v1004_v8, %v859_v0  ;;  %v6808_v8 = vld [vmem:[#allocation3 + $0x2c0] ss:$0 sm:$0xff] }
0x15ca   :  { %v1151_v42 = vsel %vm692_vm6, %v1150_v15, %v1005_v11 }
0x15cb   :  { %v1297_v13 = vsel %vm540_vm5, %v1296_v60, %v1151_v42 }
0x1631   :  { %v1400_v45 = vpop.permute.xlu1 %1399 }
0x1632   :  { %v1402_v47 = vmul.f32 %v1400_v45, %v1397_v44 }
0x1634   :  { %v1407_v51 = vadd.f32 %v1406_v46, %v1402_v47 }
0x1635   :  { %v1429_v61 = vpop.permute.xlu1 %1428 }
0x1636   :  { %v1437_v54 = vrot.slane %v1407_v51, %v6287_v50  ;;  %1445 = vrot.lane.b32.xlu0 %v1407_v51, %s6169_s21  ;;  %v1431_v62 = vmul.f32 %v1429_v61, %v1426_v63 }
0x1638   :  { %v1438_v58 = vsel %vm396_vm12, %v1437_v54, %v6568_v10  ;;  %v1433_v53 = vadd.f32 %v1432_v55, %v1431_v62 }
0x163a   :  { %v1442_v52 = vrot.slane %v1433_v53, %v6287_v50 }
0x163c   :  { %v1443_v23 = vsel %vm388_vm4, %v1442_v52, %v1297_v13  ;;  %v6834_v52 = vld [vmem:[#allocation3 + $0x310] ss:$0 sm:$0xff] }
0x163d   :  { %v1449_v41 = vadd.f32 %v1443_v23, %v1438_v58 }
0x1676   :  { %v1675_v16 = vpop.f32.mrf.mxu1 }
0x1678   :  { %v5490_v17 = vpop.f32.mrf.mxu1 }
0x1679   :  { %v6740_v17 = vld [vmem:[#allocation3 + $0x290] sm:$0xff] }
0x16a8   :  { %v1446_v3 = vpop.permute.xlu0 %1445 }
0x16a9   :  { %v1448_v4 = vsel %vm122_vm3, %v1446_v3, %v1433_v53 }
0x16aa   :  { %5500 = vmatmul.mubr.msk.f32.vlgmr.msra.gmra.mxu0 %vm122_vm3, %v1448_v4 }
0x16ab   :  { %5520 = vmatprep.mubr.msk.f32.mxu0 %vm6166_vm0, %v6165_v1 }
0x176a   :  { %v1748_v10 = vpop.f32.mrf.mxu0 }
0x176b   :  { %v1749_v19 = vadd.f32 %v1748_v10, %v6676_v18 }
0x176c   :  { %v5501_v20 = vpop.f32.mrf.mxu0 }
0x176d   :  { %1760 = vrot.lane.b32.xlu1 %v1749_v19, %s6168_s1  ;;  %v1752_v26 = vadd.f32 %v1749_v19, %v1675_v16 }
0x176f   :  { %v5157_v48 = vmul.f32 -1.442695, %v1752_v26  ;;  %v6746_v26 = vld [vmem:[#allocation3 + $0x270] sm:$0xff] }
0x1771   :  { %6016 = vpow2.f32 %v5157_v48  ;;  %v6749_v48 = vld [vmem:[#allocation3 + $0x260] sm:$0xff] }
0x177e   :  { %v6017_v21 = vpop.eup %6016 }
0x177f   :  { %v1756_v22 = vadd.f32 1.0, %v6017_v21  ;;  %v6755_v21 = vld [vmem:[#allocation3 + $0x250] sm:$0xff] }
0x1781   :  { %6018 = vrcp.f32 %v1756_v22  ;;  %v6759_v22 = vld [vmem:[#allocation3 + $0x240] sm:$0xff] }
0x178e   :  { %v6019_v25 = vpop.eup %6018 }
0x178f   :  { %v1770_v43 = vsub.f32 1.0, %v6019_v25 }
0x17df   :  { %v1761_v28 = vpop.permute.xlu1 %1760 }
0x17e0   :  { %v1763_v30 = vmul.f32 %v6019_v25, %v1761_v28 }
0x17e2   :  { %1765 = vrot.lane.b32.xlu0 %v1763_v30, %s6168_s1 }
0x17e6   :  { %1776 = vrot.lane.b32.xlu0 %v1448_v4, %s6167_s0  ;;  %v6734_v4 = vld [vmem:[#allocation3 + $0x2b0] sm:$0xff] }
0x17e7   :  { %5513 = vmatpush3.msra.mxu0 %v6734_v4 }
0x17e8   :  { %5514 = vmatprep.subr.mxu0 %v6165_v1 }
0x1854   :  { %v1766_v32 = vpop.permute.xlu0 %1765 }
0x1855   :  { %v1768_v40 = vadd.f32 %v1766_v32, %v1675_v16  ;;  %v6736_v16 = vld [vmem:[#allocation3 + $0x2a0] sm:$0xff] }
0x1856   :  { %5515 = vmatpush3.msra.mxu0 %v6736_v16 }
0x1857   :  { %6020 = vtanh.f32 %v1768_v40  ;;  %5516 = vmatprep.subr.mxu0 %v6165_v1 }
0x1858   :  { %v1777_v50 = vpop.permute.xlu0 %1776  ;;  %5517 = vmatpush3.msra.mxu0 %v6740_v17 }
0x1859   :  { %v1779_v45 = vmul.f32 %v6019_v25, %v1777_v50  ;;  %5518 = vmatprep.subr.mxu0 %v6165_v1  ;;  %v6785_v25 = vld [vmem:[#allocation3 + $0x280] sm:$0xff] }
0x185a   :  { %5519 = vmatpush3.msra.mxu0 %v6785_v25 }
0x185b   :  { %5534 = vmatprep.subr.mxu0 %v6165_v1 }
0x1864   :  { %v6021_v24 = vpop.eup %6020 }
0x1865   :  { %1772 = vrot.lane.b32.xlu1 %v6021_v24, %s6169_s21 }
0x1869   :  { %1785 = vrot.lane.b32.xlu1 %v1449_v41, %s6169_s21 }
0x18d7   :  { %v1773_v44 = vpop.permute.xlu1 %1772 }
0x18d8   :  { %v1775_v46 = vmul.f32 %v1773_v44, %v1770_v43 }
0x18da   :  { %v6715_v47 = vadd.f32 %v1779_v45, %v1775_v46 }
0x18db   :  { %v6717_v51 = vpop.permute.xlu1 %1785 }
0x18dc   :  { %1782 = vrot.lane.b32.xlu0 %v6715_v47, %s6169_s21  ;;  %5503 = vmatpush3.xpose.msk.msra.mxu1 %vm122_vm3, %v6717_v51 }
0x18dd   :  { %5507 = vmatprep.subr.mxu1 %v6165_v1 }
0x194e   :  { %v6724_v49 = vpop.permute.xlu0 %1782 }
0x194f   :  { %5505 = vmatmul.mubr.msk.f32.vlgmr.msra.gmra.mxu1 %vm122_vm3, %v6724_v49 }
0x1950   :  { %5508 = vmatpush3.msra.mxu1 %v6717_v51  ;;  %5509 = vmatprep.mubr.msk.f32.mxu1 %vm6166_vm0, %v6165_v1 }
0x1951   :  { %5523 = vmatprep.subr.mxu1 %v6165_v1 }
0x1a0f   :  { %v1857_v54 = vpop.f32.mrf.mxu1 }
0x1a10   :  { %v1862_v58 = vsel %vm1861_vm13, %v1857_v54, -inf }
0x1a11   :  { %1863 = vmax.xlane.f32.xlu1 %v1862_v58  ;;  %v5506_v61 = vpop.f32.mrf.mxu1 }
0x1a9a   :  { %v1864_v63 = vpop.xlane.xlu1 %1863 }
0x1a9b   :  { %v1865_v62 = vsub.f32 %v1857_v54, %v1864_v63 }
0x1a9d   :  { %v1866_v55 = vmul.f32 1.442695, %v1865_v62 }
0x1a9f   :  { %6022 = vpow2.f32 %v1866_v55 }
0x1aac   :  { %v6023_v53 = vpop.eup %6022 }
0x1aad   :  { %v1868_v3 = vsel %vm1861_vm13, %v6023_v53, 0.0 }
0x1aae   :  { %1869 = vadd.xlane.f32.xlu0 %v1868_v3 }
0x1b37   :  { %v1870_v10 = vpop.xlane.xlu0 %1869 }
0x1b38   :  { %6024 = vrcp.f32 %v1870_v10 }
0x1b45   :  { %v6025_v19 = vpop.eup %6024 }
0x1b46   :  { %v1872_v20 = vmul.f32 %v6025_v19, %v6023_v53 }
0x1b48   :  { %5510 = vmatmul.mubr.msk.f32.vlgmr.msra.gmra.mxu1 %vm1874_vm14, %v1872_v20 }
0x1b49   :  { %5524 = vmatpush3.msra.mxu1 %v6746_v26  ;;  %5531 = vmatprep.mubr.msk.f32.mxu1 %vm6166_vm0, %v6165_v1 }
0x1b4a   :  { %5525 = vmatprep.subr.mxu1 %v6165_v1 }
0x1b4b   :  { %5526 = vmatpush3.msra.mxu1 %v6749_v48 }
0x1b4c   :  { %5527 = vmatprep.subr.mxu1 %v6165_v1 }
0x1b4d   :  { %5528 = vmatpush3.msra.mxu1 %v6755_v21 }
0x1b4e   :  { %5529 = vmatprep.subr.mxu1 %v6165_v1 }
0x1b4f   :  { %5530 = vmatpush3.msra.mxu1 %v6759_v22 }
0x1b50   :  { %5532 = vmatmul.mubr.msk.f32.vlgmr.msra.gmra.mxu1 %vm122_vm3, %v6724_v49  ;;  %5545 = vmatprep.subr.mxu1 %v6165_v1 }
0x1b51   :  { %5546 = vmatpush3.msra.mxu1 %v6622_v14  ;;  %5561 = vmatprep.mubr.msk.f32.mxu1 %vm6166_vm0, %v6165_v1 }
0x1b52   :  { %5547 = vmatprep.subr.mxu1 %v6165_v1 }
0x1b53   :  { %5548 = vmatpush3.msra.mxu1 %v6626_v29 }
0x1b54   :  { %5549 = vmatprep.subr.mxu1 %v6165_v1 }
0x1b55   :  { %5550 = vmatpush3.msra.mxu1 %v6624_v27 }
0x1b56   :  { %5551 = vmatprep.subr.mxu1 %v6165_v1 }
0x1b57   :  { %5552 = vmatpush3.msra.mxu1 %v6630_v31 }
0x1b58   :  { %5553 = vmatprep.subr.mxu1 %v6165_v1 }
0x1b59   :  { %5554 = vmatpush3.msra.mxu1 %v6634_v33 }
0x1b5a   :  { %5555 = vmatprep.subr.mxu1 %v6165_v1 }
0x1b5b   :  { %5556 = vmatpush3.msra.mxu1 %v6638_v35 }
0x1b5c   :  { %5557 = vmatprep.subr.mxu1 %v6165_v1 }
0x1b5d   :  { %5558 = vmatpush3.msra.mxu1 %v6642_v37 }
0x1b5e   :  { %5559 = vmatprep.subr.mxu1 %v6165_v1 }
0x1b5f   :  { %5560 = vmatpush3.msra.mxu1 %v6646_v39 }
0x1b60   :  { %5575 = vmatprep.subr.mxu1 %v6165_v1 }
0x1c08   :  { %v1944_v28 = vpop.f32.mrf.mxu1 }
0x1c09   :  { %5521 = vmatmul.mubr.msk.f32.vlgmr.msra.gmra.mxu0 %vm122_vm3, %v1944_v28 }
0x1c0a   :  { %v5511_v30 = vpop.f32.mrf.mxu1  ;;  %5542 = vmatprep.mubr.msk.f32.mxu0 %vm6166_vm0, %v6165_v1  ;;  %5535 = vmatpush3.msra.mxu0 %v6792_v2 }
0x1c0b   :  { %5536 = vmatprep.subr.mxu0 %v6165_v1 }
0x1c0c   :  { %5537 = vmatpush3.msra.mxu0 %v6794_v5 }
0x1c0d   :  { %5538 = vmatprep.subr.mxu0 %v6165_v1 }
0x1c0e   :  { %5539 = vmatpush3.msra.mxu0 %v6798_v6 }
0x1c0f   :  { %5540 = vmatprep.subr.mxu0 %v6165_v1 }
0x1c10   :  { %v2087_v32 = vpop.f32.mrf.mxu1  ;;  %5541 = vmatpush3.msra.mxu0 %v6802_v7 }
0x1c11   :  { %5564 = vmatprep.subr.mxu0 %v6165_v1 }
0x1c12   :  { %v5533_v40 = vpop.f32.mrf.mxu1 }
0x1cc9   :  { %v2017_v9 = vpop.f32.mrf.mxu0 }
0x1cca   :  { %v2088_v15 = vadd.f32 %v2087_v32, %v2017_v9 }
0x1ccb   :  { %v5522_v57 = vpop.f32.mrf.mxu0 }
0x1ccc   :  { %v2091_v60 = vadd.f32 %v2088_v15, %v6808_v8 }
0x1cce   :  { %6026 = vtanh.f32 %v2091_v60 }
0x1cdb   :  { %v6027_v59 = vpop.eup %6026 }
0x1cdc   :  { %5543 = vmatmul.mubr.msk.f32.vlgmr.msra.gmra.mxu0 %vm122_vm3, %v6027_v59 }
0x1cdd   :  { %5565 = vmatpush3.msra.mxu0 %v6604_v34  ;;  %5572 = vmatprep.mubr.msk.f32.mxu0 %vm6166_vm0, %v6165_v1 }
0x1cde   :  { %5566 = vmatprep.subr.mxu0 %v6165_v1 }
0x1cdf   :  { %5567 = vmatpush3.msra.mxu0 %v6606_v36 }
0x1ce0   :  { %5568 = vmatprep.subr.mxu0 %v6165_v1 }
0x1ce1   :  { %5569 = vmatpush3.msra.mxu0 %v6610_v38 }
0x1ce2   :  { %5570 = vmatprep.subr.mxu0 %v6165_v1 }
0x1ce3   :  { %5571 = vmatpush3.msra.mxu0 %v6614_v56 }
0x1ce4   :  { %5573 = vmatmul.mubr.msk.f32.vlgmr.msra.gmra.mxu0 %vm122_vm3, %v6724_v49  ;;  %5585 = vmatprep.subr.mxu0 %v6165_v1 }
0x1ce5   :  { %5586 = vmatpush3.msra.mxu0 %v6734_v4  ;;  %5593 = vmatprep.mubr.msk.f32.mxu0 %vm6166_vm0, %v6165_v1 }
0x1ce6   :  { %5587 = vmatprep.subr.mxu0 %v6165_v1 }
0x1ce7   :  { %5588 = vmatpush3.msra.mxu0 %v6736_v16 }
0x1ce8   :  { %5589 = vmatprep.subr.mxu0 %v6165_v1 }
0x1ce9   :  { %5590 = vmatpush3.msra.mxu0 %v6740_v17 }
0x1cea   :  { %5591 = vmatprep.subr.mxu0 %v6165_v1 }
0x1ceb   :  { %5592 = vmatpush3.msra.mxu0 %v6785_v25 }
0x1cec   :  { %5607 = vmatprep.subr.mxu0 %v6165_v1 }
0x1d9c   :  { %v2162_v0 = vpop.f32.mrf.mxu0 }
0x1d9d   :  { %v6837_v11 = vadd.f32 %v2162_v0, %v6834_v52 }
0x1d9e   :  { %v5544_v42 = vpop.f32.mrf.mxu0 }
0x1d9f   :  { %v2167_v13 = vsel %vm2166_vm15, %v6837_v11, -inf }
0x1da0   :  { %2168 = vmax.xlane.f32.xlu0 %v2167_v13 }
0x1da4   :  { %v2342_v24 = vpop.f32.mrf.mxu0 }
0x1da5   :  { %v2343_v46 = vadd.f32 %v2342_v24, %v6676_v18 }
0x1da6   :  { %v5574_v23 = vpop.f32.mrf.mxu0 }
0x1e29   :  { %v6841_v41 = vpop.xlane.xlu0 %2168 }
0x1e2a   :  { %vm2178_vm2 = vcmp.ge.f32.partialorder %v6837_v11, %v6841_v41 }
0x1e2b   :  { %v2179_v50 = vsel %vm2178_vm2, %v6208_v12, 64 }
0x1e2c   :  { %v2180_v43 = vsel %vm2166_vm15, %v2179_v50, 2147483647 }
0x1e2d   :  { %v2182_v44 = vshra.s32 %v2180_v43, 16  ;;  %v2181_v49 = vand.u32 65535, %v2180_v43 }
0x1e2f   :  { %v2184_v45 = vcvt.s32.f32 %v2182_v44  ;;  %v2183_v58 = vcvt.s32.f32 %v2181_v49 }
0x1e31   :  { %2185 = vmin.xlane.f32.xlu1 %v2184_v45 }
0x1e42   :  { %2354 = vrot.lane.b32.xlu1 %v2343_v46, %s6168_s1 }
0x1eba   :  { %v2186_v54 = vpop.xlane.xlu1 %2185 }
0x1ebb   :  { %vm2187_vm4 = vcmp.eq.f32.partialorder %v2184_v45, %v2186_v54  ;;  %v2192_v63 = vcvt.f32.s32 %v2186_v54 }
0x1ebc   :  { %v2188_v61 = vsel %vm2187_vm4, %v2183_v58, inf }
0x1ebd   :  { %2189 = vmin.xlane.f32.xlu0 %v2188_v61  ;;  %v2193_v55 = vshll.u32 %v2192_v63, 16 }
0x1ebe   :  { %v2355_v57 = vpop.permute.xlu1 %2354 }
0x1f46   :  { %v2190_v62 = vpop.xlane.xlu0 %2189 }
0x1f47   :  { %v2191_v53 = vcvt.f32.s32 %v2190_v62 }
0x1f49   :  { %v2194_v3 = vadd.s32 %v2193_v55, %v2191_v53 }
0x1f4b   :  { %vm2195_vm5 = vcmp.lt.s32.totalorder %v2194_v3, 63 }
0x1f4c   :  { %v6849_v10 = vsel %vm2195_vm5, %v2194_v3, 63  ;;  %vm3436_vm5 = vcmp.eq.s32.totalorder %v6208_v12, 2 }
0x1f4d   :  { %vm2197_vm6 = vcmp.eq.s32.totalorder %v6208_v12, %v6849_v10 }
0x1f4e   :  { %v5164_v19 = vsel %vm2197_vm6, 1.0, %v6165_v1 }
0x1f4f   :  { %5562 = vmatmul.mubr.msk.f32.vlgmr.msra.gmra.mxu1 %vm44_vm1, %v5164_v19 }
0x1f50   :  { %5576 = vmatpush3.xpose.msk.msra.mxu1 %vm122_vm3, %v6717_v51  ;;  %5577 = vmatprep.mubr.msk.f32.mxu1 %vm6166_vm0, %v6165_v1 }
0x1f51   :  { %5580 = vmatprep.subr.mxu1 %v6165_v1 }
0x200f   :  { %v2269_v20 = vpop.f32.mrf.mxu1 }
0x2010   :  { %v2346_v28 = vadd.f32 %v2343_v46, %v2269_v20 }
0x2011   :  { %v5563_v30 = vpop.f32.mrf.mxu1 }
0x2012   :  { %v5167_v32 = vmul.f32 -1.442695, %v2346_v28 }
0x2014   :  { %6028 = vpow2.f32 %v5167_v32 }
0x2021   :  { %v6029_v40 = vpop.eup %6028 }
0x2022   :  { %v2350_v9 = vadd.f32 1.0, %v6029_v40 }
0x2024   :  { %6030 = vrcp.f32 %v2350_v9 }
0x2031   :  { %v6031_v15 = vpop.eup %6030 }
0x2032   :  { %v2357_v60 = vmul.f32 %v6031_v15, %v2355_v57  ;;  %v2364_v13 = vsub.f32 1.0, %v6031_v15  ;;  %v2370_v23 = vmul.f32 %v6031_v15, %v6715_v47 }
0x2034   :  { %2359 = vrot.lane.b32.xlu0 %v2357_v60, %s6168_s1 }
0x20a6   :  { %v2360_v59 = vpop.permute.xlu0 %2359 }
0x20a7   :  { %v2362_v0 = vadd.f32 %v2360_v59, %v2269_v20 }
0x20a9   :  { %6032 = vtanh.f32 %v2362_v0 }
0x20b6   :  { %v6033_v42 = vpop.eup %6032 }
0x20b7   :  { %2366 = vrot.lane.b32.xlu1 %v6033_v42, %s6169_s21 }
0x2129   :  { %v2367_v24 = vpop.permute.xlu1 %2366 }
0x212a   :  { %v2369_v50 = vmul.f32 %v2367_v24, %v2364_v13 }
0x212c   :  { %v6863_v43 = vadd.f32 %v2370_v23, %v2369_v50 }
0x212e   :  { %2373 = vrot.lane.b32.xlu1 %v6863_v43, %s6169_s21 }
0x21a0   :  { %v6867_v44 = vpop.permute.xlu1 %2373 }
0x21a1   :  { %5578 = vmatmul.mubr.msk.f32.vlgmr.msra.gmra.mxu1 %vm122_vm3, %v6867_v44 }
0x21a2   :  { %5581 = vmatpush3.msra.mxu1 %v6717_v51  ;;  %5582 = vmatprep.mubr.msk.f32.mxu1 %vm6166_vm0, %v6165_v1 }
0x21a3   :  { %5596 = vmatprep.subr.mxu1 %v6165_v1 }
0x2261   :  { %v2443_v45 = vpop.f32.mrf.mxu1 }
0x2262   :  { %v2447_v47 = vsel %vm1861_vm13, %v2443_v45, -inf }
0x2263   :  { %2448 = vmax.xlane.f32.xlu0 %v2447_v47  ;;  %v5579_v46 = vpop.f32.mrf.mxu1 }
0x22ec   :  { %v2449_v49 = vpop.xlane.xlu0 %2448 }
0x22ed   :  { %v2450_v54 = vsub.f32 %v2443_v45, %v2449_v49 }
0x22ef   :  { %v2451_v58 = vmul.f32 1.442695, %v2450_v54 }
0x22f1   :  { %6034 = vpow2.f32 %v2451_v58 }
0x22fe   :  { %v6035_v61 = vpop.eup %6034 }
0x22ff   :  { %v2453_v63 = vsel %vm1861_vm13, %v6035_v61, 0.0 }
0x2300   :  { %2454 = vadd.xlane.f32.xlu1 %v2453_v63 }
0x2389   :  { %v2455_v62 = vpop.xlane.xlu1 %2454 }
0x238a   :  { %6036 = vrcp.f32 %v2455_v62  ;;  %v2274_v62 = vsel %vm2273_vm9, %v6849_v10, 0 }
0x2397   :  { %v6037_v55 = vpop.eup %6036 }
0x2398   :  { %v2457_v53 = vmul.f32 %v6037_v55, %v6035_v61 }
0x239a   :  { %5583 = vmatmul.mubr.msk.f32.vlgmr.msra.gmra.mxu1 %vm1874_vm14, %v2457_v53 }
0x239b   :  { %5597 = vmatpush3.msra.mxu1 %v6746_v26  ;;  %5604 = vmatprep.mubr.msk.f32.mxu1 %vm6166_vm0, %v6165_v1 }
0x239c   :  { %5598 = vmatprep.subr.mxu1 %v6165_v1 }
0x239d   :  { %5599 = vmatpush3.msra.mxu1 %v6749_v48 }
0x239e   :  { %5600 = vmatprep.subr.mxu1 %v6165_v1 }
0x239f   :  { %5601 = vmatpush3.msra.mxu1 %v6755_v21 }
0x23a0   :  { %5602 = vmatprep.subr.mxu1 %v6165_v1 }
0x23a1   :  { %5603 = vmatpush3.msra.mxu1 %v6759_v22 }
0x23a2   :  { %5605 = vmatmul.mubr.msk.f32.vlgmr.msra.gmra.mxu1 %vm122_vm3, %v6867_v44  ;;  %5618 = vmatprep.subr.mxu1 %v6165_v1 }
0x23a3   :  { %5619 = vmatpush3.msra.mxu1 %v6622_v14  ;;  %5634 = vmatprep.mubr.msk.f32.mxu1 %vm6166_vm0, %v6165_v1 }
0x23a4   :  { %5620 = vmatprep.subr.mxu1 %v6165_v1 }
0x23a5   :  { %5621 = vmatpush3.msra.mxu1 %v6626_v29 }
0x23a6   :  { %5622 = vmatprep.subr.mxu1 %v6165_v1 }
0x23a7   :  { %5623 = vmatpush3.msra.mxu1 %v6624_v27 }
0x23a8   :  { %5624 = vmatprep.subr.mxu1 %v6165_v1 }
0x23a9   :  { %5625 = vmatpush3.msra.mxu1 %v6630_v31 }
0x23aa   :  { %5626 = vmatprep.subr.mxu1 %v6165_v1 }
0x23ab   :  { %5627 = vmatpush3.msra.mxu1 %v6634_v33 }
0x23ac   :  { %5628 = vmatprep.subr.mxu1 %v6165_v1 }
0x23ad   :  { %5629 = vmatpush3.msra.mxu1 %v6638_v35 }
0x23ae   :  { %5630 = vmatprep.subr.mxu1 %v6165_v1 }
0x23af   :  { %5631 = vmatpush3.msra.mxu1 %v6642_v37 }
0x23b0   :  { %5632 = vmatprep.subr.mxu1 %v6165_v1 }
0x23b1   :  { %5633 = vmatpush3.msra.mxu1 %v6646_v39 }
0x23b2   :  { %5653 = vmatprep.subr.mxu1 %v6165_v1 }
0x245a   :  { %v2527_v3 = vpop.f32.mrf.mxu1 }
0x245b   :  { %5594 = vmatmul.mubr.msk.f32.vlgmr.msra.gmra.mxu0 %vm122_vm3, %v2527_v3 }
0x245c   :  { %v5584_v19 = vpop.f32.mrf.mxu1  ;;  %5608 = vmatpush3.msra.mxu0 %v6792_v2  ;;  %5615 = vmatprep.mubr.msk.f32.mxu0 %vm6166_vm0, %v6165_v1 }
0x245d   :  { %5609 = vmatprep.subr.mxu0 %v6165_v1 }
0x245e   :  { %5610 = vmatpush3.msra.mxu0 %v6794_v5 }
0x245f   :  { %5611 = vmatprep.subr.mxu0 %v6165_v1 }
0x2460   :  { %5612 = vmatpush3.msra.mxu0 %v6798_v6 }
0x2461   :  { %5613 = vmatprep.subr.mxu0 %v6165_v1 }
0x2462   :  { %v2670_v20 = vpop.f32.mrf.mxu1  ;;  %5614 = vmatpush3.msra.mxu0 %v6802_v7 }
0x2463   :  { %5637 = vmatprep.subr.mxu0 %v6165_v1 }
0x2464   :  { %v5606_v28 = vpop.f32.mrf.mxu1 }
0x251b   :  { %v2600_v30 = vpop.f32.mrf.mxu0 }
0x251c   :  { %v2671_v32 = vadd.f32 %v2670_v20, %v2600_v30 }
0x251d   :  { %v5595_v40 = vpop.f32.mrf.mxu0 }
0x251e   :  { %v2674_v9 = vadd.f32 %v2671_v32, %v6808_v8 }
0x2520   :  { %6038 = vtanh.f32 %v2674_v9 }
0x252d   :  { %v6039_v15 = vpop.eup %6038 }
0x252e   :  { %5616 = vmatmul.mubr.msk.f32.vlgmr.msra.gmra.mxu0 %vm122_vm3, %v6039_v15 }
0x252f   :  { %5638 = vmatpush3.msra.mxu0 %v6604_v34  ;;  %5645 = vmatprep.mubr.msk.f32.mxu0 %vm6166_vm0, %v6165_v1 }
0x2530   :  { %5639 = vmatprep.subr.mxu0 %v6165_v1 }
0x2531   :  { %5640 = vmatpush3.msra.mxu0 %v6606_v36 }
0x2532   :  { %5641 = vmatprep.subr.mxu0 %v6165_v1 }
0x2533   :  { %5642 = vmatpush3.msra.mxu0 %v6610_v38 }
0x2534   :  { %5643 = vmatprep.subr.mxu0 %v6165_v1 }
0x2535   :  { %5644 = vmatpush3.msra.mxu0 %v6614_v56 }
0x2536   :  { %5646 = vmatmul.mubr.msk.f32.vlgmr.msra.gmra.mxu0 %vm122_vm3, %v6867_v44  ;;  %5648 = vmatprep.subr.mxu0 %v6165_v1 }
0x2537   :  { %5649 = vmatpush3.xpose.msk.msra.mxu0 %vm122_vm3, %v6717_v51  ;;  %5650 = vmatprep.mubr.msk.f32.mxu0 %vm6166_vm0, %v6165_v1 }
0x2538   :  { %5658 = vmatprep.subr.mxu0 %v6165_v1 }
0x25ee   :  { %v2745_v34 = vpop.f32.mrf.mxu0 }
0x25ef   :  { %v6939_v36 = vadd.f32 %v2745_v34, %v6834_v52 }
0x25f0   :  { %v5617_v38 = vpop.f32.mrf.mxu0 }
0x25f1   :  { %v2749_v57 = vsel %vm2166_vm15, %v6939_v36, -inf }
0x25f2   :  { %2750 = vmax.xlane.f32.xlu0 %v2749_v57 }
0x25f6   :  { %v2923_v60 = vpop.f32.mrf.mxu0 }
0x25f7   :  { %v2924_v50 = vadd.f32 %v2923_v60, %v6676_v18 }
0x25f8   :  { %v5647_v59 = vpop.f32.mrf.mxu0 }
0x267b   :  { %v6943_v0 = vpop.xlane.xlu0 %2750 }
0x267c   :  { %vm2760_vm7 = vcmp.ge.f32.partialorder %v6939_v36, %v6943_v0 }
0x267d   :  { %v2761_v42 = vsel %vm2760_vm7, %v6208_v12, 64 }
0x267e   :  { %v2762_v13 = vsel %vm2166_vm15, %v2761_v42, 2147483647 }
0x267f   :  { %v2764_v24 = vshra.s32 %v2762_v13, 16  ;;  %v2763_v44 = vand.u32 65535, %v2762_v13 }
0x2681   :  { %v2766_v23 = vcvt.s32.f32 %v2764_v24  ;;  %v2765_v47 = vcvt.s32.f32 %v2763_v44 }
0x2683   :  { %2767 = vmin.xlane.f32.xlu0 %v2766_v23 }
0x2699   :  { %2935 = vrot.lane.b32.xlu0 %v2924_v50, %s6168_s1 }
0x270c   :  { %v2768_v45 = vpop.xlane.xlu0 %2767 }
0x270d   :  { %vm2769_vm8 = vcmp.eq.f32.partialorder %v2766_v23, %v2768_v45  ;;  %v2774_v49 = vcvt.f32.s32 %v2768_v45 }
0x270e   :  { %v2770_v46 = vsel %vm2769_vm8, %v2765_v47, inf }
0x270f   :  { %2771 = vmin.xlane.f32.xlu1 %v2770_v46  ;;  %v2775_v58 = vshll.u32 %v2774_v49, 16 }
0x2710   :  { %v2936_v9 = vpop.permute.xlu0 %2935 }
0x2798   :  { %v2772_v54 = vpop.xlane.xlu1 %2771 }
0x2799   :  { %v2773_v61 = vcvt.f32.s32 %v2772_v54 }
0x279b   :  { %v2776_v63 = vadd.s32 %v2775_v58, %v2773_v61 }
0x279d   :  { %vm2777_vm10 = vcmp.lt.s32.totalorder %v2776_v63, 63 }
0x279e   :  { %v2778_v55 = vsel %vm2777_vm10, %v2776_v63, 63 }
0x279f   :  { %vm2779_vm12 = vcmp.eq.s32.totalorder %v6208_v12, %v2778_v55  ;;  %v6958_v53 = vsel %vm1603_vm11, %v2778_v55, %v2274_v62 }
0x27a0   :  { %v5174_v3 = vsel %vm2779_vm12, 1.0, %v6165_v1  ;;  %vm4018_vm12 = vcmp.eq.s32.totalorder %v6208_v12, 3 }
0x27a1   :  { %5635 = vmatmul.mubr.msk.f32.vlgmr.msra.gmra.mxu1 %vm44_vm1, %v5174_v3 }
0x27a2   :  { %5654 = vmatpush3.msra.mxu1 %v6717_v51  ;;  %5655 = vmatprep.mubr.msk.f32.mxu1 %vm6166_vm0, %v6165_v1 }
0x27a3   :  { %5669 = vmatprep.subr.mxu1 %v6165_v1 }
0x2861   :  { %v2851_v19 = vpop.f32.mrf.mxu1 }
0x2862   :  { %v2927_v10 = vadd.f32 %v2924_v50, %v2851_v19 }
0x2863   :  { %v5636_v20 = vpop.f32.mrf.mxu1 }
0x2864   :  { %v5177_v28 = vmul.f32 -1.442695, %v2927_v10 }
0x2866   :  { %6040 = vpow2.f32 %v5177_v28 }
0x2873   :  { %v6041_v30 = vpop.eup %6040 }
0x2874   :  { %v2931_v32 = vadd.f32 1.0, %v6041_v30 }
0x2876   :  { %6042 = vrcp.f32 %v2931_v32 }
0x2883   :  { %v6043_v40 = vpop.eup %6042 }
0x2884   :  { %v2938_v15 = vmul.f32 %v6043_v40, %v2936_v9  ;;  %v2945_v60 = vsub.f32 1.0, %v6043_v40  ;;  %v2951_v42 = vmul.f32 %v6043_v40, %v6863_v43  ;;  %v7033_v40 = vld [vmem:[#allocation3 + $0x210] sm:$0xff]  ;;  %v7039_v9 = vld [vmem:[#allocation3 + $0x200] sm:$0xff] }
0x2886   :  { %2940 = vrot.lane.b32.xlu1 %v2938_v15, %s6168_s1  ;;  %v7043_v15 = vld [vmem:[#allocation3 + $0x1f0] sm:$0xff] }
0x28f8   :  { %v2941_v34 = vpop.permute.xlu1 %2940 }
0x28f9   :  { %v2943_v38 = vadd.f32 %v2941_v34, %v2851_v19 }
0x28fb   :  { %6044 = vtanh.f32 %v2943_v38 }
0x2908   :  { %v6045_v57 = vpop.eup %6044 }
0x2909   :  { %2947 = vrot.lane.b32.xlu1 %v6045_v57, %s6169_s21 }
0x297b   :  { %v2948_v59 = vpop.permute.xlu1 %2947 }
0x297c   :  { %v2950_v13 = vmul.f32 %v2948_v59, %v2945_v60 }
0x297e   :  { %v6969_v24 = vadd.f32 %v2951_v42, %v2950_v13 }
0x2980   :  { %2954 = vrot.lane.b32.xlu0 %v6969_v24, %s6169_s21 }
0x29f2   :  { %v6973_v23 = vpop.permute.xlu0 %2954 }
0x29f3   :  { %5651 = vmatmul.mubr.msk.f32.vlgmr.msra.gmra.mxu0 %vm122_vm3, %v6973_v23 }
0x29f4   :  { %5659 = vmatpush3.msra.mxu0 %v6734_v4  ;;  %5666 = vmatprep.mubr.msk.f32.mxu0 %vm6166_vm0, %v6165_v1 }
0x29f5   :  { %5660 = vmatprep.subr.mxu0 %v6165_v1 }
0x29f6   :  { %5661 = vmatpush3.msra.mxu0 %v6736_v16 }
0x29f7   :  { %5662 = vmatprep.subr.mxu0 %v6165_v1 }
0x29f8   :  { %5663 = vmatpush3.msra.mxu0 %v6740_v17 }
0x29f9   :  { %5664 = vmatprep.subr.mxu0 %v6165_v1 }
0x29fa   :  { %5665 = vmatpush3.msra.mxu0 %v6785_v25 }
0x29fb   :  { %5680 = vmatprep.subr.mxu0 %v6165_v1 }
0x2ab3   :  { %v3024_v43 = vpop.f32.mrf.mxu0 }
0x2ab4   :  { %v3028_v50 = vsel %vm1861_vm13, %v3024_v43, -inf }
0x2ab5   :  { %3029 = vmax.xlane.f32.xlu1 %v3028_v50  ;;  %v5652_v44 = vpop.f32.mrf.mxu0 }
0x2b3e   :  { %v3030_v45 = vpop.xlane.xlu1 %3029 }
0x2b3f   :  { %v3031_v47 = vsub.f32 %v3024_v43, %v3030_v45 }
0x2b41   :  { %v3032_v46 = vmul.f32 1.442695, %v3031_v47 }
0x2b43   :  { %6046 = vpow2.f32 %v3032_v46 }
0x2b50   :  { %v6047_v49 = vpop.eup %6046 }
0x2b51   :  { %v3034_v54 = vsel %vm1861_vm13, %v6047_v49, 0.0 }
0x2b52   :  { %3035 = vadd.xlane.f32.xlu0 %v3034_v54 }
0x2bdb   :  { %v3036_v58 = vpop.xlane.xlu0 %3035 }
0x2bdc   :  { %6048 = vrcp.f32 %v3036_v58 }
0x2be9   :  { %v6049_v61 = vpop.eup %6048 }
0x2bea   :  { %v3038_v63 = vmul.f32 %v6049_v61, %v6047_v49 }
0x2bec   :  { %5656 = vmatmul.mubr.msk.f32.vlgmr.msra.gmra.mxu1 %vm1874_vm14, %v3038_v63 }
0x2bed   :  { %5670 = vmatpush3.msra.mxu1 %v6746_v26  ;;  %5677 = vmatprep.mubr.msk.f32.mxu1 %vm6166_vm0, %v6165_v1 }
0x2bee   :  { %5671 = vmatprep.subr.mxu1 %v6165_v1 }
0x2bef   :  { %5672 = vmatpush3.msra.mxu1 %v6749_v48 }
0x2bf0   :  { %5673 = vmatprep.subr.mxu1 %v6165_v1 }
0x2bf1   :  { %5674 = vmatpush3.msra.mxu1 %v6755_v21 }
0x2bf2   :  { %5675 = vmatprep.subr.mxu1 %v6165_v1 }
0x2bf3   :  { %5676 = vmatpush3.msra.mxu1 %v6759_v22 }
0x2bf4   :  { %5678 = vmatmul.mubr.msk.f32.vlgmr.msra.gmra.mxu1 %vm122_vm3, %v6973_v23  ;;  %5691 = vmatprep.subr.mxu1 %v6165_v1 }
0x2bf5   :  { %5692 = vmatpush3.msra.mxu1 %v6622_v14  ;;  %5707 = vmatprep.mubr.msk.f32.mxu1 %vm6166_vm0, %v6165_v1 }
0x2bf6   :  { %5693 = vmatprep.subr.mxu1 %v6165_v1 }
0x2bf7   :  { %5694 = vmatpush3.msra.mxu1 %v6626_v29 }
0x2bf8   :  { %5695 = vmatprep.subr.mxu1 %v6165_v1 }
0x2bf9   :  { %5696 = vmatpush3.msra.mxu1 %v6624_v27 }
0x2bfa   :  { %5697 = vmatprep.subr.mxu1 %v6165_v1 }
0x2bfb   :  { %5698 = vmatpush3.msra.mxu1 %v6630_v31 }
0x2bfc   :  { %5699 = vmatprep.subr.mxu1 %v6165_v1 }
0x2bfd   :  { %5700 = vmatpush3.msra.mxu1 %v6634_v33 }
0x2bfe   :  { %5701 = vmatprep.subr.mxu1 %v6165_v1 }
0x2bff   :  { %5702 = vmatpush3.msra.mxu1 %v6638_v35 }
0x2c00   :  { %5703 = vmatprep.subr.mxu1 %v6165_v1 }
0x2c01   :  { %5704 = vmatpush3.msra.mxu1 %v6642_v37 }
0x2c02   :  { %5705 = vmatprep.subr.mxu1 %v6165_v1 }
0x2c03   :  { %5706 = vmatpush3.msra.mxu1 %v6646_v39 }
0x2c04   :  { %5726 = vmatprep.subr.mxu1 %v6165_v1 }
0x2cac   :  { %v3108_v62 = vpop.f32.mrf.mxu1 }
0x2cad   :  { %5667 = vmatmul.mubr.msk.f32.vlgmr.msra.gmra.mxu0 %vm122_vm3, %v3108_v62 }
0x2cae   :  { %v5657_v55 = vpop.f32.mrf.mxu1  ;;  %5681 = vmatpush3.msra.mxu0 %v6792_v2  ;;  %5688 = vmatprep.mubr.msk.f32.mxu0 %vm6166_vm0, %v6165_v1 }
0x2caf   :  { %5682 = vmatprep.subr.mxu0 %v6165_v1 }
0x2cb0   :  { %5683 = vmatpush3.msra.mxu0 %v6794_v5 }
0x2cb1   :  { %5684 = vmatprep.subr.mxu0 %v6165_v1 }
0x2cb2   :  { %5685 = vmatpush3.msra.mxu0 %v6798_v6 }
0x2cb3   :  { %5686 = vmatprep.subr.mxu0 %v6165_v1 }
0x2cb4   :  { %v3251_v3 = vpop.f32.mrf.mxu1  ;;  %5687 = vmatpush3.msra.mxu0 %v6802_v7 }
0x2cb5   :  { %5710 = vmatprep.subr.mxu0 %v6165_v1 }
0x2cb6   :  { %v5679_v19 = vpop.f32.mrf.mxu1 }
0x2d6d   :  { %v3181_v10 = vpop.f32.mrf.mxu0 }
0x2d6e   :  { %v3252_v20 = vadd.f32 %v3251_v3, %v3181_v10 }
0x2d6f   :  { %v5668_v28 = vpop.f32.mrf.mxu0 }
0x2d70   :  { %v3255_v30 = vadd.f32 %v3252_v20, %v6808_v8 }
0x2d72   :  { %6050 = vtanh.f32 %v3255_v30 }
0x2d7f   :  { %v6051_v32 = vpop.eup %6050 }
0x2d80   :  { %5689 = vmatmul.mubr.msk.f32.vlgmr.msra.gmra.mxu0 %vm122_vm3, %v6051_v32 }
0x2d81   :  { %5711 = vmatpush3.msra.mxu0 %v7033_v40  ;;  %5718 = vmatprep.mubr.msk.f32.mxu0 %vm6166_vm0, %v6165_v1 }
0x2d82   :  { %5712 = vmatprep.subr.mxu0 %v6165_v1 }
0x2d83   :  { %5713 = vmatpush3.msra.mxu0 %v7039_v9 }
0x2d84   :  { %5714 = vmatprep.subr.mxu0 %v6165_v1 }
0x2d85   :  { %5715 = vmatpush3.msra.mxu0 %v7043_v15 }
0x2d86   :  { %5716 = vmatprep.subr.mxu0 %v6165_v1 }
0x2d87   :  { %5717 = vmatpush3.msra.mxu0 %v6614_v56 }
0x2d88   :  { %5719 = vmatmul.mubr.msk.f32.vlgmr.msra.gmra.mxu0 %vm122_vm3, %v6973_v23  ;;  %5721 = vmatprep.subr.mxu0 %v6165_v1 }
0x2d89   :  { %5722 = vmatpush3.xpose.msk.msra.mxu0 %vm122_vm3, %v6717_v51  ;;  %5723 = vmatprep.mubr.msk.f32.mxu0 %vm6166_vm0, %v6165_v1 }
0x2d8a   :  { %5731 = vmatprep.subr.mxu0 %v6165_v1 }
0x2e40   :  { %v3326_v34 = vpop.f32.mrf.mxu0 }
0x2e41   :  { %v7057_v38 = vadd.f32 %v3326_v34, %v6834_v52 }
0x2e42   :  { %v5690_v57 = vpop.f32.mrf.mxu0 }
0x2e43   :  { %v3330_v56 = vsel %vm2166_vm15, %v7057_v38, -inf }
0x2e44   :  { %3331 = vmax.xlane.f32.xlu0 %v3330_v56 }
0x2e48   :  { %v3505_v60 = vpop.f32.mrf.mxu0 }
0x2e49   :  { %v3506_v44 = vadd.f32 %v3505_v60, %v6676_v18 }
0x2e4a   :  { %v5720_v59 = vpop.f32.mrf.mxu0 }
0x2ecd   :  { %v7061_v42 = vpop.xlane.xlu0 %3331 }
0x2ece   :  { %vm3341_vm2 = vcmp.ge.f32.partialorder %v7057_v38, %v7061_v42 }
0x2ecf   :  { %v3342_v13 = vsel %vm3341_vm2, %v6208_v12, 64 }
0x2ed0   :  { %v3343_v23 = vsel %vm2166_vm15, %v3342_v13, 2147483647 }
0x2ed1   :  { %v3345_v43 = vshra.s32 %v3343_v23, 16  ;;  %v3344_v45 = vand.u32 65535, %v3343_v23 }
0x2ed3   :  { %v3347_v50 = vcvt.s32.f32 %v3345_v43  ;;  %v3346_v46 = vcvt.s32.f32 %v3344_v45 }
0x2ed5   :  { %3348 = vmin.xlane.f32.xlu1 %v3347_v50 }
0x2ee6   :  { %3517 = vrot.lane.b32.xlu1 %v3506_v44, %s6168_s1 }
0x2f5e   :  { %v3349_v47 = vpop.xlane.xlu1 %3348 }
0x2f5f   :  { %vm3350_vm4 = vcmp.eq.f32.partialorder %v3347_v50, %v3349_v47  ;;  %v3355_v54 = vcvt.f32.s32 %v3349_v47 }
0x2f60   :  { %v3351_v49 = vsel %vm3350_vm4, %v3346_v46, inf }
0x2f61   :  { %3352 = vmin.xlane.f32.xlu0 %v3351_v49  ;;  %v3356_v61 = vshll.u32 %v3355_v54, 16 }
0x2f62   :  { %v3518_v34 = vpop.permute.xlu1 %3517 }
0x2fea   :  { %v3353_v58 = vpop.xlane.xlu0 %3352 }
0x2feb   :  { %v3354_v63 = vcvt.f32.s32 %v3353_v58 }
0x2fed   :  { %v3357_v62 = vadd.s32 %v3356_v61, %v3354_v63 }
0x2fef   :  { %vm3358_vm6 = vcmp.lt.s32.totalorder %v3357_v62, 63 }
0x2ff0   :  { %v3359_v55 = vsel %vm3358_vm6, %v3357_v62, 63 }
0x2ff1   :  { %vm3360_vm7 = vcmp.eq.s32.totalorder %v6208_v12, %v3359_v55  ;;  %v7074_v18 = vsel %vm3436_vm5, %v3359_v55, %v6958_v53 }
0x2ff2   :  { %v5184_v3 = vsel %vm3360_vm7, 1.0, %v6165_v1 }
0x2ff3   :  { %5708 = vmatmul.mubr.msk.f32.vlgmr.msra.gmra.mxu1 %vm44_vm1, %v5184_v3 }
0x2ff4   :  { %5727 = vmatpush3.msra.mxu1 %v6717_v51  ;;  %5728 = vmatprep.mubr.msk.f32.mxu1 %vm6166_vm0, %v6165_v1 }
0x2ff5   :  { %5742 = vmatprep.subr.mxu1 %v6165_v1 }
0x30b3   :  { %v3432_v19 = vpop.f32.mrf.mxu1 }
0x30b4   :  { %v3509_v10 = vadd.f32 %v3506_v44, %v3432_v19 }
0x30b5   :  { %v5709_v20 = vpop.f32.mrf.mxu1 }
0x30b6   :  { %v5187_v28 = vmul.f32 -1.442695, %v3509_v10 }
0x30b8   :  { %6052 = vpow2.f32 %v5187_v28 }
0x30c5   :  { %v6053_v30 = vpop.eup %6052 }
0x30c6   :  { %v3513_v32 = vadd.f32 1.0, %v6053_v30 }
0x30c8   :  { %6054 = vrcp.f32 %v3513_v32 }
0x30d5   :  { %v6055_v53 = vpop.eup %6054 }
0x30d6   :  { %v3520_v57 = vmul.f32 %v6055_v53, %v3518_v34  ;;  %v3527_v13 = vsub.f32 1.0, %v6055_v53  ;;  %v3533_v43 = vmul.f32 %v6055_v53, %v6969_v24 }
0x30d8   :  { %3522 = vrot.lane.b32.xlu0 %v3520_v57, %s6168_s1 }
0x314a   :  { %v3523_v56 = vpop.permute.xlu0 %3522 }
0x314b   :  { %v3525_v60 = vadd.f32 %v3523_v56, %v3432_v19 }
0x314d   :  { %6056 = vtanh.f32 %v3525_v60 }
0x315a   :  { %v6057_v59 = vpop.eup %6056 }
0x315b   :  { %3529 = vrot.lane.b32.xlu1 %v6057_v59, %s6169_s21 }
0x31cd   :  { %v3530_v23 = vpop.permute.xlu1 %3529 }
0x31ce   :  { %v3532_v50 = vmul.f32 %v3530_v23, %v3527_v13 }
0x31d0   :  { %v7085_v44 = vadd.f32 %v3533_v43, %v3532_v50 }
0x31d2   :  { %3536 = vrot.lane.b32.xlu1 %v7085_v44, %s6169_s21 }
0x3244   :  { %v7089_v45 = vpop.permute.xlu1 %3536 }
0x3245   :  { %5724 = vmatmul.mubr.msk.f32.vlgmr.msra.gmra.mxu0 %vm122_vm3, %v7089_v45 }
0x3246   :  { %5732 = vmatpush3.msra.mxu0 %v6734_v4  ;;  %5739 = vmatprep.mubr.msk.f32.mxu0 %vm6166_vm0, %v6165_v1 }
0x3247   :  { %5733 = vmatprep.subr.mxu0 %v6165_v1 }
0x3248   :  { %5734 = vmatpush3.msra.mxu0 %v6736_v16 }
0x3249   :  { %5735 = vmatprep.subr.mxu0 %v6165_v1 }
0x324a   :  { %5736 = vmatpush3.msra.mxu0 %v6740_v17 }
0x324b   :  { %5737 = vmatprep.subr.mxu0 %v6165_v1 }
0x324c   :  { %5738 = vmatpush3.msra.mxu0 %v6785_v25 }
0x324d   :  { %5753 = vmatprep.subr.mxu0 %v6165_v1 }
0x3305   :  { %v3606_v24 = vpop.f32.mrf.mxu0 }
0x3306   :  { %v3610_v4 = vsel %vm1861_vm13, %v3606_v24, -inf }
0x3307   :  { %3611 = vmax.xlane.f32.xlu0 %v3610_v4  ;;  %v5725_v47 = vpop.f32.mrf.mxu0 }
0x3390   :  { %v3612_v46 = vpop.xlane.xlu0 %3611 }
0x3391   :  { %v3613_v49 = vsub.f32 %v3606_v24, %v3612_v46 }
0x3393   :  { %v3614_v54 = vmul.f32 1.442695, %v3613_v49 }
0x3395   :  { %6058 = vpow2.f32 %v3614_v54 }
0x33a2   :  { %v6059_v16 = vpop.eup %6058 }
0x33a3   :  { %v3616_v58 = vsel %vm1861_vm13, %v6059_v16, 0.0 }
0x33a4   :  { %3617 = vadd.xlane.f32.xlu1 %v3616_v58 }
0x342d   :  { %v3618_v17 = vpop.xlane.xlu1 %3617 }
0x342e   :  { %6060 = vrcp.f32 %v3618_v17 }
0x343b   :  { %v6061_v61 = vpop.eup %6060 }
0x343c   :  { %v3620_v63 = vmul.f32 %v6061_v61, %v6059_v16 }
0x343e   :  { %5729 = vmatmul.mubr.msk.f32.vlgmr.msra.gmra.mxu1 %vm1874_vm14, %v3620_v63 }
0x343f   :  { %5743 = vmatpush3.msra.mxu1 %v6746_v26  ;;  %5750 = vmatprep.mubr.msk.f32.mxu1 %vm6166_vm0, %v6165_v1 }
0x3440   :  { %5744 = vmatprep.subr.mxu1 %v6165_v1 }
0x3441   :  { %5745 = vmatpush3.msra.mxu1 %v6749_v48 }
0x3442   :  { %5746 = vmatprep.subr.mxu1 %v6165_v1 }
0x3443   :  { %5747 = vmatpush3.msra.mxu1 %v6755_v21 }
0x3444   :  { %5748 = vmatprep.subr.mxu1 %v6165_v1 }
0x3445   :  { %5749 = vmatpush3.msra.mxu1 %v6759_v22 }
0x3446   :  { %5751 = vmatmul.mubr.msk.f32.vlgmr.msra.gmra.mxu1 %vm122_vm3, %v7089_v45  ;;  %5764 = vmatprep.subr.mxu1 %v6165_v1 }
0x3447   :  { %5765 = vmatpush3.msra.mxu1 %v6622_v14  ;;  %5780 = vmatprep.mubr.msk.f32.mxu1 %vm6166_vm0, %v6165_v1 }
0x3448   :  { %5766 = vmatprep.subr.mxu1 %v6165_v1 }
0x3449   :  { %5767 = vmatpush3.msra.mxu1 %v6626_v29 }
0x344a   :  { %5768 = vmatprep.subr.mxu1 %v6165_v1 }
0x344b   :  { %5769 = vmatpush3.msra.mxu1 %v6624_v27 }
0x344c   :  { %5770 = vmatprep.subr.mxu1 %v6165_v1 }
0x344d   :  { %5771 = vmatpush3.msra.mxu1 %v6630_v31 }
0x344e   :  { %5772 = vmatprep.subr.mxu1 %v6165_v1 }
0x344f   :  { %5773 = vmatpush3.msra.mxu1 %v6634_v33 }
0x3450   :  { %5774 = vmatprep.subr.mxu1 %v6165_v1 }
0x3451   :  { %5775 = vmatpush3.msra.mxu1 %v6638_v35 }
0x3452   :  { %5776 = vmatprep.subr.mxu1 %v6165_v1 }
0x3453   :  { %5777 = vmatpush3.msra.mxu1 %v6642_v37 }
0x3454   :  { %5778 = vmatprep.subr.mxu1 %v6165_v1 }
0x3455   :  { %5779 = vmatpush3.msra.mxu1 %v6646_v39 }
0x3456   :  { %5799 = vmatprep.subr.mxu1 %v6165_v1 }
0x34fe   :  { %v3690_v26 = vpop.f32.mrf.mxu1 }
0x34ff   :  { %5740 = vmatmul.mubr.msk.f32.vlgmr.msra.gmra.mxu0 %vm122_vm3, %v3690_v26 }
0x3500   :  { %v5730_v48 = vpop.f32.mrf.mxu1  ;;  %5754 = vmatpush3.msra.mxu0 %v6792_v2  ;;  %5761 = vmatprep.mubr.msk.f32.mxu0 %vm6166_vm0, %v6165_v1 }
0x3501   :  { %5755 = vmatprep.subr.mxu0 %v6165_v1 }
0x3502   :  { %5756 = vmatpush3.msra.mxu0 %v6794_v5  ;;  %v7157_v5 = vld [vmem:[#allocation3 + $0x1e0] sm:$0xff] }
0x3503   :  { %5757 = vmatprep.subr.mxu0 %v6165_v1 }
0x3504   :  { %5758 = vmatpush3.msra.mxu0 %v6798_v6 }
0x3505   :  { %5759 = vmatprep.subr.mxu0 %v6165_v1 }
0x3506   :  { %v3833_v21 = vpop.f32.mrf.mxu1  ;;  %5760 = vmatpush3.msra.mxu0 %v6802_v7 }
0x3507   :  { %5783 = vmatprep.subr.mxu0 %v6165_v1 }
0x3508   :  { %v5752_v22 = vpop.f32.mrf.mxu1 }
0x35bf   :  { %v3763_v25 = vpop.f32.mrf.mxu0 }
0x35c0   :  { %v3834_v2 = vadd.f32 %v3833_v21, %v3763_v25 }
0x35c1   :  { %v5741_v62 = vpop.f32.mrf.mxu0 }
0x35c2   :  { %v3837_v55 = vadd.f32 %v3834_v2, %v6808_v8 }
0x35c4   :  { %6062 = vtanh.f32 %v3837_v55 }
0x35d1   :  { %v6063_v3 = vpop.eup %6062 }
0x35d2   :  { %5762 = vmatmul.mubr.msk.f32.vlgmr.msra.gmra.mxu0 %vm122_vm3, %v6063_v3 }
0x35d3   :  { %5784 = vmatpush3.msra.mxu0 %v7033_v40  ;;  %5791 = vmatprep.mubr.msk.f32.mxu0 %vm6166_vm0, %v6165_v1 }
0x35d4   :  { %5785 = vmatprep.subr.mxu0 %v6165_v1 }
0x35d5   :  { %5786 = vmatpush3.msra.mxu0 %v7039_v9 }
0x35d6   :  { %5787 = vmatprep.subr.mxu0 %v6165_v1 }
0x35d7   :  { %5788 = vmatpush3.msra.mxu0 %v7043_v15 }
0x35d8   :  { %5789 = vmatprep.subr.mxu0 %v6165_v1 }
0x35d9   :  { %5790 = vmatpush3.msra.mxu0 %v7157_v5 }
0x35da   :  { %5792 = vmatmul.mubr.msk.f32.vlgmr.msra.gmra.mxu0 %vm122_vm3, %v7089_v45  ;;  %5794 = vmatprep.subr.mxu0 %v6165_v1 }
0x35db   :  { %5795 = vmatpush3.xpose.msk.msra.mxu0 %vm122_vm3, %v6717_v51  ;;  %5796 = vmatprep.mubr.msk.f32.mxu0 %vm6166_vm0, %v6165_v1 }
0x35dc   :  { %5804 = vmatprep.subr.mxu0 %v6165_v1 }
0x3692   :  { %v3908_v6 = vpop.f32.mrf.mxu0 }
0x3693   :  { %v7169_v7 = vadd.f32 %v3908_v6, %v6834_v52  ;;  %v7179_v52 = vld [vmem:[#allocation3 + $0x230] ss:$0 sm:$0xff] }
0x3694   :  { %v5763_v8 = vpop.f32.mrf.mxu0 }
0x3695   :  { %v3912_v19 = vsel %vm2166_vm15, %v7169_v7, -inf  ;;  %v7207_v8 = vld [vmem:[#allocation3 + $0x2b0] sm:$0xff] }
0x3696   :  { %3913 = vmax.xlane.f32.xlu0 %v3912_v19  ;;  %v7217_v19 = vld [vmem:[#allocation3 + $0x290] sm:$0xff] }
0x369a   :  { %v4087_v10 = vpop.f32.mrf.mxu0 }
0x369b   :  { %v4088_v57 = vadd.f32 %v7179_v52, %v4087_v10  ;;  %v7221_v10 = vld [vmem:[#allocation3 + $0x280] sm:$0xff] }
0x369c   :  { %v5793_v20 = vpop.f32.mrf.mxu0 }
0x371f   :  { %v7173_v28 = vpop.xlane.xlu0 %3913 }
0x3720   :  { %vm3923_vm8 = vcmp.ge.f32.partialorder %v7169_v7, %v7173_v28 }
0x3721   :  { %v3924_v30 = vsel %vm3923_vm8, %v6208_v12, 64  ;;  %vm4600_vm8 = vcmp.eq.s32.totalorder %v6208_v12, 4 }
0x3722   :  { %v3925_v32 = vsel %vm2166_vm15, %v3924_v30, 2147483647 }
0x3723   :  { %v3927_v53 = vshra.s32 %v3925_v32, 16  ;;  %v3926_v56 = vand.u32 65535, %v3925_v32 }
0x3725   :  { %v3929_v34 = vcvt.s32.f32 %v3927_v53  ;;  %v3928_v59 = vcvt.s32.f32 %v3926_v56 }
0x3727   :  { %3930 = vmin.xlane.f32.xlu0 %v3929_v34 }
0x373d   :  { %4099 = vrot.lane.b32.xlu0 %v4088_v57, %s6168_s1 }
0x37b0   :  { %v3931_v60 = vpop.xlane.xlu0 %3930 }
0x37b1   :  { %vm3932_vm10 = vcmp.eq.f32.partialorder %v3929_v34, %v3931_v60  ;;  %v3937_v23 = vcvt.f32.s32 %v3931_v60 }
0x37b2   :  { %v3933_v13 = vsel %vm3932_vm10, %v3928_v59, inf }
0x37b3   :  { %3934 = vmin.xlane.f32.xlu1 %v3933_v13  ;;  %v3938_v50 = vshll.u32 %v3937_v23, 16 }
0x37b4   :  { %v4100_v63 = vpop.permute.xlu0 %4099 }
0x383c   :  { %v3935_v43 = vpop.xlane.xlu1 %3934 }
0x383d   :  { %v3936_v45 = vcvt.f32.s32 %v3935_v43  ;;  %v7228_v43 = vld [vmem:[#allocation3 + $0x270] sm:$0xff] }
0x383f   :  { %v3939_v24 = vadd.s32 %v3938_v50, %v3936_v45  ;;  %v7234_v50 = vld [vmem:[#allocation3 + $0x260] sm:$0xff]  ;;  %v7238_v45 = vld [vmem:[#allocation3 + $0x250] sm:$0xff] }
0x3841   :  { %vm3940_vm2 = vcmp.lt.s32.totalorder %v3939_v24, 63 }
0x3842   :  { %v3941_v4 = vsel %vm3940_vm2, %v3939_v24, 63  ;;  %v7242_v24 = vld [vmem:[#allocation3 + $0x240] sm:$0xff] }
0x3843   :  { %vm3942_vm4 = vcmp.eq.s32.totalorder %v6208_v12, %v3941_v4  ;;  %v7188_v47 = vsel %vm4018_vm12, %v3941_v4, %v7074_v18 }
0x3844   :  { %v5194_v46 = vsel %vm3942_vm4, 1.0, %v6165_v1 }
0x3845   :  { %5781 = vmatmul.mubr.msk.f32.vlgmr.msra.gmra.mxu1 %vm44_vm1, %v5194_v46 }
0x3846   :  { %5800 = vmatpush3.msra.mxu1 %v6717_v51  ;;  %5801 = vmatprep.mubr.msk.f32.mxu1 %vm6166_vm0, %v6165_v1 }
0x3847   :  { %5815 = vmatprep.subr.mxu1 %v6165_v1 }
0x3905   :  { %v4014_v49 = vpop.f32.mrf.mxu1 }
0x3906   :  { %v4091_v54 = vadd.f32 %v4088_v57, %v4014_v49 }
0x3907   :  { %v5782_v16 = vpop.f32.mrf.mxu1 }
0x3908   :  { %v5197_v58 = vmul.f32 -1.442695, %v4091_v54  ;;  %v7285_v54 = vld [vmem:[#allocation3 + $0x2c0] ss:$0 sm:$0xff] }
0x390a   :  { %6064 = vpow2.f32 %v5197_v58 }
0x3917   :  { %v6065_v17 = vpop.eup %6064 }
0x3918   :  { %v4095_v61 = vadd.f32 1.0, %v6065_v17 }
0x391a   :  { %6066 = vrcp.f32 %v4095_v61 }
0x3927   :  { %v6067_v18 = vpop.eup %6066 }
0x3928   :  { %v4102_v26 = vmul.f32 %v6067_v18, %v4100_v63  ;;  %v4109_v25 = vsub.f32 1.0, %v6067_v18  ;;  %v4115_v62 = vmul.f32 %v6067_v18, %v7085_v44  ;;  %v7213_v44 = vld [vmem:[#allocation3 + $0x2a0] sm:$0xff] }
0x392a   :  { %4104 = vrot.lane.b32.xlu1 %v4102_v26, %s6168_s1 }
0x399c   :  { %v4105_v48 = vpop.permute.xlu1 %4104 }
0x399d   :  { %v4107_v21 = vadd.f32 %v4105_v48, %v4014_v49 }
0x399f   :  { %6068 = vtanh.f32 %v4107_v21 }
0x39ac   :  { %v6069_v22 = vpop.eup %6068 }
0x39ad   :  { %4111 = vrot.lane.b32.xlu1 %v6069_v22, %s6169_s21 }
0x3a1f   :  { %v4112_v2 = vpop.permute.xlu1 %4111 }
0x3a20   :  { %v4114_v55 = vmul.f32 %v4112_v2, %v4109_v25 }
0x3a22   :  { %v7199_v3 = vadd.f32 %v4115_v62, %v4114_v55 }
0x3a24   :  { %4118 = vrot.lane.b32.xlu0 %v7199_v3, %s6169_s21 }
0x3a96   :  { %v7203_v6 = vpop.permute.xlu0 %4118 }
0x3a97   :  { %5797 = vmatmul.mubr.msk.f32.vlgmr.msra.gmra.mxu0 %vm122_vm3, %v7203_v6 }
0x3a98   :  { %5805 = vmatpush3.msra.mxu0 %v7207_v8  ;;  %5812 = vmatprep.mubr.msk.f32.mxu0 %vm6166_vm0, %v6165_v1 }
0x3a99   :  { %5806 = vmatprep.subr.mxu0 %v6165_v1 }
0x3a9a   :  { %5807 = vmatpush3.msra.mxu0 %v7213_v44 }
0x3a9b   :  { %5808 = vmatprep.subr.mxu0 %v6165_v1 }
0x3a9c   :  { %5809 = vmatpush3.msra.mxu0 %v7217_v19 }
0x3a9d   :  { %5810 = vmatprep.subr.mxu0 %v6165_v1 }
0x3a9e   :  { %5811 = vmatpush3.msra.mxu0 %v7221_v10 }
0x3a9f   :  { %5826 = vmatprep.subr.mxu0 %v6165_v1 }
0x3b57   :  { %v4188_v20 = vpop.f32.mrf.mxu0 }
0x3b58   :  { %v4192_v30 = vsel %vm1861_vm13, %v4188_v20, -inf }
0x3b59   :  { %4193 = vmax.xlane.f32.xlu1 %v4192_v30  ;;  %v5798_v32 = vpop.f32.mrf.mxu0 }
0x3be2   :  { %v4194_v53 = vpop.xlane.xlu1 %4193 }
0x3be3   :  { %v4195_v34 = vsub.f32 %v4188_v20, %v4194_v53 }
0x3be5   :  { %v4196_v57 = vmul.f32 1.442695, %v4195_v34 }
0x3be7   :  { %6070 = vpow2.f32 %v4196_v57 }
0x3bf4   :  { %v6071_v56 = vpop.eup %6070 }
0x3bf5   :  { %v4198_v60 = vsel %vm1861_vm13, %v6071_v56, 0.0 }
0x3bf6   :  { %4199 = vadd.xlane.f32.xlu0 %v4198_v60 }
0x3c7f   :  { %v4200_v59 = vpop.xlane.xlu0 %4199 }
0x3c80   :  { %6072 = vrcp.f32 %v4200_v59 }
0x3c8d   :  { %v6073_v13 = vpop.eup %6072 }
0x3c8e   :  { %v4202_v23 = vmul.f32 %v6073_v13, %v6071_v56 }
0x3c90   :  { %5802 = vmatmul.mubr.msk.f32.vlgmr.msra.gmra.mxu1 %vm1874_vm14, %v4202_v23 }
0x3c91   :  { %5816 = vmatpush3.msra.mxu1 %v7228_v43  ;;  %5823 = vmatprep.mubr.msk.f32.mxu1 %vm6166_vm0, %v6165_v1 }
0x3c92   :  { %5817 = vmatprep.subr.mxu1 %v6165_v1 }
0x3c93   :  { %5818 = vmatpush3.msra.mxu1 %v7234_v50 }
0x3c94   :  { %5819 = vmatprep.subr.mxu1 %v6165_v1 }
0x3c95   :  { %5820 = vmatpush3.msra.mxu1 %v7238_v45 }
0x3c96   :  { %5821 = vmatprep.subr.mxu1 %v6165_v1 }
0x3c97   :  { %5822 = vmatpush3.msra.mxu1 %v7242_v24 }
0x3c98   :  { %5824 = vmatmul.mubr.msk.f32.vlgmr.msra.gmra.mxu1 %vm122_vm3, %v7203_v6  ;;  %5837 = vmatprep.subr.mxu1 %v6165_v1 }
0x3c99   :  { %5838 = vmatpush3.msra.mxu1 %v6622_v14  ;;  %5853 = vmatprep.mubr.msk.f32.mxu1 %vm6166_vm0, %v6165_v1 }
0x3c9a   :  { %5839 = vmatprep.subr.mxu1 %v6165_v1 }
0x3c9b   :  { %5840 = vmatpush3.msra.mxu1 %v6626_v29  ;;  %v7267_v29 = vld [vmem:[#allocation3 + $0x300] sm:$0xff] }
0x3c9c   :  { %5841 = vmatprep.subr.mxu1 %v6165_v1 }
0x3c9d   :  { %5842 = vmatpush3.msra.mxu1 %v6624_v27 }
0x3c9e   :  { %5843 = vmatprep.subr.mxu1 %v6165_v1 }
0x3c9f   :  { %5844 = vmatpush3.msra.mxu1 %v6630_v31  ;;  %v7273_v31 = vld [vmem:[#allocation3 + $0x2f0] sm:$0xff] }
0x3ca0   :  { %5845 = vmatprep.subr.mxu1 %v6165_v1 }
0x3ca1   :  { %5846 = vmatpush3.msra.mxu1 %v6634_v33  ;;  %v7277_v33 = vld [vmem:[#allocation3 + $0x2e0] sm:$0xff] }
0x3ca2   :  { %5847 = vmatprep.subr.mxu1 %v6165_v1 }
0x3ca3   :  { %5848 = vmatpush3.msra.mxu1 %v6638_v35 }
0x3ca4   :  { %5849 = vmatprep.subr.mxu1 %v6165_v1 }
0x3ca5   :  { %5850 = vmatpush3.msra.mxu1 %v6642_v37  ;;  %v7281_v37 = vld [vmem:[#allocation3 + $0x2d0] sm:$0xff] }
0x3ca6   :  { %5851 = vmatprep.subr.mxu1 %v6165_v1 }
0x3ca7   :  { %5852 = vmatpush3.msra.mxu1 %v6646_v39 }
0x3ca8   :  { %5872 = vmatprep.subr.mxu1 %v6165_v1 }
0x3d50   :  { %v4272_v14 = vpop.f32.mrf.mxu1 }
0x3d51   :  { %5813 = vmatmul.mubr.msk.f32.vlgmr.msra.gmra.mxu0 %vm122_vm3, %v4272_v14 }
0x3d52   :  { %v5803_v27 = vpop.f32.mrf.mxu1  ;;  %5827 = vmatpush3.msra.mxu0 %v7267_v29  ;;  %5834 = vmatprep.mubr.msk.f32.mxu0 %vm6166_vm0, %v6165_v1 }
0x3d53   :  { %5828 = vmatprep.subr.mxu0 %v6165_v1 }
0x3d54   :  { %5829 = vmatpush3.msra.mxu0 %v7273_v31 }
0x3d55   :  { %5830 = vmatprep.subr.mxu0 %v6165_v1 }
0x3d56   :  { %5831 = vmatpush3.msra.mxu0 %v7277_v33 }
0x3d57   :  { %5832 = vmatprep.subr.mxu0 %v6165_v1 }
0x3d58   :  { %v4415_v35 = vpop.f32.mrf.mxu1  ;;  %5833 = vmatpush3.msra.mxu0 %v7281_v37 }
0x3d59   :  { %5856 = vmatprep.subr.mxu0 %v6165_v1 }
0x3d5a   :  { %v5825_v39 = vpop.f32.mrf.mxu1 }
0x3e11   :  { %v4345_v4 = vpop.f32.mrf.mxu0 }
0x3e12   :  { %v4416_v46 = vadd.f32 %v4415_v35, %v4345_v4 }
0x3e13   :  { %v5814_v49 = vpop.f32.mrf.mxu0 }
0x3e14   :  { %v4419_v16 = vadd.f32 %v7285_v54, %v4416_v46 }
0x3e16   :  { %6074 = vtanh.f32 %v4419_v16 }
0x3e23   :  { %v6075_v58 = vpop.eup %6074 }
0x3e24   :  { %5835 = vmatmul.mubr.msk.f32.vlgmr.msra.gmra.mxu0 %vm122_vm3, %v6075_v58 }
0x3e25   :  { %5857 = vmatpush3.msra.mxu0 %v7033_v40  ;;  %5864 = vmatprep.mubr.msk.f32.mxu0 %vm6166_vm0, %v6165_v1 }
0x3e26   :  { %5858 = vmatprep.subr.mxu0 %v6165_v1 }
0x3e27   :  { %5859 = vmatpush3.msra.mxu0 %v7039_v9  ;;  %v7306_v9 = vld [vmem:[#allocation3 + $0x310] ss:$0 sm:$0xff] }
0x3e28   :  { %5860 = vmatprep.subr.mxu0 %v6165_v1 }
0x3e29   :  { %5861 = vmatpush3.msra.mxu0 %v7043_v15 }
0x3e2a   :  { %5862 = vmatprep.subr.mxu0 %v6165_v1 }
0x3e2b   :  { %5863 = vmatpush3.msra.mxu0 %v7157_v5 }
0x3e2c   :  { %5865 = vmatmul.mubr.msk.f32.vlgmr.msra.gmra.mxu0 %vm122_vm3, %v7203_v6  ;;  %5867 = vmatprep.subr.mxu0 %v6165_v1 }
0x3e2d   :  { %5868 = vmatpush3.xpose.msk.msra.mxu0 %vm122_vm3, %v6717_v51  ;;  %5869 = vmatprep.mubr.msk.f32.mxu0 %vm6166_vm0, %v6165_v1 }
0x3e2e   :  { %5877 = vmatprep.subr.mxu0 %v6165_v1 }
0x3ee4   :  { %v4490_v40 = vpop.f32.mrf.mxu0 }
0x3ee5   :  { %v7309_v15 = vadd.f32 %v7306_v9, %v4490_v40 }
0x3ee6   :  { %v5836_v5 = vpop.f32.mrf.mxu0 }
0x3ee7   :  { %v4494_v17 = vsel %vm2166_vm15, %v7309_v15, -inf }
0x3ee8   :  { %4495 = vmax.xlane.f32.xlu0 %v4494_v17 }
0x3eec   :  { %v4669_v61 = vpop.f32.mrf.mxu0 }
0x3eed   :  { %v4670_v25 = vadd.f32 %v7179_v52, %v4669_v61 }
0x3eee   :  { %v5866_v18 = vpop.f32.mrf.mxu0 }
0x3eef   :  { %v2170_v18 = vsub.f32 %v6837_v11, %v6841_v41 }
0x3f71   :  { %v7313_v63 = vpop.xlane.xlu0 %4495 }
0x3f72   :  { %vm4505_vm6 = vcmp.ge.f32.partialorder %v7309_v15, %v7313_v63 }
0x3f73   :  { %v4506_v26 = vsel %vm4505_vm6, %v6208_v12, 64 }
0x3f74   :  { %v4507_v48 = vsel %vm2166_vm15, %v4506_v26, 2147483647 }
0x3f75   :  { %v4509_v21 = vshra.s32 %v4507_v48, 16  ;;  %v4508_v2 = vand.u32 65535, %v4507_v48  ;;  %v2171_v48 = vmul.f32 1.442695, %v2170_v18 }
0x3f77   :  { %v4511_v22 = vcvt.s32.f32 %v4509_v21  ;;  %v4510_v55 = vcvt.s32.f32 %v4508_v2 }
0x3f79   :  { %4512 = vmin.xlane.f32.xlu1 %v4511_v22 }
0x3f8a   :  { %4681 = vrot.lane.b32.xlu1 %v4670_v25, %s6168_s1 }
0x4002   :  { %v4513_v62 = vpop.xlane.xlu1 %4512 }
0x4003   :  { %vm4514_vm7 = vcmp.eq.f32.partialorder %v4511_v22, %v4513_v62  ;;  %v4519_v20 = vcvt.f32.s32 %v4513_v62  ;;  %v4497_v22 = vsub.f32 %v7309_v15, %v7313_v63 }
0x4004   :  { %v4515_v6 = vsel %vm4514_vm7, %v4510_v55, inf }
0x4005   :  { %4516 = vmin.xlane.f32.xlu0 %v4515_v6  ;;  %v4520_v32 = vshll.u32 %v4519_v20, 16 }
0x4006   :  { %v4682_v35 = vpop.permute.xlu1 %4681 }
0x408e   :  { %v4517_v30 = vpop.xlane.xlu0 %4516 }
0x408f   :  { %v4518_v53 = vcvt.f32.s32 %v4517_v30 }
0x4091   :  { %v4521_v34 = vadd.s32 %v4520_v32, %v4518_v53 }
0x4093   :  { %vm4522_vm10 = vcmp.lt.s32.totalorder %v4521_v34, 63 }
0x4094   :  { %v4523_v57 = vsel %vm4522_vm10, %v4521_v34, 63 }
0x4095   :  { %vm4524_vm2 = vcmp.eq.s32.totalorder %v6208_v12, %v4523_v57  ;;  %v7326_v52 = vsel %vm4600_vm8, %v4523_v57, %v7188_v47 }
0x4096   :  { %v5204_v56 = vsel %vm4524_vm2, 1.0, %v6165_v1 }
0x4097   :  { %5854 = vmatmul.mubr.msk.f32.vlgmr.msra.gmra.mxu1 %vm44_vm1, %v5204_v56 }
0x4098   :  { %5873 = vmatpush3.msra.mxu1 %v6717_v51  ;;  %5874 = vmatprep.mubr.msk.f32.mxu1 %vm6166_vm0, %v6165_v1 }
0x4099   :  { %5888 = vmatprep.subr.mxu1 %v6165_v1 }
0x4157   :  { %v4596_v60 = vpop.f32.mrf.mxu1 }
0x4158   :  { %v4673_v59 = vadd.f32 %v4670_v25, %v4596_v60  ;;  %v4498_v25 = vmul.f32 1.442695, %v4497_v22 }
0x4159   :  { %v5855_v13 = vpop.f32.mrf.mxu1 }
0x415a   :  { %v5207_v23 = vmul.f32 -1.442695, %v4673_v59 }
0x415c   :  { %6076 = vpow2.f32 %v5207_v23 }
0x4169   :  { %v6077_v14 = vpop.eup %6076 }
0x416a   :  { %v4677_v27 = vadd.f32 1.0, %v6077_v14 }
0x416c   :  { %6078 = vrcp.f32 %v4677_v27 }
0x4179   :  { %v6079_v47 = vpop.eup %6078 }
0x417a   :  { %v4684_v39 = vmul.f32 %v6079_v47, %v4682_v35  ;;  %v4691_v49 = vsub.f32 1.0, %v6079_v47  ;;  %v4697_v58 = vmul.f32 %v6079_v47, %v7199_v3 }
0x417c   :  { %4686 = vrot.lane.b32.xlu0 %v4684_v39, %s6168_s1 }
0x41ee   :  { %v4687_v4 = vpop.permute.xlu0 %4686 }
0x41ef   :  { %v4689_v51 = vadd.f32 %v4687_v4, %v4596_v60  ;;  %v3915_v60 = vsub.f32 %v7169_v7, %v7173_v28 }
0x41f1   :  { %6080 = vtanh.f32 %v4689_v51 }
0x41fe   :  { %v6081_v46 = vpop.eup %6080 }
0x41ff   :  { %4693 = vrot.lane.b32.xlu1 %v6081_v46, %s6169_s21 }
0x4271   :  { %v4694_v16 = vpop.permute.xlu1 %4693 }
0x4272   :  { %v4696_v40 = vmul.f32 %v4694_v16, %v4691_v49 }
0x4274   :  { %v4698_v5 = vadd.f32 %v4697_v58, %v4696_v40 }
0x4276   :  { %4700 = vrot.lane.b32.xlu1 %v4698_v5, %s6169_s21 }
0x42e8   :  { %v4701_v17 = vpop.permute.xlu1 %4700 }
0x42e9   :  { %5870 = vmatmul.mubr.msk.f32.vlgmr.msra.gmra.mxu0 %vm122_vm3, %v4701_v17 }
0x42ea   :  { %5878 = vmatpush3.msra.mxu0 %v7207_v8  ;;  %5885 = vmatprep.mubr.msk.f32.mxu0 %vm6166_vm0, %v6165_v1 }
0x42eb   :  { %5879 = vmatprep.subr.mxu0 %v6165_v1 }
0x42ec   :  { %5880 = vmatpush3.msra.mxu0 %v7213_v44 }
0x42ed   :  { %5881 = vmatprep.subr.mxu0 %v6165_v1 }
0x42ee   :  { %5882 = vmatpush3.msra.mxu0 %v7217_v19  ;;  %v3333_v19 = vsub.f32 %v7057_v38, %v7061_v42 }
0x42ef   :  { %5883 = vmatprep.subr.mxu0 %v6165_v1 }
0x42f0   :  { %5884 = vmatpush3.msra.mxu0 %v7221_v10  ;;  %v3334_v10 = vmul.f32 1.442695, %v3333_v19 }
0x42f1   :  { %5899 = vmatprep.subr.mxu0 %v6165_v1 }
0x43a9   :  { %v4770_v3 = vpop.f32.mrf.mxu0 }
0x43aa   :  { %v4774_v8 = vsel %vm1861_vm13, %v4770_v3, -inf }
0x43ab   :  { %4775 = vmax.xlane.f32.xlu0 %v4774_v8  ;;  %v5871_v61 = vpop.f32.mrf.mxu0 }
0x4434   :  { %v4776_v26 = vpop.xlane.xlu0 %4775 }
0x4435   :  { %v4777_v44 = vsub.f32 %v4770_v3, %v4776_v26 }
0x4437   :  { %v4778_v21 = vmul.f32 1.442695, %v4777_v44 }
0x4439   :  { %6082 = vpow2.f32 %v4778_v21 }
0x443a   :  { %6084 = vpow2.f32 %v2171_v48 }
0x443b   :  { %6086 = vpow2.f32 %v3334_v10 }
0x443c   :  { %6088 = vpow2.f32 %v4498_v25 }
0x4446   :  { %v6083_v2 = vpop.eup %6082 }
0x4447   :  { %v4780_v62 = vsel %vm1861_vm13, %v6083_v2, 0.0  ;;  %v6085_v11 = vpop.eup %6084 }
0x4448   :  { %4781 = vadd.xlane.f32.xlu1 %v4780_v62  ;;  %v2173_v41 = vsel %vm2166_vm15, %v6085_v11, 0.0  ;;  %v6087_v55 = vpop.eup %6086 }
0x4449   :  { %v3336_v38 = vsel %vm2166_vm15, %v6087_v55, 0.0  ;;  %v6089_v42 = vpop.eup %6088 }
0x444a   :  { %v4500_v6 = vsel %vm2166_vm15, %v6089_v42, 0.0 }
0x444c   :  { %2174 = vadd.xlane.f32.xlu1 %v2173_v41 }
0x4450   :  { %3337 = vadd.xlane.f32.xlu1 %v3336_v38 }
0x4454   :  { %4501 = vadd.xlane.f32.xlu1 %v4500_v6 }
0x44d1   :  { %v4782_v15 = vpop.xlane.xlu1 %4781 }
0x44d2   :  { %6090 = vrcp.f32 %v4782_v15 }
0x44d5   :  { %v2175_v51 = vpop.xlane.xlu1 %2174 }
0x44d9   :  { %v3338_v58 = vpop.xlane.xlu1 %3337 }
0x44df   :  { %v6091_v63 = vpop.eup %6090 }
0x44e0   :  { %v4784_v20 = vmul.f32 %v6091_v63, %v6083_v2 }
0x44e2   :  { %5875 = vmatmul.mubr.msk.f32.vlgmr.msra.gmra.mxu1 %vm1874_vm14, %v4784_v20 }
0x44e3   :  { %5889 = vmatpush3.msra.mxu1 %v7228_v43  ;;  %5896 = vmatprep.mubr.msk.f32.mxu1 %vm6166_vm0, %v6165_v1 }
0x44e4   :  { %5890 = vmatprep.subr.mxu1 %v6165_v1 }
0x44e5   :  { %5891 = vmatpush3.msra.mxu1 %v7234_v50 }
0x44e6   :  { %5892 = vmatprep.subr.mxu1 %v6165_v1 }
0x44e7   :  { %5893 = vmatpush3.msra.mxu1 %v7238_v45 }
0x44e8   :  { %5894 = vmatprep.subr.mxu1 %v6165_v1 }
0x44e9   :  { %5895 = vmatpush3.msra.mxu1 %v7242_v24 }
0x44ea   :  { %5897 = vmatmul.mubr.msk.f32.vlgmr.msra.gmra.mxu1 %vm122_vm3, %v4701_v17  ;;  %v4502_v17 = vpop.xlane.xlu1 %4501 }
0x45a2   :  { %v4854_v30 = vpop.f32.mrf.mxu1 }
0x45a3   :  { %5886 = vmatmul.mubr.msk.f32.vlgmr.msra.gmra.mxu0 %vm122_vm3, %v4854_v30 }
0x45a4   :  { %v5876_v43 = vpop.f32.mrf.mxu1  ;;  %5900 = vmatpush3.msra.mxu0 %v7267_v29  ;;  %5907 = vmatprep.mubr.msk.f32.mxu0 %vm6166_vm0, %v6165_v1 }
0x45a5   :  { %5901 = vmatprep.subr.mxu0 %v6165_v1 }
0x45a6   :  { %5902 = vmatpush3.msra.mxu0 %v7273_v31 }
0x45a7   :  { %5903 = vmatprep.subr.mxu0 %v6165_v1 }
0x45a8   :  { %5904 = vmatpush3.msra.mxu0 %v7277_v33 }
0x45a9   :  { %5905 = vmatprep.subr.mxu0 %v6165_v1  ;;  %v2752_v1 = vsub.f32 %v6939_v36, %v6943_v0 }
0x45aa   :  { %v4997_v50 = vpop.f32.mrf.mxu1  ;;  %5906 = vmatpush3.msra.mxu0 %v7281_v37 }
0x45ab   :  { %v2753_v37 = vmul.f32 1.442695, %v2752_v1 }
0x45ac   :  { %v5898_v45 = vpop.f32.mrf.mxu1 }
0x4663   :  { %v4927_v24 = vpop.f32.mrf.mxu0 }
0x4664   :  { %v4998_v32 = vadd.f32 %v4997_v50, %v4927_v24 }
0x4665   :  { %v5887_v29 = vpop.f32.mrf.mxu0 }
0x4666   :  { %v5001_v53 = vadd.f32 %v7285_v54, %v4998_v32  ;;  %v3916_v54 = vmul.f32 1.442695, %v3915_v60 }
0x4668   :  { %6092 = vtanh.f32 %v5001_v53 }
0x4669   :  { %6094 = vpow2.f32 %v2753_v37 }
0x466a   :  { %6096 = vpow2.f32 %v3916_v54 }
0x4675   :  { %v6093_v34 = vpop.eup %6092 }
0x4676   :  { %5908 = vmatmul.mubr.msk.f32.vlgmr.msra.gmra.mxu0 %vm122_vm3, %v6093_v34  ;;  %v6095_v35 = vpop.eup %6094  ;;  %vm5106_vm3 = vcmp.eq.s32.totalorder %v6208_v12, 5 }
0x4677   :  { %v2755_v36 = vsel %vm2166_vm15, %v6095_v35, 0.0  ;;  %v6097_v0 = vpop.eup %6096 }
0x4678   :  { %v3918_v7 = vsel %vm2166_vm15, %v6097_v0, 0.0 }
0x4736   :  { %v5072_v31 = vpop.f32.mrf.mxu0 }
0x4737   :  { %v5073_v57 = vadd.f32 %v7306_v9, %v5072_v31 }
0x4738   :  { %v5909_v56 = vpop.f32.mrf.mxu0 }
0x4739   :  { %v5076_v33 = vsel %vm2166_vm15, %v5073_v57, -inf }
0x473a   :  { %5077 = vmax.xlane.f32.xlu0 %v5076_v33 }
0x47c3   :  { %v5078_v59 = vpop.xlane.xlu0 %5077 }
0x47c4   :  { %v5079_v13 = vsub.f32 %v5073_v57, %v5078_v59  ;;  %vm5087_vm0 = vcmp.ge.f32.partialorder %v5073_v57, %v5078_v59 }
0x47c5   :  { %v5088_v23 = vsel %vm5087_vm0, %v6208_v12, 64 }
0x47c6   :  { %v5080_v9 = vmul.f32 1.442695, %v5079_v13  ;;  %v5089_v14 = vsel %vm2166_vm15, %v5088_v23, 2147483647 }
0x47c7   :  { %v5091_v27 = vshra.s32 %v5089_v14, 16  ;;  %v5090_v4 = vand.u32 65535, %v5089_v14 }
0x47c8   :  { %6098 = vpow2.f32 %v5080_v9 }
0x47c9   :  { %v5093_v47 = vcvt.s32.f32 %v5091_v27  ;;  %v5092_v49 = vcvt.s32.f32 %v5090_v4  ;;  %6100 = vrcp.f32 %v2175_v51 }
0x47cb   :  { %5094 = vmin.xlane.f32.xlu0 %v5093_v47 }
0x47cf   :  { %2756 = vadd.xlane.f32.xlu0 %v2755_v36 }
0x47d3   :  { %3919 = vadd.xlane.f32.xlu0 %v3918_v7 }
0x47d5   :  { %v6099_v28 = vpop.eup %6098 }
0x47d6   :  { %v5082_v39 = vsel %vm2166_vm15, %v6099_v28, 0.0  ;;  %v6101_v8 = vpop.eup %6100 }
0x47d7   :  { %5083 = vadd.xlane.f32.xlu0 %v5082_v39  ;;  %v2275_v18 = vsel %vm2273_vm9, %v6101_v8, 0.0 }
0x4854   :  { %v5095_v46 = vpop.xlane.xlu0 %5094 }
0x4855   :  { %vm5096_vm1 = vcmp.eq.f32.partialorder %v5093_v47, %v5095_v46  ;;  %v5101_v62 = vcvt.f32.s32 %v5095_v46 }
0x4856   :  { %v5097_v16 = vsel %vm5096_vm1, %v5092_v49, inf }
0x4857   :  { %5098 = vmin.xlane.f32.xlu1 %v5097_v16  ;;  %v5102_v41 = vshll.u32 %v5101_v62, 16 }
0x4858   :  { %v2757_v40 = vpop.xlane.xlu0 %2756 }
0x4859   :  { %6102 = vrcp.f32 %v2757_v40 }
0x485a   :  { %6104 = vrcp.f32 %v3338_v58 }
0x485c   :  { %v3920_v5 = vpop.xlane.xlu0 %3919 }
0x485d   :  { %6106 = vrcp.f32 %v3920_v5 }
0x485e   :  { %6108 = vrcp.f32 %v4502_v17 }
0x4860   :  { %v5084_v3 = vpop.xlane.xlu0 %5083 }
0x4861   :  { %6110 = vrcp.f32 %v5084_v3 }
0x4866   :  { %v6103_v61 = vpop.eup %6102 }
0x4867   :  { %v2856_v26 = vsel %vm1603_vm11, %v6103_v61, %v2275_v18  ;;  %v6105_v44 = vpop.eup %6104 }
0x4868   :  { %v3438_v19 = vsel %vm3436_vm5, %v6105_v44, %v2856_v26 }
0x486a   :  { %v6107_v48 = vpop.eup %6106 }
0x486b   :  { %v4020_v21 = vsel %vm4018_vm12, %v6107_v48, %v3438_v19  ;;  %v6109_v10 = vpop.eup %6108 }
0x486c   :  { %v4602_v25 = vsel %vm4600_vm8, %v6109_v10, %v4020_v21 }
0x486e   :  { %v6111_v22 = vpop.eup %6110 }
0x486f   :  { %v5108_v2 = vsel %vm5106_vm3, %v6111_v22, %v4602_v25 }
0x4870   :  { %5110 = vst [vmem:[%s7415_s3] sm:$0x1] %v5108_v2 }
0x48e0   :  { %v5099_v11 = vpop.xlane.xlu1 %5098 }
0x48e1   :  { %v5100_v55 = vcvt.f32.s32 %v5099_v11 }
0x48e3   :  { %v5103_v38 = vadd.s32 %v5102_v41, %v5100_v55 }
0x48e5   :  { %vm5104_vm11 = vcmp.lt.s32.totalorder %v5103_v38, 63 }
0x48e6   :  { %v5105_v42 = vsel %vm5104_vm11, %v5103_v38, 63 }
0x48e7   :  { %v5107_v6 = vsel %vm5106_vm3, %v5105_v42, %v7326_v52 }
0x48e8   :  { %5109 = vst [vmem:[%s7414_s2] sm:$0x1] %v5107_v6 }
0x48e9   :  { %5119 = vsyncpa [#allocation4], 1 }

</bundles_post_ra>
